<compile_context>
chip_gen: v7x
topology: tpu7x:2x2x1
jax: 0.10.0
libtpu: 0.0.40
codegen_flags: <defaults>
</compile_context>

<pallas_src>
import functools

import jax
import jax.numpy as jnp
from jax.experimental import pallas as pl
from jax.experimental.pallas import tpu as pltpu


def _round_up(x, m):
    return ((x + m - 1) // m) * m


def _vmem_capacity_bytes():
    try:
        return int(pltpu.get_tpu_info().vmem_capacity_bytes)
    except Exception:
        return 64 << 20  # conservative (v7x-sized) default


def _divisor_tiles(padded, align, cap):
    """All multiples of `align` that divide `padded` (<= cap), descending."""
    opts = []
    t = align
    limit = min(padded, cap)
    while t <= limit:
        if padded % t == 0:
            opts.append(t)
        t += align
    if not opts:
        opts = [padded]  # full extent is always a legal block shape
    return sorted(set(opts), reverse=True)


def _plan(M, N, K, in_itemsize, out_itemsize, vmem_cap):
    """Padding-aware tile plan + vmem limit for one matmul shape."""
    m_align = 8 if in_itemsize >= 4 else 16  # f32 vs bf16 sublane packing
    Mp = _round_up(M, m_align)
    Np = _round_up(N, 128)
    Kp = _round_up(K, 128)

    m_opts = _divisor_tiles(Mp, m_align, 512)
    n_opts = _divisor_tiles(Np, 128, 1024)
    k_opts = _divisor_tiles(Kp, 128, 2048)  # prefer full / fat K steps

    def wset(tm, tn, tk):
        # Double-buffered A/B input tiles + double-buffered output tile
        # + resident f32 accumulator scratch.
        return (2 * (tm * tk + tk * tn) * in_itemsize
                + 2 * tm * tn * out_itemsize
                + tm * tn * 4)

    budget = max(int(vmem_cap * 0.55), 24 << 20)
    im = jn = ik = 0
    while wset(m_opts[im], n_opts[jn], k_opts[ik]) > budget:
        if ik + 1 < len(k_opts):
            ik += 1
        elif jn + 1 < len(n_opts):
            jn += 1
        elif im + 1 < len(m_opts):
            im += 1
        else:
            break
    tm, tn, tk = m_opts[im], n_opts[jn], k_opts[ik]

    # Megacore: ensure >=2 blocks on a "parallel" axis so a second
    # TensorCore (v7x) is not left idle when the output fits one tile.
    if (Mp // tm) * (Np // tn) < 2:
        if im + 1 < len(m_opts):
            tm = m_opts[im + 1]
        elif jn + 1 < len(n_opts):
            tn = n_opts[jn + 1]

    working = wset(tm, tn, tk)
    vmem_limit = max(working + (8 << 20), 32 << 20)
    vmem_limit = min(vmem_limit, int(vmem_cap * 0.8))
    vmem_limit = max(vmem_limit, working + (2 << 20))
    return tm, tn, tk, int(vmem_limit)


def _hm_matmul_kernel(c_ref, a_ref, b_ref, o_ref, acc_ref):
    """One (tm, tn) output tile; f32 accumulation across the K grid axis."""
    k = pl.program_id(2)

    @pl.when(k == 0)
    def _():
        acc_ref[...] = jnp.zeros_like(acc_ref)

    acc_ref[...] += jnp.dot(
        a_ref[...], b_ref[...], preferred_element_type=jnp.float32
    )

    @pl.when(k == pl.num_programs(2) - 1)
    def _():
        # Apply C1 * scale once per output element and cast in-kernel so the
        # HBM writeback is already in the final (possibly bf16) dtype.
        o_ref[...] = (acc_ref[...] * c_ref[0]).astype(o_ref.dtype)


@functools.partial(
    jax.jit, static_argnames=("out_dtype", "tm", "tn", "tk", "vmem_limit")
)
def _hm_pallas(a, b, c, *, out_dtype, tm, tn, tk, vmem_limit):
    M, K = a.shape
    _, N = b.shape
    in_sz = jnp.dtype(a.dtype).itemsize
    out_sz = jnp.dtype(out_dtype).itemsize

    # Pad up to tile multiples (zeros along K are exact; M/N padding sliced
    # off).  With padding-aware tiles this is usually a no-op.
    Mp, Np, Kp = _round_up(M, tm), _round_up(N, tn), _round_up(K, tk)
    if (Mp, Kp) != (M, K):
        a = jnp.pad(a, ((0, Mp - M), (0, Kp - K)))
    if (Kp, Np) != (K, N):
        b = jnp.pad(b, ((0, Kp - K), (0, Np - N)))

    grid = (Mp // tm, Np // tn, Kp // tk)

    out = pl.pallas_call(
        _hm_matmul_kernel,
        out_shape=jax.ShapeDtypeStruct((Mp, Np), out_dtype),
        grid_spec=pltpu.PrefetchScalarGridSpec(
            num_scalar_prefetch=0,
            grid=grid,
            in_specs=[
                # scalar C1*scale lives in SMEM, visible to every grid step
                pl.BlockSpec(memory_space=pltpu.SMEM),
                pl.BlockSpec((tm, tk), lambda i, j, k: (i, k)),
                pl.BlockSpec((tk, tn), lambda i, j, k: (k, j)),
            ],
            out_specs=pl.BlockSpec((tm, tn), lambda i, j, k: (i, j)),
            scratch_shapes=[pltpu.VMEM((tm, tn), jnp.float32)],
        ),
        compiler_params=pltpu.CompilerParams(
            dimension_semantics=("parallel", "parallel", "arbitrary"),
            vmem_limit_bytes=vmem_limit,
        ),
        cost_estimate=pl.CostEstimate(
            flops=2 * M * N * K,
            bytes_accessed=M * K * in_sz + K * N * in_sz + M * N * out_sz,
            transcendentals=0,
        ),
    )(c, a, b)

    if (Mp, Np) != (M, N):
        out = out[:M, :N]
    return out


def homomorphic_multiply(encrypted1, encrypted2, c1_times_scale):
    a = jnp.asarray(encrypted1)
    b = jnp.asarray(encrypted2)
    if a.ndim != 2 or b.ndim != 2:
        raise ValueError("HomomorphicMultiply expects 2-D operands.")
    M, K = a.shape
    K2, N = b.shape
    if K != K2:
        raise ValueError(
            "Input tensors must have compatible shapes for matrix "
            "multiplication."
        )

    out_dtype = jnp.result_type(a.dtype, b.dtype)
    c = jnp.asarray(c1_times_scale, dtype=jnp.float32).reshape((1,))

    floating = (jnp.issubdtype(a.dtype, jnp.floating)
                and jnp.issubdtype(b.dtype, jnp.floating))

    # Tiny problems (grid/launch overhead dominates) or non-float operands:
    # plain XLA path.
    if not floating or (M * N * K) < (1 << 18):
        out = jnp.matmul(a.astype(jnp.float32), b.astype(jnp.float32)) * c[0]
        return out.astype(out_dtype) if floating else out

    # Stream inputs in their native floating dtype (bf16 stays bf16);
    # everything else computes in f32.  Accumulation is always f32 in-kernel.
    f32 = jnp.dtype(jnp.float32)
    bf16 = jnp.dtype(jnp.bfloat16)
    if jnp.dtype(a.dtype) == bf16 and jnp.dtype(b.dtype) == bf16:
        compute_dtype = jnp.bfloat16
    else:
        compute_dtype = jnp.float32
    a = a.astype(compute_dtype)
    b = b.astype(compute_dtype)

    kernel_out_dtype = out_dtype if out_dtype in (f32, bf16) else f32

    tm, tn, tk, vmem_limit = _plan(
        M, N, K,
        jnp.dtype(compute_dtype).itemsize,
        jnp.dtype(kernel_out_dtype).itemsize,
        _vmem_capacity_bytes(),
    )
    out = _hm_pallas(
        a, b, c,
        out_dtype=kernel_out_dtype, tm=tm, tn=tn, tk=tk,
        vmem_limit=vmem_limit,
    )
    return out if out.dtype == out_dtype else out.astype(out_dtype)


class HomomorphicMultiply:
    """JAX/Pallas port of the PyTorch HomomorphicMultiply module."""

    def __init__(self, C1):
        self.C1 = float(C1)

    def __call__(self, encrypted1, encrypted2, scale=1.0):
        if encrypted1.shape[1] != encrypted2.shape[0]:
            raise ValueError(
                "Input tensors must have compatible shapes for matrix "
                "multiplication."
            )
        return homomorphic_multiply(
            encrypted1, encrypted2, self.C1 * float(scale)
        )


if __name__ == "__main__":
    key = jax.random.PRNGKey(0)
    k1, k2, k3, k4, k5, k6 = jax.random.split(key, 6)

    C1, scale = 3.0, 2.0
    module = HomomorphicMultiply(C1)

    # 1) f32 Pallas path: padding-aware tiles make (512, 768, 640) completely
    #    padding-free (tm=256, tn=640, tk=768 -> a single K step, 2 parallel
    #    M blocks).
    M, K, N = 512, 768, 640
    e1 = jax.random.normal(k1, (M, K), dtype=jnp.float32)
    e2 = jax.random.normal(k2, (K, N), dtype=jnp.float32)
    out = jax.block_until_ready(module(e1, e2, scale=scale))
    ref = jnp.matmul(e1, e2, precision=jax.lax.Precision.HIGHEST) * C1 * scale
    assert out.shape == (M, N)
    assert out.dtype == jnp.float32
    assert jnp.allclose(out, ref, atol=2e-2, rtol=1e-3)

    # 2) bf16 Pallas path: native bf16 streaming, f32 accumulation, in-kernel
    #    bf16 writeback; exercises K padding (300 -> 384, zero-padded = exact).
    Mb, Kb, Nb = 192, 300, 256
    b1 = jax.random.normal(k3, (Mb, Kb), dtype=jnp.bfloat16)
    b2 = jax.random.normal(k4, (Kb, Nb), dtype=jnp.bfloat16)
    out_b = jax.block_until_ready(module(b1, b2, scale=scale))
    ref_b = (jnp.matmul(b1.astype(jnp.float32), b2.astype(jnp.float32))
             * C1 * scale)
    assert out_b.shape == (Mb, Nb)
    assert out_b.dtype == jnp.bfloat16
    assert jnp.allclose(out_b.astype(jnp.float32), ref_b, atol=1.0, rtol=2e-2)

    # 3) Tiny-shape fallback path (below the Pallas threshold).
    s1 = jax.random.normal(k5, (16, 32), dtype=jnp.float32)
    s2 = jax.random.normal(k6, (32, 24), dtype=jnp.float32)
    out_s = jax.block_until_ready(module(s1, s2, scale=scale))
    ref_s = jnp.matmul(s1, s2) * C1 * scale
    assert jnp.allclose(out_s, ref_s, atol=1e-4, rtol=1e-4)

    print("KERNEL_OK")
</pallas_src>

<mosaic_0001>
module attributes {stable_mosaic.version = 11 : i64} {
  func.func @_hm_matmul_kernel(%arg0: i32, %arg1: i32, %arg2: i32, %arg3: memref<1xf32, #tpu.memory_space<smem>>, %arg4: memref<256x768xf32, #tpu.memory_space<vmem>>, %arg5: memref<768x640xf32, #tpu.memory_space<vmem>>, %arg6: memref<256x640xf32, #tpu.memory_space<vmem>>, %arg7: memref<256x640xf32, #tpu.memory_space<vmem>>) attributes {dimension_semantics = [#tpu.dimension_semantics<parallel>, #tpu.dimension_semantics<parallel>, #tpu.dimension_semantics<arbitrary>], iteration_bounds = array<i64: 2, 1, 1>, scalar_prefetch = 0 : i64, scratch_operands = 1 : i64, tpu.core_type = #tpu.core_type<tc>, window_params = [{transform_indices = @transform_0, window_bounds = array<i64: 1>}, {transform_indices = @transform_1, window_bounds = array<i64: 256, 768>}, {transform_indices = @transform_2, window_bounds = array<i64: 768, 640>}, {transform_indices = @transform_3, window_bounds = array<i64: 256, 640>}]} {
    %c0_i32 = arith.constant 0 : i32
    %0 = arith.cmpi eq, %arg2, %c0_i32 : i32
    %1 = arith.extui %0 : i1 to i32
    %c0_i32_0 = arith.constant 0 : i32
    %2 = arith.cmpi ne, %1, %c0_i32_0 : i32
    scf.if %2 {
      %cst_10 = arith.constant 0.000000e+00 : f32
      %12 = vector.broadcast %cst_10 : f32 to vector<256x640xf32>
      %c0_11 = arith.constant 0 : index
      %c0_12 = arith.constant 0 : index
      %13 = vector.load %arg7[%c0_11, %c0_12] : memref<256x640xf32, #tpu.memory_space<vmem>>, vector<256x640xf32>
      tpu.vector_store %arg7[%c0_11, %c0_12], %12 {strides = array<i32>} : memref<256x640xf32, #tpu.memory_space<vmem>>, vector<256x640xf32>,
    } else {
    }
    %c0 = arith.constant 0 : index
    %c0_1 = arith.constant 0 : index
    %3 = vector.load %arg7[%c0, %c0_1] : memref<256x640xf32, #tpu.memory_space<vmem>>, vector<256x640xf32>
    %c0_2 = arith.constant 0 : index
    %c0_3 = arith.constant 0 : index
    %4 = vector.load %arg4[%c0_2, %c0_3] : memref<256x768xf32, #tpu.memory_space<vmem>>, vector<256x768xf32>
    %c0_4 = arith.constant 0 : index
    %c0_5 = arith.constant 0 : index
    %5 = vector.load %arg5[%c0_4, %c0_5] : memref<768x640xf32, #tpu.memory_space<vmem>>, vector<768x640xf32>
    %cst = arith.constant dense<0.000000e+00> : vector<256x640xf32>
    %6 = tpu.matmul %4, %5, %cst {dimension_numbers = #tpu.dot_dimension_numbers<[1], [0], [0], [1], [0, 0, 1, 1], [], []>} : vector<256x768xf32>, vector<768x640xf32>, vector<256x640xf32> -> vector<256x640xf32>
    %7 = arith.addf %3, %6 : vector<256x640xf32>
    %c0_6 = arith.constant 0 : index
    %c0_7 = arith.constant 0 : index
    %8 = vector.load %arg7[%c0_6, %c0_7] : memref<256x640xf32, #tpu.memory_space<vmem>>, vector<256x640xf32>
    tpu.vector_store %arg7[%c0_6, %c0_7], %7 {strides = array<i32>} : memref<256x640xf32, #tpu.memory_space<vmem>>, vector<256x640xf32>,
    %c0_i32_8 = arith.constant 0 : i32
    %9 = arith.cmpi eq, %arg2, %c0_i32_8 : i32
    %10 = arith.extui %9 : i1 to i32
    %c0_i32_9 = arith.constant 0 : i32
    %11 = arith.cmpi ne, %10, %c0_i32_9 : i32
    scf.if %11 {
      %c0_10 = arith.constant 0 : index
      %c0_11 = arith.constant 0 : index
      %12 = vector.load %arg7[%c0_10, %c0_11] : memref<256x640xf32, #tpu.memory_space<vmem>>, vector<256x640xf32>
      %c0_12 = arith.constant 0 : index
      %13 = memref.load %arg3[%c0_12] : memref<1xf32, #tpu.memory_space<smem>>
      %14 = vector.broadcast %13 : f32 to vector<256x640xf32>
      %15 = arith.mulf %12, %14 : vector<256x640xf32>
      %c0_13 = arith.constant 0 : index
      %c0_14 = arith.constant 0 : index
      %16 = vector.load %arg6[%c0_13, %c0_14] : memref<256x640xf32, #tpu.memory_space<vmem>>, vector<256x640xf32>
      tpu.vector_store %arg6[%c0_13, %c0_14], %15 {strides = array<i32>} : memref<256x640xf32, #tpu.memory_space<vmem>>, vector<256x640xf32>,
    } else {
    }
    return
  }
  func.func @transform_0(%arg0: i32, %arg1: i32, %arg2: i32) -> i32 {
    %c0_i32 = arith.constant 0 : i32
    %c0_i32_0 = arith.constant 0 : i32
    return %c0_i32 : i32
  }
  func.func @transform_1(%arg0: i32, %arg1: i32, %arg2: i32) -> (i32, i32) {
    %c0_i32 = arith.constant 0 : i32
    return %arg0, %arg2 : i32, i32
  }
  func.func @transform_2(%arg0: i32, %arg1: i32, %arg2: i32) -> (i32, i32) {
    %c0_i32 = arith.constant 0 : i32
    return %arg2, %arg1 : i32, i32
  }
  func.func @transform_3(%arg0: i32, %arg1: i32, %arg2: i32) -> (i32, i32) {
    %c0_i32 = arith.constant 0 : i32
    return %arg0, %arg1 : i32, i32
  }
}

</mosaic_0001>

<bundles_post_ra>
// kernel: _hm_pallas.1
= control target key start
LH: loop header
LB: loop body
LE: loop exit
PB: predicated region body
PF: predicated region fallthrough
CT: control target
= control target key end

     0   :  { %s7002_s0 = inlined_call_operand.<no memory space> [shape: f32[1], index: 0, kind: input, shape index: {}]   ;;  %s7003_s1 = inlined_call_operand.hbm [shape: f32[512,768], index: 1, kind: input, shape index: {}]   ;;  %s7004_s2 = inlined_call_operand.hbm [shape: f32[768,640], index: 2, kind: input, shape index: {}]   ;;  %s7005_s3 = inlined_call_operand.hbm [shape: f32[512,640], index: 3, kind: output, shape index: {}]  }
   0x1   :  { %8 = sst [smem:[#allocation3]] %s7002_s0 }
   0x2   :  { %9 = vsyncpa [#allocation5], 0 }
   0x3   :  { %11 = vsyncpa [#allocation5 + $0x1], 0 }
   0x4   :  { %12 = vsyncpa [#allocation8], 0 }
   0x5   :  { %13 = vsyncpa [#allocation6], 0 }
   0x6   :  { %15 = vsyncpa [#allocation6 + $0x1], 0  ;;  %s5805_s14 = smov 0   ;;  %s5807_s15 = smov 0  }
   0x7   :  { %s5809_s16 = smov 0   ;;  %s5811_s17 = smov 0  }
   0x8   :  { %s5813_s18 = smov 0   ;;  %s5815_s19 = smov 0  }
   0x9 LB: > { %s4390_s0 = sadd.s32 4294967295, %s5770_s19   ;;  %s4391_s20 = sadd.s32 4294967294, %s5770_s19   ;;  %s5770_s19 = sphi %s5815_s19, %s21_s19   ;;  %s5766_s18 = sphi %s5813_s18, %s7028_s18   ;;  %s5762_s17 = sphi %s5811_s17, %s7027_s17   ;;  %s5758_s16 = sphi %s5809_s16, %s7026_s16   ;;  %s5754_s15 = sphi %s5807_s15, %s7025_s15   ;;  %s5750_s14 = sphi %s5805_s14, %s7024_s14  }
   0xa   : > { %p83_p0 = scmp.ne.s32.totalorder %s5754_s15, %s5750_s14  ;;  %p5839_p1 = scmp.eq.s32.totalorder %s4390_s0, 0 }
   0xb   : > { %p5843_p2 = scmp.eq.s32.totalorder %s4390_s0, 1  ;;  %p143_p3 = scmp.eq.s32.totalorder %s4391_s20, 1 }
   0xc   : > { %s7010_s21 = scalar_select %p5839_p1, 1, 0 }
   0xd   : > { %s7011_s22 = scalar_select %p5843_p2, 1, 0 }
   0xe   : > { %p5849_p4 = por %p5839_p1, %p83_p0  ;;  %p4392_p5 = scmp.ge.s32.totalorder %s5770_s19, 1 }
   0xf   : > { %p5854_p6 = por %p143_p3, %p83_p0  ;;  %p150_p7 = scmp.lt.s32.totalorder %s5770_s19, 3 }
  0x10   : > { %s7012_s23 = scalar_select %p5849_p4, 1, 0 }
  0x11   : > { %s7013_s24 = scalar_select %p5854_p6, 1, 0 }
  0x12   : > { %p5859_p8 = pnand %p4392_p5, %p150_p7  ;;  %s5772_s26 = smov [#allocation7]  }
  0x13   : > { %s171_s27 = sshll.u32 %s5772_s26, 4  ;;  %s40_s29 = sadd.s32 1, %s5766_s18  ;;  %s172_s27 = int_to_ptr.vmem [resolvable:$true] %s171_s27 }
  0x14   : > { %s7014_s25 = scalar_select %p5859_p8, 1, 0 }
  0x15   : > { %p5362_p9 = pneg %p5859_p8  ;;  %s5626_s5 = scalar_lea.hbm %s7004_s2, 61440 }
  0x16   : > { %p5627_p12 = scmp.ne.s32.totalorder %s7004_s2, %s5626_s5  ;;  %p5633_p5 = scmp.lt.u32.totalorder %s5626_s5, %s7004_s2 }
  0x17   : > { %p5868_p11 = pnand %p5362_p9, %p5839_p1 }
  0x19   : > { %p5628_p13 = pneg %p5868_p11 }
  0x1b   : > { %p5629_p0 = pnand %p5628_p13, %p5627_p12 }
  0x1d   : > { %p5630_p3 = pneg %p5629_p0 }
  0x1f   : > { %p5635_p7 = pnand %p5633_p5, %p5630_p3 }
  0x21   : > { %5638 = shalt.err (!%p5635_p7)
}
  0x22   : > { %s5639_s10 = scalar_lea.vmem %s172_s27, 61440  ;;  %p5647_p1 = scmp.lt.s32.totalorder %s172_s27, %s172_s27 }
  0x23   : > { %p5640_p9 = scmp.ne.s32.totalorder %s172_s27, %s5639_s10  ;;  %p5648_p4 = scmp.lt.s32.totalorder %s5639_s10, %s5639_s10 }
  0x25   : > { %p5642_p10 = pnand %p5640_p9, %p5628_p13  ;;  %p5649_p8 = por %p5648_p4, %p5647_p1 }
  0x27   : > { %p5643_p6 = pneg %p5642_p10 }
  0x29   : > { %p5650_p2 = pnand %p5649_p8, %p5643_p6 }
  0x2b   : > { %5653 = shalt.err (!%p5650_p2)
}
  0x2c   : > { %s5773_s11 = smov 640   ;;  %s5774_s12 = smov 40  }
  0x2d   : > { %5365 = dma.hbm_to_vmem [thread:$0]  (!%p5868_p11), %s7004_s2, 61440, %s172_s27, [#allocation8], %s5773_s11, %s5773_s11, %s5774_s12  }
  0x2e   : > { %p42_p1 = scmp.ge.s32.totalorder %s40_s29, 2  ;;  %s70_s20 = sadd.s32 1, %s5758_s16 }
  0x2f   : > { %p77_p2 = scmp.ne.s32.totalorder %s5758_s16, %s5754_s15  ;;  %p78_p4 = scmp.eq.s32.totalorder %s5770_s19, 0 }
  0x30   : > { %s7030_s29 = smov (%p42_p1, %s40_s29), 0  ;;  %p7016_p8 = scmp.ne.s32.totalorder %s7011_s22, 0 }
  0x31   : > { %p79_p6 = por %p78_p4, %p77_p2  ;;  %s65_s30 = ssub.s32 %s5766_s18, %s7030_s29 }
  0x32   : > { %p5897_p10 = por %p7016_p8, %p77_p2  ;;  %p5375_p12 = scmp.lt.s32.totalorder %s5770_s19, 2 }
  0x33   : > { %p68_p13 = scmp.eq.s32.totalorder %s65_s30, 0  ;;  %s185_s28 = sand.u32 1, %s5758_s16  }
  0x34   : > { %s5349_s4 = smul.u32 1536, %s185_s28  ;;  %p5909_p11 = pnand %p5375_p12, %p79_p6 }
  0x35   : > { %s5906_s5 = scalar_select %p68_p13, %s5758_s16, %s70_s20  }
  0x36   : > { %s5350_s27 = smul.u32 24576, %s5766_s18  ;;  %s189_s6 = scalar_lea.vmem [#allocation4], %s5349_s4 }
  0x37   : > { %s199_s7 = sshll.u32 %s189_s6, 4  ;;  %s5920_s11 = scalar_lea.sflag [#allocation5], %s185_s28  ;;  %s5918_s7 = int_to_ptr.vmem [resolvable:$true] %s199_s7 }
  0x38   : > { %s5916_s10 = scalar_lea.hbm %s7003_s1, %s5350_s27  ;;  %p5656_p3 = pneg %p5909_p11 }
  0x39   : > { %s5654_s12 = scalar_lea.hbm %s5916_s10, 24576  ;;  %s5659_s20 = scalar_lea.hbm %s7003_s1, 49152 }
  0x3a   : > { %p5655_p0 = scmp.ne.s32.totalorder %s5916_s10, %s5654_s12  ;;  %p5660_p9 = scmp.lt.u32.totalorder %s5916_s10, %s7003_s1 }
  0x3b   : > { %p5661_p1 = scmp.lt.u32.totalorder %s5659_s20, %s5654_s12  ;;  %p5663_p4 = scmp.lt.u32.totalorder %s5654_s12, %s5916_s10 }
  0x3c   : > { %p5657_p5 = pnand %p5656_p3, %p5655_p0 }
  0x3d   : > { %p5662_p2 = por %p5661_p1, %p5660_p9 }
  0x3e   : > { %p5658_p7 = pneg %p5657_p5 }
  0x3f   : > { %p5664_p6 = por %p5663_p4, %p5662_p2 }
  0x41   : > { %p5665_p8 = pnand %p5664_p6, %p5658_p7 }
  0x43   : > { %5668 = shalt.err (!%p5665_p8)
}
  0x44   : > { %s5669_s28 = scalar_lea.vmem %s5918_s7, 24576  ;;  %s5775_s27 = smov [#allocation4]  }
  0x45   : > { %p5670_p12 = scmp.ne.s32.totalorder %s5918_s7, %s5669_s28  ;;  %s5674_s6 = sshll.u32 %s5775_s27, 4  ;;  %s5675_s6 = int_to_ptr.vmem [resolvable:$false] %s5674_s6 }
  0x46   : > { %s5676_s9 = scalar_lea.vmem %s5675_s6, 49152  ;;  %p5677_p5 = scmp.lt.s32.totalorder %s5918_s7, %s5675_s6 }
  0x47   : > { %p5672_p13 = pnand %p5670_p12, %p5656_p3  ;;  %p5678_p9 = scmp.lt.s32.totalorder %s5676_s9, %s5669_s28 }
  0x49   : > { %p5673_p0 = pneg %p5672_p13  ;;  %p5679_p1 = por %p5678_p9, %p5677_p5 }
  0x4b   : > { %p5680_p2 = pnand %p5679_p1, %p5673_p0 }
  0x4d   : > { %5683 = shalt.err (!%p5680_p2)
}
  0x4e   : > { %s5776_s22 = smov 768   ;;  %s5777_s12 = smov 48  }
  0x4f   : > { %5369 = dma.hbm_to_vmem [thread:$0]  (!%p5909_p11), %s5916_s10, 24576, %s5918_s7, %s5920_s11, %s5776_s22, %s5776_s22, %s5777_s12  }
  0x50   : > { %p7019_p3 = scmp.ne.s32.totalorder %s7014_s25, 0 }
  0x51   : > { %s5951_s13 = sand.u32 (!%p7019_p3), 1, %s5754_s15   ;;  %p7020_p7 = scmp.ne.s32.totalorder (!%p7019_p3), %s7012_s23, 0 }
  0x52   : > { %211 = sbr.rel (%p7019_p3) target bundleno = 963 (0x3c3), region = 32  ;;  %s214_s20 = scalar_lea.sflag (!%p7019_p3), [#allocation5], %s5951_s13 }
  0x53   : > { %s5351_s0 = smul.u32 (!%p7019_p3), 1536, %s5951_s13 }
  0x55   : > { %s5955_s30 = scalar_lea.vmem (!%p7019_p3), [#allocation4], %s5351_s0 }
  0x59   : > { %5737 = dma.done.wait (%p7020_p7), %s214_s20, 24576  }
  0x5a   : > { %5739 = vsyncadd (%p7020_p7), %s214_s20, 4294942720  ;;  %p7021_p11 = scmp.ne.s32.totalorder %s7010_s21, 0 }
  0x5c   : > { %5741 = dma.done.wait (%p7021_p11), [#allocation8], 61440  }
  0x5d   : > { %5743 = vsyncadd (%p7021_p11), [#allocation8], 4294905856  ;;  %v767_v0 = vld [vmem:[#allocation7 + $0x8] sm:$0xff]  ;;  %v772_v1 = vld [vmem:[#allocation7 + $0x30] sm:$0xff]  ;;  %s3946_s21 = sld [smem:[#allocation3]]  ;;  %s5352_s23 = smul.u32 1280, %s5951_s13 }
  0x5e   : > { %v927_v2 = vld [vmem:[#allocation7 + $0x508] sm:$0xff]  ;;  %v4405_v3 = vpack.c.bf16 %v772_v1, %v767_v0  ;;  %v932_v4 = vld [vmem:[#allocation7 + $0x530] sm:$0xff]  ;;  %v766_v5 = vld [vmem:[#allocation7] sm:$0xff]  ;;  %s5353_s7 = smul.u32 20480, %s5762_s17  ;;  %s4269_s4 = scalar_lea.sflag [#allocation6], %s5951_s13 }
  0x5f   : > { %v771_v6 = vld [vmem:[#allocation7 + $0x28] sm:$0xff]  ;;  %v5965_v7 = vpack.c.bf16 %v932_v4, %v927_v2  ;;  %v926_v9 = vld [vmem:[#allocation7 + $0x500] sm:$0xff]  ;;  %v777_v11 = vld [vmem:[#allocation7 + $0x58] sm:$0xff]  ;;  %s6435_s25 = scalar_lea.vmem [#allocation9], %s5352_s23  ;;  %s5779_s27 = smov [#allocation9]  }
  0x60   : > { %v4407_v8 = vpack.c.bf16 %v771_v6, %v766_v5  ;;  %v931_v10 = vld [vmem:[#allocation7 + $0x528] sm:$0xff]  ;;  %4406 = vmatprep.subr.bf16.mxu1 %v4405_v3  ;;  %v782_v13 = vld [vmem:[#allocation7 + $0x80] sm:$0xff]  ;;  %v937_v14 = vld [vmem:[#allocation7 + $0x558] sm:$0xff]  ;;  %s4285_s8 = sshll.u32 %s6435_s25, 4  ;;  %s6946_s11 = scalar_lea.hbm %s7005_s3, %s5353_s7  ;;  %s6948_s8 = int_to_ptr.vmem [resolvable:$true] %s4285_s8 }
  0x61   : > { %v5967_v12 = vpack.c.bf16 %v931_v10, %v926_v9  ;;  %v942_v15 = vld [vmem:[#allocation7 + $0x580] sm:$0xff]  ;;  %4470 = vmatprep.subr.bf16.mxu0 %v5965_v7  ;;  %v4409_v16 = vpack.c.bf16 %v782_v13, %v777_v11  ;;  %v776_v18 = vld [vmem:[#allocation7 + $0x50] sm:$0xff]  ;;  %v781_v19 = vld [vmem:[#allocation7 + $0x78] sm:$0xff]  ;;  %s5684_s28 = scalar_lea.vmem %s6948_s8, 20480  ;;  %s5688_s6 = sshll.u32 %s5779_s27, 4  ;;  %s5689_s6 = int_to_ptr.vmem [resolvable:$false] %s5688_s6 }
  0x62   : > { %4408 = vmatpush1.bf16.msra.mxu1 %v4407_v8  ;;  %v5970_v17 = vpack.c.bf16 %v942_v15, %v937_v14  ;;  %v936_v20 = vld [vmem:[#allocation7 + $0x550] sm:$0xff]  ;;  %v4411_v21 = vpack.c.bf16 %v781_v19, %v776_v18  ;;  %v941_v22 = vld [vmem:[#allocation7 + $0x578] sm:$0xff]  ;;  %v787_v23 = vld [vmem:[#allocation7 + $0xa8] sm:$0xff]  ;;  %p5685_p4 = scmp.ne.s32.totalorder %s6948_s8, %s5684_s28  ;;  %s5690_s9 = scalar_lea.vmem %s5689_s6, 40960 }
  0x63   : > { %4472 = vmatpush1.bf16.msra.mxu0 %v5967_v12  ;;  %v792_v24 = vld [vmem:[#allocation7 + $0xd0] sm:$0xff]  ;;  %4410 = vmatprep.subr.bf16.mxu1 %v4409_v16  ;;  %v5974_v25 = vpack.c.bf16 %v941_v22, %v936_v20  ;;  %v947_v27 = vld [vmem:[#allocation7 + $0x5a8] sm:$0xff]  ;;  %v786_v29 = vld [vmem:[#allocation7 + $0xa0] sm:$0xff]  ;;  %p5691_p12 = scmp.lt.s32.totalorder %s6948_s8, %s5689_s6  ;;  %p5692_p13 = scmp.lt.s32.totalorder %s5690_s9, %s5684_s28 }
  0x64   : > { %4474 = vmatprep.subr.bf16.mxu0 %v5970_v17  ;;  %v4413_v26 = vpack.c.bf16 %v792_v24, %v787_v23  ;;  %v952_v28 = vld [vmem:[#allocation7 + $0x5d0] sm:$0xff]  ;;  %v791_v31 = vld [vmem:[#allocation7 + $0xc8] sm:$0xff]  ;;  %v946_v32 = vld [vmem:[#allocation7 + $0x5a0] sm:$0xff]  ;;  %p5686_p6 = pnand %p5685_p4, %p5897_p10 }
  0x65   : > { %v5976_v30 = vpack.c.bf16 %v952_v28, %v947_v27  ;;  %v951_v33 = vld [vmem:[#allocation7 + $0x5c8] sm:$0xff]  ;;  %v4415_v34 = vpack.c.bf16 %v791_v31, %v786_v29  ;;  %v797_v35 = vld [vmem:[#allocation7 + $0xf8] sm:$0xff]  ;;  %v802_v36 = vld [vmem:[#allocation7 + $0x120] sm:$0xff]  ;;  %p5693_p0 = por %p5692_p13, %p5691_p12 }
  0x66   : > { %4412 = vmatpush1.bf16.msra.mxu1 %v4411_v21  ;;  %v957_v37 = vld [vmem:[#allocation7 + $0x5f8] sm:$0xff]  ;;  %v5979_v38 = vpack.c.bf16 %v951_v33, %v946_v32  ;;  %v4417_v39 = vpack.c.bf16 %v802_v36, %v797_v35  ;;  %v962_v40 = vld [vmem:[#allocation7 + $0x620] sm:$0xff]  ;;  %v796_v41 = vld [vmem:[#allocation7 + $0xf0] sm:$0xff]  ;;  %p5687_p8 = pneg %p5686_p6 }
  0x67   : > { %4476 = vmatpush1.bf16.msra.mxu0 %v5974_v25  ;;  %4414 = vmatprep.subr.bf16.mxu1 %v4413_v26  ;;  %v801_v42 = vld [vmem:[#allocation7 + $0x118] sm:$0xff]  ;;  %v5982_v43 = vpack.c.bf16 %v962_v40, %v957_v37  ;;  %v956_v44 = vld [vmem:[#allocation7 + $0x5f0] sm:$0xff]  ;;  %v807_v46 = vld [vmem:[#allocation7 + $0x148] sm:$0xff] }
  0x68   : > { %4478 = vmatprep.subr.bf16.mxu0 %v5976_v30  ;;  %v961_v45 = vld [vmem:[#allocation7 + $0x618] sm:$0xff]  ;;  %v812_v47 = vld [vmem:[#allocation7 + $0x170] sm:$0xff]  ;;  %v967_v48 = vld [vmem:[#allocation7 + $0x648] sm:$0xff]  ;;  %v4419_v50 = vpack.c.bf16 %v801_v42, %v796_v41  ;;  %p5694_p5 = pnand %p5693_p0, %p5687_p8 }
  0x69   : > { %v972_v49 = vld [vmem:[#allocation7 + $0x670] sm:$0xff]  ;;  %v5985_v51 = vpack.c.bf16 %v961_v45, %v956_v44  ;;  %v4421_v52 = vpack.c.bf16 %v812_v47, %v807_v46  ;;  %v806_v53 = vld [vmem:[#allocation7 + $0x140] sm:$0xff]  ;;  %v811_v54 = vld [vmem:[#allocation7 + $0x168] sm:$0xff] }
  0x6a   : > { %4416 = vmatpush1.bf16.msra.mxu1 %v4415_v34  ;;  %v966_v55 = vld [vmem:[#allocation7 + $0x640] sm:$0xff]  ;;  %v5988_v56 = vpack.c.bf16 %v972_v49, %v967_v48  ;;  %v971_v57 = vld [vmem:[#allocation7 + $0x668] sm:$0xff]  ;;  %v817_v58 = vld [vmem:[#allocation7 + $0x198] sm:$0xff]  ;;  %v4423_v62 = vpack.c.bf16 %v811_v54, %v806_v53 }
  0x6b   : > { %4480 = vmatpush1.bf16.msra.mxu0 %v5979_v38  ;;  %4418 = vmatprep.subr.bf16.mxu1 %v4417_v39  ;;  %v822_v59 = vld [vmem:[#allocation7 + $0x1c0] sm:$0xff]  ;;  %v977_v60 = vld [vmem:[#allocation7 + $0x698] sm:$0xff]  ;;  %v5991_v63 = vpack.c.bf16 %v971_v57, %v966_v55  ;;  %v816_v1 = vld [vmem:[#allocation7 + $0x190] sm:$0xff] }
  0x6c   : > { %4482 = vmatprep.subr.bf16.mxu0 %v5982_v43  ;;  %v982_v61 = vld [vmem:[#allocation7 + $0x6c0] sm:$0xff]  ;;  %v4425_v0 = vpack.c.bf16 %v822_v59, %v817_v58  ;;  %v821_v2 = vld [vmem:[#allocation7 + $0x1b8] sm:$0xff]  ;;  %v976_v3 = vld [vmem:[#allocation7 + $0x690] sm:$0xff] }
  0x6d   : > { %v5994_v4 = vpack.c.bf16 %v982_v61, %v977_v60  ;;  %v981_v5 = vld [vmem:[#allocation7 + $0x6b8] sm:$0xff]  ;;  %v827_v6 = vld [vmem:[#allocation7 + $0x1e8] sm:$0xff]  ;;  %v832_v8 = vld [vmem:[#allocation7 + $0x210] sm:$0xff]  ;;  %v4427_v11 = vpack.c.bf16 %v821_v2, %v816_v1 }
  0x6e   : > { %4420 = vmatpush1.bf16.msra.mxu1 %v4419_v50  ;;  %v987_v9 = vld [vmem:[#allocation7 + $0x6e8] sm:$0xff]  ;;  %v992_v10 = vld [vmem:[#allocation7 + $0x710] sm:$0xff]  ;;  %v5997_v13 = vpack.c.bf16 %v981_v5, %v976_v3  ;;  %v4429_v14 = vpack.c.bf16 %v832_v8, %v827_v6  ;;  %v826_v15 = vld [vmem:[#allocation7 + $0x1e0] sm:$0xff] }
  0x6f   : > { %4484 = vmatpush1.bf16.msra.mxu0 %v5985_v51  ;;  %4422 = vmatprep.subr.bf16.mxu1 %v4421_v52  ;;  %v831_v16 = vld [vmem:[#allocation7 + $0x208] sm:$0xff]  ;;  %v986_v18 = vld [vmem:[#allocation7 + $0x6e0] sm:$0xff]  ;;  %v6000_v19 = vpack.c.bf16 %v992_v10, %v987_v9  ;;  %v837_v21 = vld [vmem:[#allocation7 + $0x238] sm:$0xff] }
  0x70   : > { %4486 = vmatprep.subr.bf16.mxu0 %v5988_v56  ;;  %v991_v20 = vld [vmem:[#allocation7 + $0x708] sm:$0xff]  ;;  %v842_v22 = vld [vmem:[#allocation7 + $0x260] sm:$0xff]  ;;  %v997_v23 = vld [vmem:[#allocation7 + $0x738] sm:$0xff]  ;;  %v4431_v26 = vpack.c.bf16 %v831_v16, %v826_v15 }
  0x71   : > { %v1002_v24 = vld [vmem:[#allocation7 + $0x760] sm:$0xff]  ;;  %v6003_v27 = vpack.c.bf16 %v991_v20, %v986_v18  ;;  %v4433_v28 = vpack.c.bf16 %v842_v22, %v837_v21  ;;  %v836_v29 = vld [vmem:[#allocation7 + $0x230] sm:$0xff]  ;;  %v841_v31 = vld [vmem:[#allocation7 + $0x258] sm:$0xff] }
  0x72   : > { %4424 = vmatpush1.bf16.msra.mxu1 %v4423_v62  ;;  %v996_v32 = vld [vmem:[#allocation7 + $0x730] sm:$0xff]  ;;  %v6006_v33 = vpack.c.bf16 %v1002_v24, %v997_v23  ;;  %v1001_v34 = vld [vmem:[#allocation7 + $0x758] sm:$0xff]  ;;  %v847_v35 = vld [vmem:[#allocation7 + $0x288] sm:$0xff]  ;;  %v4435_v40 = vpack.c.bf16 %v841_v31, %v836_v29 }
  0x73   : > { %4488 = vmatpush1.bf16.msra.mxu0 %v5991_v63  ;;  %4426 = vmatprep.subr.bf16.mxu1 %v4425_v0  ;;  %v852_v36 = vld [vmem:[#allocation7 + $0x2b0] sm:$0xff]  ;;  %v1007_v37 = vld [vmem:[#allocation7 + $0x788] sm:$0xff]  ;;  %v6009_v41 = vpack.c.bf16 %v1001_v34, %v996_v32  ;;  %v846_v44 = vld [vmem:[#allocation7 + $0x280] sm:$0xff] }
  0x74   : > { %4490 = vmatprep.subr.bf16.mxu0 %v5994_v4  ;;  %v1012_v39 = vld [vmem:[#allocation7 + $0x7b0] sm:$0xff]  ;;  %v4437_v42 = vpack.c.bf16 %v852_v36, %v847_v35  ;;  %v851_v45 = vld [vmem:[#allocation7 + $0x2a8] sm:$0xff]  ;;  %v1006_v46 = vld [vmem:[#allocation7 + $0x780] sm:$0xff] }
  0x75   : > { %v6012_v47 = vpack.c.bf16 %v1012_v39, %v1007_v37  ;;  %v1011_v48 = vld [vmem:[#allocation7 + $0x7a8] sm:$0xff]  ;;  %v857_v49 = vld [vmem:[#allocation7 + $0x2d8] sm:$0xff]  ;;  %v862_v50 = vld [vmem:[#allocation7 + $0x300] sm:$0xff]  ;;  %v4439_v54 = vpack.c.bf16 %v851_v45, %v846_v44 }
  0x76   : > { %4428 = vmatpush1.bf16.msra.mxu1 %v4427_v11  ;;  %v1017_v52 = vld [vmem:[#allocation7 + $0x7d8] sm:$0xff]  ;;  %v1022_v53 = vld [vmem:[#allocation7 + $0x800] sm:$0xff]  ;;  %v6015_v55 = vpack.c.bf16 %v1011_v48, %v1006_v46  ;;  %v4441_v57 = vpack.c.bf16 %v862_v50, %v857_v49  ;;  %v856_v58 = vld [vmem:[#allocation7 + $0x2d0] sm:$0xff] }
  0x77   : > { %4492 = vmatpush1.bf16.msra.mxu0 %v5997_v13  ;;  %4430 = vmatprep.subr.bf16.mxu1 %v4429_v14  ;;  %v861_v59 = vld [vmem:[#allocation7 + $0x2f8] sm:$0xff]  ;;  %v1016_v60 = vld [vmem:[#allocation7 + $0x7d0] sm:$0xff]  ;;  %v6018_v61 = vpack.c.bf16 %v1022_v53, %v1017_v52  ;;  %v867_v0 = vld [vmem:[#allocation7 + $0x328] sm:$0xff] }
  0x78   : > { %4494 = vmatprep.subr.bf16.mxu0 %v6000_v19  ;;  %v1021_v62 = vld [vmem:[#allocation7 + $0x7f8] sm:$0xff]  ;;  %v872_v1 = vld [vmem:[#allocation7 + $0x350] sm:$0xff]  ;;  %v1027_v2 = vld [vmem:[#allocation7 + $0x828] sm:$0xff]  ;;  %v4443_v5 = vpack.c.bf16 %v861_v59, %v856_v58 }
  0x79   : > { %v1032_v3 = vld [vmem:[#allocation7 + $0x850] sm:$0xff]  ;;  %v6021_v6 = vpack.c.bf16 %v1021_v62, %v1016_v60  ;;  %v4445_v8 = vpack.c.bf16 %v872_v1, %v867_v0  ;;  %v866_v9 = vld [vmem:[#allocation7 + $0x320] sm:$0xff]  ;;  %v871_v10 = vld [vmem:[#allocation7 + $0x348] sm:$0xff] }
  0x7a   : > { %4432 = vmatpush1.bf16.msra.mxu1 %v4431_v26  ;;  %v1026_v11 = vld [vmem:[#allocation7 + $0x820] sm:$0xff]  ;;  %v6024_v14 = vpack.c.bf16 %v1032_v3, %v1027_v2  ;;  %v1031_v15 = vld [vmem:[#allocation7 + $0x848] sm:$0xff]  ;;  %v877_v16 = vld [vmem:[#allocation7 + $0x378] sm:$0xff]  ;;  %v4447_v22 = vpack.c.bf16 %v871_v10, %v866_v9 }
  0x7b   : > { %4496 = vmatpush1.bf16.msra.mxu0 %v6003_v27  ;;  %4434 = vmatprep.subr.bf16.mxu1 %v4433_v28  ;;  %v882_v18 = vld [vmem:[#allocation7 + $0x3a0] sm:$0xff]  ;;  %v1037_v20 = vld [vmem:[#allocation7 + $0x878] sm:$0xff]  ;;  %v876_v23 = vld [vmem:[#allocation7 + $0x370] sm:$0xff]  ;;  %v6027_v24 = vpack.c.bf16 %v1031_v15, %v1026_v11 }
  0x7c   : > { %4498 = vmatprep.subr.bf16.mxu0 %v6006_v33  ;;  %v1042_v21 = vld [vmem:[#allocation7 + $0x8a0] sm:$0xff]  ;;  %v4449_v26 = vpack.c.bf16 %v882_v18, %v877_v16  ;;  %v881_v28 = vld [vmem:[#allocation7 + $0x398] sm:$0xff]  ;;  %v1036_v29 = vld [vmem:[#allocation7 + $0x870] sm:$0xff] }
  0x7d   : > { %v1041_v31 = vld [vmem:[#allocation7 + $0x898] sm:$0xff]  ;;  %v6030_v32 = vpack.c.bf16 %v1042_v21, %v1037_v20  ;;  %v887_v34 = vld [vmem:[#allocation7 + $0x3c8] sm:$0xff]  ;;  %v892_v35 = vld [vmem:[#allocation7 + $0x3f0] sm:$0xff] }
  0x7e   : > { %4436 = vmatpush1.bf16.msra.mxu1 %v4435_v40  ;;  %v575_v36 = vld [vmem:[%s5955_s30 + $0x8] sm:$0xff]  ;;  %v1052_v39 = vld [vmem:[#allocation7 + $0x8f0] sm:$0xff]  ;;  %v577_v40 = vld [vmem:[%s5955_s30 + $0x18] sm:$0xff]  ;;  %v6035_v44 = vpack.c.bf16 %v1041_v31, %v1036_v29  ;;  %v4453_v45 = vpack.c.bf16 %v892_v35, %v887_v34 }
  0x7f   : > { %4500 = vmatpush1.bf16.msra.mxu0 %v6009_v41  ;;  %4438 = vmatprep.subr.bf16.mxu1 %v4437_v42  ;;  %v1047_v37 = vld [vmem:[#allocation7 + $0x8c8] sm:$0xff]  ;;  %v4451_v42 = vpack.c.bf16 %v881_v28, %v876_v23  ;;  %v886_v46 = vld [vmem:[#allocation7 + $0x3c0] sm:$0xff]  ;;  %v897_v53 = vld [vmem:[#allocation7 + $0x418] sm:$0xff] }
  0x80   : > { %4502 = vmatprep.subr.bf16.mxu0 %v6012_v47  ;;  %1310 = vmatprep.mubr.f32.mxu1 %v575_v36  ;;  %v891_v48 = vld [vmem:[#allocation7 + $0x3e8] sm:$0xff]  ;;  %v1046_v49 = vld [vmem:[#allocation7 + $0x8c0] sm:$0xff]  ;;  %v6038_v50 = vpack.c.bf16 %v1052_v39, %v1047_v37  ;;  %v896_v0 = vld [vmem:[#allocation7 + $0x410] sm:$0xff] }
  0x81   : > { %1567 = vmatprep.mubr.f32.mxu0 %v577_v40  ;;  %v1051_v52 = vld [vmem:[#allocation7 + $0x8e8] sm:$0xff]  ;;  %v1062_v58 = vld [vmem:[#allocation7 + $0x940] sm:$0xff]  ;;  %v4455_v59 = vpack.c.bf16 %v891_v48, %v886_v46  ;;  %v901_v1 = vld [vmem:[#allocation7 + $0x438] sm:$0xff] }
  0x82   : > { %4440 = vmatpush1.bf16.msra.mxu1 %v4439_v54  ;;  %v902_v54 = vld [vmem:[#allocation7 + $0x440] sm:$0xff]  ;;  %v6041_v60 = vpack.c.bf16 %v1051_v52, %v1046_v49  ;;  %v1056_v2 = vld [vmem:[#allocation7 + $0x910] sm:$0xff]  ;;  %v1067_v10 = vld [vmem:[#allocation7 + $0x968] sm:$0xff]  ;;  %v4459_v15 = vpack.c.bf16 %v901_v1, %v896_v0 }
  0x83   : > { %4504 = vmatpush1.bf16.msra.mxu0 %v6015_v55  ;;  %4442 = vmatprep.subr.bf16.mxu1 %v4441_v57  ;;  %v1057_v57 = vld [vmem:[#allocation7 + $0x918] sm:$0xff]  ;;  %v4457_v62 = vpack.c.bf16 %v902_v54, %v897_v53  ;;  %v912_v9 = vld [vmem:[#allocation7 + $0x490] sm:$0xff]  ;;  %v906_v20 = vld [vmem:[#allocation7 + $0x460] sm:$0xff] }
  0x84   : > { %4506 = vmatprep.subr.bf16.mxu0 %v6018_v61  ;;  %v6044_v3 = vpack.c.bf16 %v1062_v58, %v1057_v57  ;;  %v1072_v11 = vld [vmem:[#allocation7 + $0x990] sm:$0xff]  ;;  %v911_v21 = vld [vmem:[#allocation7 + $0x488] sm:$0xff]  ;;  %v917_v28 = vld [vmem:[#allocation7 + $0x4b8] sm:$0xff] }
  0x85   : > { %v6050_v23 = vpack.c.bf16 %v1072_v11, %v1067_v10  ;;  %v922_v29 = vld [vmem:[#allocation7 + $0x4e0] sm:$0xff]  ;;  %v1077_v31 = vld [vmem:[#allocation7 + $0x9b8] sm:$0xff]  ;;  %v4463_v35 = vpack.c.bf16 %v911_v21, %v906_v20  ;;  %v916_v39 = vld [vmem:[#allocation7 + $0x4b0] sm:$0xff] }
  0x86   : > { %4444 = vmatpush1.bf16.msra.mxu1 %v4443_v5  ;;  %v1061_v5 = vld [vmem:[#allocation7 + $0x938] sm:$0xff]  ;;  %v1082_v34 = vld [vmem:[#allocation7 + $0x9e0] sm:$0xff]  ;;  %v4465_v37 = vpack.c.bf16 %v922_v29, %v917_v28  ;;  %v1087_v48 = vld [vmem:[#allocation7 + $0xa08] sm:$0xff] }
  0x87   : > { %4508 = vmatpush1.bf16.msra.mxu0 %v6021_v6  ;;  %4446 = vmatprep.subr.bf16.mxu1 %v4445_v8  ;;  %v907_v8 = vld [vmem:[#allocation7 + $0x468] sm:$0xff]  ;;  %v6047_v16 = vpack.c.bf16 %v1061_v5, %v1056_v2  ;;  %v921_v40 = vld [vmem:[#allocation7 + $0x4d8] sm:$0xff]  ;;  %v1092_v49 = vld [vmem:[#allocation7 + $0xa30] sm:$0xff] }
  0x88   : > { %4510 = vmatprep.subr.bf16.mxu0 %v6024_v14  ;;  %v4461_v18 = vpack.c.bf16 %v912_v9, %v907_v8  ;;  %v1081_v46 = vld [vmem:[#allocation7 + $0x9d8] sm:$0xff]  ;;  %v4467_v52 = vpack.c.bf16 %v921_v40, %v916_v39  ;;  %v4533_v54 = vpack.c.bf16 %v1092_v49, %v1087_v48  ;;  %v1086_v57 = vld [vmem:[#allocation7 + $0xa00] sm:$0xff]  ;;  %v1091_v58 = vld [vmem:[#allocation7 + $0xa28] sm:$0xff] }
  0x89   : > { %v574_v0 = vld [vmem:[%s5955_s30] sm:$0xff]  ;;  %v576_v1 = vld [vmem:[%s5955_s30 + $0x10] sm:$0xff]  ;;  %v4535_v2 = vpack.c.bf16 %v1091_v58, %v1086_v57  ;;  %v581_v5 = vld [vmem:[%s5955_s30 + $0x38] sm:$0xff] }
  0x8a   : > { %4448 = vmatpush1.bf16.msra.mxu1 %v4447_v22  ;;  %v1066_v22 = vld [vmem:[#allocation7 + $0x960] sm:$0xff]  ;;  %v1096_v9 = vld [vmem:[#allocation7 + $0xa50] sm:$0xff]  ;;  %v1101_v10 = vld [vmem:[#allocation7 + $0xa78] sm:$0xff] }
  0x8b   : > { %4512 = vmatpush1.bf16.msra.mxu0 %v6027_v24  ;;  %4450 = vmatprep.subr.bf16.mxu1 %v4449_v26  ;;  %v1071_v26 = vld [vmem:[#allocation7 + $0x988] sm:$0xff]  ;;  %v580_v20 = vld [vmem:[%s5955_s30 + $0x30] sm:$0xff]  ;;  %v4539_v21 = vpack.c.bf16 %v1101_v10, %v1096_v9  ;;  %v1106_v29 = vld [vmem:[#allocation7 + $0xaa0] sm:$0xff] }
  0x8c   : > { %4514 = vmatprep.subr.bf16.mxu0 %v6030_v32  ;;  %v6053_v36 = vpack.c.bf16 %v1071_v26, %v1066_v22  ;;  %v583_v11 = vld [vmem:[%s5955_s30 + $0x48] sm:$0xff]  ;;  %v589_v26 = vld [vmem:[%s5955_s30 + $0x78] sm:$0xff]  ;;  %v594_v57 = vld [vmem:[%s5955_s30 + $0xa0] sm:$0xff] }
  0x8d   : > { %v587_v22 = vld [vmem:[%s5955_s30 + $0x68] sm:$0xff]  ;;  %v593_v40 = vld [vmem:[%s5955_s30 + $0x98] sm:$0xff] }
  0x8e   : > { %4452 = vmatpush1.bf16.msra.mxu1 %v4451_v42  ;;  %v6056_v42 = vpack.c.bf16 %v1082_v34, %v1077_v31  ;;  %v1111_v31 = vld [vmem:[#allocation7 + $0xac8] sm:$0xff]  ;;  %v1122_v34 = vld [vmem:[#allocation7 + $0xb20] sm:$0xff]  ;;  %v1121_v48 = vld [vmem:[#allocation7 + $0xb18] sm:$0xff] }
  0x8f   : > { %4516 = vmatpush1.bf16.msra.mxu0 %v6035_v44  ;;  %4454 = vmatprep.subr.bf16.mxu1 %v4453_v45  ;;  %v1076_v45 = vld [vmem:[#allocation7 + $0x9b0] sm:$0xff]  ;;  %v4543_v39 = vpack.c.bf16 %v1111_v31, %v1106_v29  ;;  %v1127_v49 = vld [vmem:[#allocation7 + $0xb48] sm:$0xff]  ;;  %v605_v10 = vld [vmem:[%s5955_s30 + $0xf8] sm:$0xff] }
  0x90   : > { %4518 = vmatprep.subr.bf16.mxu0 %v6038_v50  ;;  %v6059_v53 = vpack.c.bf16 %v1081_v46, %v1076_v45  ;;  %v595_v45 = vld [vmem:[%s5955_s30 + $0xa8] sm:$0xff] }
  0x91   : > { %v1151_v31 = vld [vmem:[#allocation7 + $0xc08] sm:$0xff] }
  0x92   : > { %4456 = vmatpush1.bf16.msra.mxu1 %v4455_v59  ;;  %v1097_v59 = vld [vmem:[#allocation7 + $0xa58] sm:$0xff] }
  0x93   : > { %4520 = vmatpush1.bf16.msra.mxu0 %v6041_v60  ;;  %4458 = vmatprep.subr.bf16.mxu1 %v4457_v62  ;;  %v1102_v62 = vld [vmem:[#allocation7 + $0xa80] sm:$0xff] }
  0x94   : > { %4522 = vmatprep.subr.bf16.mxu0 %v6044_v3  ;;  %v4537_v8 = vpack.c.bf16 %v1102_v62, %v1097_v59  ;;  %v601_v59 = vld [vmem:[%s5955_s30 + $0xd8] sm:$0xff] }
  0x96   : > { %4460 = vmatpush1.bf16.msra.mxu1 %v4459_v15  ;;  %v1107_v15 = vld [vmem:[#allocation7 + $0xaa8] sm:$0xff] }
  0x97   : > { %4524 = vmatpush1.bf16.msra.mxu0 %v6047_v16  ;;  %4462 = vmatprep.subr.bf16.mxu1 %v4461_v18  ;;  %v1112_v18 = vld [vmem:[#allocation7 + $0xad0] sm:$0xff] }
  0x98   : > { %4526 = vmatprep.subr.bf16.mxu0 %v6050_v23  ;;  %v4541_v28 = vpack.c.bf16 %v1112_v18, %v1107_v15  ;;  %v1136_v15 = vld [vmem:[#allocation7 + $0xb90] sm:$0xff]  ;;  %v1141_v18 = vld [vmem:[#allocation7 + $0xbb8] sm:$0xff] }
  0x9a   : > { %4464 = vmatpush1.bf16.msra.mxu1 %v4463_v35  ;;  %v586_v35 = vld [vmem:[%s5955_s30 + $0x60] sm:$0xff] }
  0x9b   : > { %4528 = vmatpush1.bf16.msra.mxu0 %v6053_v36  ;;  %4466 = vmatprep.subr.bf16.mxu1 %v4465_v37  ;;  %v588_v37 = vld [vmem:[%s5955_s30 + $0x70] sm:$0xff] }
  0x9c   : > { %4530 = vmatprep.subr.bf16.mxu0 %v6056_v42 }
  0x9e   : > { %4468 = vmatpush1.bf16.msra.mxu1 %v4467_v52  ;;  %v1132_v52 = vld [vmem:[#allocation7 + $0xb70] sm:$0xff] }
  0x9f   : > { %4532 = vmatpush1.bf16.msra.mxu0 %v6059_v53  ;;  %4933 = vmatprep.subr.bf16.mxu1 %v5965_v7  ;;  %v582_v7 = vld [vmem:[%s5955_s30 + $0x40] sm:$0xff]  ;;  %v4549_v62 = vpack.c.bf16 %v1132_v52, %v1127_v49 }
  0xa0   : > { %4534 = vmatprep.subr.bf16.mxu0 %v4533_v54  ;;  %v592_v54 = vld [vmem:[%s5955_s30 + $0x90] sm:$0xff]  ;;  %v618_v49 = vld [vmem:[%s5955_s30 + $0x160] sm:$0xff] }
  0xa1   : > { %1311 = vmatmul.mubr.f32.vlgmr.msra.gmra.mrb[0].mxu1 %v574_v0  ;;  %v1131_v0 = vld [vmem:[#allocation7 + $0xb68] sm:$0xff] }
  0xa2   : > { %1568 = vmatmul.mubr.f32.vlgmr.msra.gmra.mrb[0].mxu0 %v576_v1  ;;  %4949 = vmatpush1.bf16.msra.mxu1 %v5967_v12  ;;  %v1117_v12 = vld [vmem:[#allocation7 + $0xaf8] sm:$0xff] }
  0xa3   : > { %4536 = vmatpush1.bf16.msra.mxu0 %v4535_v2  ;;  %1316 = vmatprep.mubr.f32.mxu1 %v581_v5  ;;  %v4545_v46 = vpack.c.bf16 %v1122_v34, %v1117_v12  ;;  %v1137_v1 = vld [vmem:[#allocation7 + $0xb98] sm:$0xff]  ;;  %v1142_v2 = vld [vmem:[#allocation7 + $0xbc0] sm:$0xff] }
  0xa4   : > { %1573 = vmatprep.mubr.f32.mxu0 %v583_v11  ;;  %4538 = vmatprep.subr.bf16.mxu0 %v4537_v8  ;;  %v598_v5 = vld [vmem:[%s5955_s30 + $0xc0] sm:$0xff]  ;;  %v600_v8 = vld [vmem:[%s5955_s30 + $0xd0] sm:$0xff]  ;;  %v4553_v11 = vpack.c.bf16 %v1142_v2, %v1137_v1  ;;  %v629_v1 = vld [vmem:[%s5955_s30 + $0x1b8] sm:$0xff] }
  0xa5   : > { %1317 = vmatmul.mubr.f32.gmra.mrb[2].mxu1 %v580_v20  ;;  %4934 = vmatprep.subr.bf16.mxu1 %v5970_v17  ;;  %v1116_v17 = vld [vmem:[#allocation7 + $0xaf0] sm:$0xff]  ;;  %v1162_v12 = vld [vmem:[#allocation7 + $0xc60] sm:$0xff]  ;;  %v631_v2 = vld [vmem:[%s5955_s30 + $0x1c8] sm:$0xff] }
  0xa6   : > { %1574 = vmatmul.mubr.f32.gmra.mrb[2].mxu0 %v582_v7  ;;  %1322 = vmatprep.mubr.f32.mxu1 %v587_v22  ;;  %v4547_v58 = vpack.c.bf16 %v1121_v48, %v1116_v17  ;;  %v1152_v20 = vld [vmem:[#allocation7 + $0xc10] sm:$0xff]  ;;  %v4555_v22 = vpack.c.bf16 %v1141_v18, %v1136_v15  ;;  %v610_v34 = vld [vmem:[%s5955_s30 + $0x120] sm:$0xff]  ;;  %v635_v15 = vld [vmem:[%s5955_s30 + $0x1e8] sm:$0xff] }
  0xa7   : > { %4540 = vmatpush1.bf16.msra.mxu0 %v4539_v21  ;;  %1579 = vmatprep.mubr.f32.mxu0 %v589_v26  ;;  %v604_v7 = vld [vmem:[%s5955_s30 + $0xf0] sm:$0xff]  ;;  %v606_v21 = vld [vmem:[%s5955_s30 + $0x100] sm:$0xff]  ;;  %v611_v26 = vld [vmem:[%s5955_s30 + $0x128] sm:$0xff] }
  0xa8   : > { %4542 = vmatprep.subr.bf16.mxu0 %v4541_v28  ;;  %4950 = vmatpush1.bf16.msra.mxu1 %v5974_v25  ;;  %v599_v25 = vld [vmem:[%s5955_s30 + $0xc8] sm:$0xff]  ;;  %v613_v28 = vld [vmem:[%s5955_s30 + $0x138] sm:$0xff]  ;;  %v1172_v17 = vld [vmem:[#allocation7 + $0xcb0] sm:$0xff] }
  0xa9   : > { %1323 = vmatmul.mubr.f32.gmra.mrb[4].mxu1 %v586_v35  ;;  %4935 = vmatprep.subr.bf16.mxu1 %v5976_v30  ;;  %v1126_v30 = vld [vmem:[#allocation7 + $0xb40] sm:$0xff]  ;;  %v612_v35 = vld [vmem:[%s5955_s30 + $0x130] sm:$0xff]  ;;  %v637_v18 = vld [vmem:[%s5955_s30 + $0x1f8] sm:$0xff] }
  0xaa   : > { %1580 = vmatmul.mubr.f32.gmra.mrb[4].mxu0 %v588_v37  ;;  %1328 = vmatprep.mubr.f32.mxu1 %v593_v40  ;;  %v4551_v9 = vpack.c.bf16 %v1131_v0, %v1126_v30  ;;  %v619_v40 = vld [vmem:[%s5955_s30 + $0x168] sm:$0xff]  ;;  %v616_v48 = vld [vmem:[%s5955_s30 + $0x150] sm:$0xff] }
  0xab   : > { %4544 = vmatpush1.bf16.msra.mxu0 %v4543_v39  ;;  %1585 = vmatprep.mubr.f32.mxu0 %v595_v45  ;;  %v617_v39 = vld [vmem:[%s5955_s30 + $0x158] sm:$0xff]  ;;  %v624_v30 = vld [vmem:[%s5955_s30 + $0x190] sm:$0xff] }
  0xac   : > { %4546 = vmatprep.subr.bf16.mxu0 %v4545_v46  ;;  %4951 = vmatpush1.bf16.msra.mxu1 %v5979_v38  ;;  %v607_v38 = vld [vmem:[%s5955_s30 + $0x108] sm:$0xff]  ;;  %v1161_v46 = vld [vmem:[#allocation7 + $0xc58] sm:$0xff] }
  0xad   : > { %1329 = vmatmul.mubr.f32.gmra.mrb[6].mxu1 %v592_v54  ;;  %4936 = vmatprep.subr.bf16.mxu1 %v5982_v43  ;;  %v1147_v43 = vld [vmem:[#allocation7 + $0xbe8] sm:$0xff] }
  0xae   : > { %1586 = vmatmul.mubr.f32.gmra.mrb[6].mxu0 %v594_v57  ;;  %1334 = vmatprep.mubr.f32.mxu1 %v599_v25  ;;  %v4557_v29 = vpack.c.bf16 %v1152_v20, %v1147_v43  ;;  %v623_v54 = vld [vmem:[%s5955_s30 + $0x188] sm:$0xff]  ;;  %v625_v57 = vld [vmem:[%s5955_s30 + $0x198] sm:$0xff] }
  0xaf   : > { %4548 = vmatpush1.bf16.msra.mxu0 %v4547_v58  ;;  %1591 = vmatprep.mubr.f32.mxu0 %v601_v59  ;;  %v1171_v25 = vld [vmem:[#allocation7 + $0xca8] sm:$0xff]  ;;  %v1182_v59 = vld [vmem:[#allocation7 + $0xd00] sm:$0xff] }
  0xb0   : > { %4550 = vmatprep.subr.bf16.mxu0 %v4549_v62  ;;  %4952 = vmatpush1.bf16.msra.mxu1 %v5985_v51  ;;  %v1146_v51 = vld [vmem:[#allocation7 + $0xbe0] sm:$0xff]  ;;  %v1191_v20 = vld [vmem:[#allocation7 + $0xd48] sm:$0xff] }
  0xb1   : > { %1335 = vmatmul.mubr.f32.gmra.mrb[8].mxu1 %v598_v5  ;;  %4937 = vmatprep.subr.bf16.mxu1 %v5988_v56  ;;  %v1157_v56 = vld [vmem:[#allocation7 + $0xc38] sm:$0xff]  ;;  %v4559_v37 = vpack.c.bf16 %v1151_v31, %v1146_v51  ;;  %v622_v62 = vld [vmem:[%s5955_s30 + $0x180] sm:$0xff] }
  0xb2   : > { %1592 = vmatmul.mubr.f32.gmra.mrb[8].mxu0 %v600_v8  ;;  %1340 = vmatprep.mubr.f32.mxu1 %v605_v10  ;;  %v4561_v45 = vpack.c.bf16 %v1162_v12, %v1157_v56  ;;  %v1181_v8 = vld [vmem:[#allocation7 + $0xcf8] sm:$0xff]  ;;  %v628_v10 = vld [vmem:[%s5955_s30 + $0x1b0] sm:$0xff] }
  0xb3   : > { %4552 = vmatpush1.bf16.msra.mxu0 %v4551_v9  ;;  %1597 = vmatprep.mubr.f32.mxu0 %v607_v38  ;;  %v1192_v9 = vld [vmem:[#allocation7 + $0xd50] sm:$0xff]  ;;  %v630_v38 = vld [vmem:[%s5955_s30 + $0x1c0] sm:$0xff]  ;;  %v1201_v31 = vld [vmem:[#allocation7 + $0xd98] sm:$0xff] }
  0xb4   : > { %4554 = vmatprep.subr.bf16.mxu0 %v4553_v11  ;;  %4953 = vmatpush1.bf16.msra.mxu1 %v5991_v63  ;;  %v1156_v63 = vld [vmem:[#allocation7 + $0xc30] sm:$0xff] }
  0xb5   : > { %1341 = vmatmul.mubr.f32.gmra.mrb[10].mxu1 %v604_v7  ;;  %4938 = vmatprep.subr.bf16.mxu1 %v5994_v4  ;;  %v1167_v4 = vld [vmem:[#allocation7 + $0xc88] sm:$0xff]  ;;  %v4563_v52 = vpack.c.bf16 %v1161_v46, %v1156_v63  ;;  %v1202_v7 = vld [vmem:[#allocation7 + $0xda0] sm:$0xff]  ;;  %v1212_v56 = vld [vmem:[#allocation7 + $0xdf0] sm:$0xff] }
  0xb6   : > { %1598 = vmatmul.mubr.f32.gmra.mrb[10].mxu0 %v606_v21  ;;  %1346 = vmatprep.mubr.f32.mxu1 %v611_v26  ;;  %v4565_v58 = vpack.c.bf16 %v1172_v17, %v1167_v4  ;;  %v634_v21 = vld [vmem:[%s5955_s30 + $0x1e0] sm:$0xff]  ;;  %v640_v12 = vld [vmem:[%s5955_s30 + $0x210] sm:$0xff] }
  0xb7   : > { %4556 = vmatpush1.bf16.msra.mxu0 %v4555_v22  ;;  %1603 = vmatprep.mubr.f32.mxu0 %v613_v28  ;;  %v636_v22 = vld [vmem:[%s5955_s30 + $0x1f0] sm:$0xff]  ;;  %v641_v28 = vld [vmem:[%s5955_s30 + $0x218] sm:$0xff]  ;;  %v1222_v63 = vld [vmem:[#allocation7 + $0xe40] sm:$0xff] }
  0xb8   : > { %4558 = vmatprep.subr.bf16.mxu0 %v4557_v29  ;;  %4954 = vmatpush1.bf16.msra.mxu1 %v5997_v13  ;;  %v1166_v13 = vld [vmem:[#allocation7 + $0xc80] sm:$0xff]  ;;  %v643_v29 = vld [vmem:[%s5955_s30 + $0x228] sm:$0xff]  ;;  %v648_v4 = vld [vmem:[%s5955_s30 + $0x250] sm:$0xff] }
  0xb9   : > { %1347 = vmatmul.mubr.f32.gmra.mrb[12].mxu1 %v610_v34  ;;  %4939 = vmatprep.subr.bf16.mxu1 %v6000_v19  ;;  %v1177_v19 = vld [vmem:[#allocation7 + $0xcd8] sm:$0xff]  ;;  %v4567_v0 = vpack.c.bf16 %v1171_v25, %v1166_v13  ;;  %v642_v34 = vld [vmem:[%s5955_s30 + $0x220] sm:$0xff] }
  0xba   : > { %1604 = vmatmul.mubr.f32.gmra.mrb[12].mxu0 %v612_v35  ;;  %1352 = vmatprep.mubr.f32.mxu1 %v617_v39  ;;  %v4569_v5 = vpack.c.bf16 %v1182_v59, %v1177_v19  ;;  %v649_v39 = vld [vmem:[%s5955_s30 + $0x258] sm:$0xff]  ;;  %v646_v46 = vld [vmem:[%s5955_s30 + $0x240] sm:$0xff]  ;;  %v659_v19 = vld [vmem:[%s5955_s30 + $0x2a8] sm:$0xff] }
  0xbb   : > { %4560 = vmatpush1.bf16.msra.mxu0 %v4559_v37  ;;  %1609 = vmatprep.mubr.f32.mxu0 %v619_v40  ;;  %v647_v37 = vld [vmem:[%s5955_s30 + $0x248] sm:$0xff]  ;;  %v654_v13 = vld [vmem:[%s5955_s30 + $0x280] sm:$0xff]  ;;  %v661_v59 = vld [vmem:[%s5955_s30 + $0x2b8] sm:$0xff] }
  0xbc   : > { %4562 = vmatprep.subr.bf16.mxu0 %v4561_v45  ;;  %4955 = vmatpush1.bf16.msra.mxu1 %v6003_v27  ;;  %v1176_v27 = vld [vmem:[#allocation7 + $0xcd0] sm:$0xff]  ;;  %v1211_v45 = vld [vmem:[#allocation7 + $0xde8] sm:$0xff] }
  0xbd   : > { %1353 = vmatmul.mubr.f32.gmra.mrb[14].mxu1 %v616_v48  ;;  %4940 = vmatprep.subr.bf16.mxu1 %v6006_v33  ;;  %v1187_v33 = vld [vmem:[#allocation7 + $0xd28] sm:$0xff]  ;;  %v4571_v11 = vpack.c.bf16 %v1181_v8, %v1176_v27  ;;  %v653_v48 = vld [vmem:[%s5955_s30 + $0x278] sm:$0xff] }
  0xbe   : > { %1610 = vmatmul.mubr.f32.gmra.mrb[14].mxu0 %v618_v49  ;;  %1358 = vmatprep.mubr.f32.mxu1 %v623_v54  ;;  %v4573_v43 = vpack.c.bf16 %v1192_v9, %v1187_v33  ;;  %v655_v49 = vld [vmem:[%s5955_s30 + $0x288] sm:$0xff]  ;;  %v1221_v54 = vld [vmem:[#allocation7 + $0xe38] sm:$0xff] }
  0xbf   : > { %4564 = vmatpush1.bf16.msra.mxu0 %v4563_v52  ;;  %1615 = vmatprep.mubr.f32.mxu0 %v625_v57  ;;  %v1232_v57 = vld [vmem:[#allocation7 + $0xe90] sm:$0xff]  ;;  %v665_v27 = vld [vmem:[%s5955_s30 + $0x2d8] sm:$0xff]  ;;  %v667_v8 = vld [vmem:[%s5955_s30 + $0x2e8] sm:$0xff] }
  0xc0   : > { %4566 = vmatprep.subr.bf16.mxu0 %v4565_v58  ;;  %4956 = vmatpush1.bf16.msra.mxu1 %v6009_v41  ;;  %v1186_v41 = vld [vmem:[#allocation7 + $0xd20] sm:$0xff]  ;;  %v652_v58 = vld [vmem:[%s5955_s30 + $0x270] sm:$0xff]  ;;  %v1241_v9 = vld [vmem:[#allocation7 + $0xed8] sm:$0xff] }
  0xc1   : > { %1359 = vmatmul.mubr.f32.gmra.mrb[16].mxu1 %v622_v62  ;;  %4941 = vmatprep.subr.bf16.mxu1 %v6012_v47  ;;  %v1197_v47 = vld [vmem:[#allocation7 + $0xd78] sm:$0xff]  ;;  %v4575_v26 = vpack.c.bf16 %v1191_v20, %v1186_v41  ;;  %v770_v41 = vld [vmem:[#allocation7 + $0x20] sm:$0xff] }
  0xc2   : > { %1616 = vmatmul.mubr.f32.gmra.mrb[16].mxu0 %v624_v30  ;;  %1364 = vmatprep.mubr.f32.mxu1 %v629_v1  ;;  %v4577_v51 = vpack.c.bf16 %v1202_v7, %v1197_v47  ;;  %v1231_v30 = vld [vmem:[#allocation7 + $0xe88] sm:$0xff]  ;;  %v658_v1 = vld [vmem:[%s5955_s30 + $0x2a0] sm:$0xff] }
  0xc3   : > { %4568 = vmatpush1.bf16.msra.mxu0 %v4567_v0  ;;  %1621 = vmatprep.mubr.f32.mxu0 %v631_v2  ;;  %v1242_v0 = vld [vmem:[#allocation7 + $0xee0] sm:$0xff]  ;;  %v660_v2 = vld [vmem:[%s5955_s30 + $0x2b0] sm:$0xff] }
  0xc4   : > { %4570 = vmatprep.subr.bf16.mxu0 %v4569_v5  ;;  %4957 = vmatpush1.bf16.msra.mxu1 %v6015_v55  ;;  %v1196_v55 = vld [vmem:[#allocation7 + $0xd70] sm:$0xff]  ;;  %v670_v20 = vld [vmem:[%s5955_s30 + $0x300] sm:$0xff] }
  0xc5   : > { %1365 = vmatmul.mubr.f32.gmra.mrb[18].mxu1 %v628_v10  ;;  %4942 = vmatprep.subr.bf16.mxu1 %v6018_v61  ;;  %v1207_v61 = vld [vmem:[#allocation7 + $0xdc8] sm:$0xff]  ;;  %v4579_v35 = vpack.c.bf16 %v1201_v31, %v1196_v55  ;;  %v769_v10 = vld [vmem:[#allocation7 + $0x18] sm:$0xff]  ;;  %v578_v47 = vld [vmem:[%s5955_s30 + $0x20] sm:$0xff] }
  0xc6   : > { %1622 = vmatmul.mubr.f32.gmra.mrb[18].mxu0 %v630_v38  ;;  %1370 = vmatprep.mubr.f32.mxu1 %v635_v15  ;;  %v4581_v40 = vpack.c.bf16 %v1212_v56, %v1207_v61  ;;  %v774_v38 = vld [vmem:[#allocation7 + $0x40] sm:$0xff]  ;;  %v591_v31 = vld [vmem:[%s5955_s30 + $0x88] sm:$0xff] }
  0xc7   : > { %4572 = vmatpush1.bf16.msra.mxu0 %v4571_v11  ;;  %1627 = vmatprep.mubr.f32.mxu0 %v637_v18  ;;  %v666_v11 = vld [vmem:[%s5955_s30 + $0x2e0] sm:$0xff]  ;;  %v671_v18 = vld [vmem:[%s5955_s30 + $0x308] sm:$0xff] }
  0xc8   : > { %4574 = vmatprep.subr.bf16.mxu0 %v4573_v43  ;;  %4958 = vmatpush1.bf16.msra.mxu1 %v6021_v6  ;;  %v1206_v6 = vld [vmem:[#allocation7 + $0xdc0] sm:$0xff]  ;;  %v579_v43 = vld [vmem:[%s5955_s30 + $0x28] sm:$0xff] }
  0xc9   : > { %1371 = vmatmul.mubr.f32.gmra.mrb[20].mxu1 %v634_v21  ;;  %4943 = vmatprep.subr.bf16.mxu1 %v6024_v14  ;;  %v1217_v14 = vld [vmem:[#allocation7 + $0xe18] sm:$0xff]  ;;  %v4583_v17 = vpack.c.bf16 %v1211_v45, %v1206_v6  ;;  %v790_v61 = vld [vmem:[#allocation7 + $0xc0] sm:$0xff]  ;;  %v795_v56 = vld [vmem:[#allocation7 + $0xe8] sm:$0xff] }
  0xca   : > { %1628 = vmatmul.mubr.f32.gmra.mrb[20].mxu0 %v636_v22  ;;  %1376 = vmatprep.mubr.f32.mxu1 %v641_v28  ;;  %v4585_v52 = vpack.c.bf16 %v1222_v63, %v1217_v14  ;;  %v677_v21 = vld [vmem:[%s5955_s30 + $0x338] sm:$0xff]  ;;  %v5778_v22 = vmov 0.0|0.0   ;;  %v688_v6 = vld [vmem:[%s5955_s30 + $0x390] sm:$0xff]  ;;  %v695_v14 = vld [vmem:[%s5955_s30 + $0x3c8] sm:$0xff] }
  0xcb   : > { %4576 = vmatpush1.bf16.msra.mxu0 %v4575_v26  ;;  %1633 = vmatprep.mubr.f32.mxu0 %v643_v29  ;;  %v780_v26 = vld [vmem:[#allocation7 + $0x70] sm:$0xff]  ;;  %v785_v28 = vld [vmem:[#allocation7 + $0x98] sm:$0xff] }
  0xcc   : > { %4578 = vmatprep.subr.bf16.mxu0 %v4577_v51  ;;  %4959 = vmatpush1.bf16.msra.mxu1 %v6027_v24  ;;  %v1216_v24 = vld [vmem:[#allocation7 + $0xe10] sm:$0xff]  ;;  %v683_v51 = vld [vmem:[%s5955_s30 + $0x368] sm:$0xff]  ;;  %v4793_v55 = vpack.c.bf16 %v785_v28, %v780_v26  ;;  %v870_v26 = vld [vmem:[#allocation7 + $0x340] sm:$0xff] }
  0xcd   : > { %1377 = vmatmul.mubr.f32.gmra.mrb[22].mxu1 %v640_v12  ;;  %4944 = vmatprep.subr.bf16.mxu1 %v6030_v32  ;;  %v1227_v32 = vld [vmem:[#allocation7 + $0xe68] sm:$0xff]  ;;  %v4587_v25 = vpack.c.bf16 %v1221_v54, %v1216_v24  ;;  %v584_v29 = vld [vmem:[%s5955_s30 + $0x50] sm:$0xff]  ;;  %v590_v12 = vld [vmem:[%s5955_s30 + $0x80] sm:$0xff] }
  0xce   : > { %1634 = vmatmul.mubr.f32.gmra.mrb[22].mxu0 %v642_v34  ;;  %1382 = vmatprep.mubr.f32.mxu1 %v647_v37  ;;  %v4589_v62 = vpack.c.bf16 %v1232_v57, %v1227_v32  ;;  %v689_v34 = vld [vmem:[%s5955_s30 + $0x398] sm:$0xff]  ;;  %v596_v45 = vld [vmem:[%s5955_s30 + $0xb0] sm:$0xff]  ;;  %v875_v28 = vld [vmem:[#allocation7 + $0x368] sm:$0xff] }
  0xcf   : > { %4580 = vmatpush1.bf16.msra.mxu0 %v4579_v35  ;;  %1639 = vmatprep.mubr.f32.mxu0 %v649_v39  ;;  %v4796_v35 = vpack.c.bf16 %v795_v56, %v790_v61  ;;  %v597_v37 = vld [vmem:[%s5955_s30 + $0xb8] sm:$0xff]  ;;  %v800_v39 = vld [vmem:[#allocation7 + $0x110] sm:$0xff] }
  0xd0   : > { %4582 = vmatprep.subr.bf16.mxu0 %v4581_v40  ;;  %4960 = vmatpush1.bf16.msra.mxu1 %v6035_v44  ;;  %v1226_v44 = vld [vmem:[#allocation7 + $0xe60] sm:$0xff]  ;;  %v805_v40 = vld [vmem:[#allocation7 + $0x138] sm:$0xff]  ;;  %v820_v32 = vld [vmem:[#allocation7 + $0x1b0] sm:$0xff] }
  0xd1   : > { %1383 = vmatmul.mubr.f32.gmra.mrb[24].mxu1 %v646_v46  ;;  %4945 = vmatprep.subr.bf16.mxu1 %v6038_v50  ;;  %v1237_v50 = vld [vmem:[#allocation7 + $0xeb8] sm:$0xff]  ;;  %v4591_v5 = vpack.c.bf16 %v1231_v30, %v1226_v44  ;;  %v4799_v63 = vpack.c.bf16 %v805_v40, %v800_v39  ;;  %v603_v46 = vld [vmem:[%s5955_s30 + $0xe8] sm:$0xff]  ;;  %v706_v30 = vld [vmem:[%s5955_s30 + $0x420] sm:$0xff] }
  0xd2   : > { %1640 = vmatmul.mubr.f32.gmra.mrb[24].mxu0 %v648_v4  ;;  %1388 = vmatprep.mubr.f32.mxu1 %v653_v48  ;;  %v4593_v33 = vpack.c.bf16 %v1242_v0, %v1237_v50  ;;  %v810_v4 = vld [vmem:[#allocation7 + $0x160] sm:$0xff]  ;;  %v609_v54 = vld [vmem:[%s5955_s30 + $0x118] sm:$0xff]  ;;  %v835_v44 = vld [vmem:[#allocation7 + $0x228] sm:$0xff] }
  0xd3   : > { %4584 = vmatpush1.bf16.msra.mxu0 %v4583_v17  ;;  %1645 = vmatprep.mubr.f32.mxu0 %v655_v49  ;;  %v815_v17 = vld [vmem:[#allocation7 + $0x188] sm:$0xff]  ;;  %v694_v48 = vld [vmem:[%s5955_s30 + $0x3c0] sm:$0xff]  ;;  %v825_v57 = vld [vmem:[#allocation7 + $0x1d8] sm:$0xff] }
  0xd4   : > { %4586 = vmatprep.subr.bf16.mxu0 %v4585_v52  ;;  %4961 = vmatpush1.bf16.msra.mxu1 %v6041_v60  ;;  %v1236_v60 = vld [vmem:[#allocation7 + $0xeb0] sm:$0xff]  ;;  %v602_v49 = vld [vmem:[%s5955_s30 + $0xe0] sm:$0xff]  ;;  %v701_v52 = vld [vmem:[%s5955_s30 + $0x3f8] sm:$0xff]  ;;  %v4802_v24 = vpack.c.bf16 %v815_v17, %v810_v4 }
  0xd5   : > { %1389 = vmatmul.mubr.f32.gmra.mrb[26].mxu1 %v652_v58  ;;  %4946 = vmatprep.subr.bf16.mxu1 %v6044_v3  ;;  %v664_v3 = vld [vmem:[%s5955_s30 + $0x2d0] sm:$0xff]  ;;  %v4595_v15 = vpack.c.bf16 %v1241_v9, %v1236_v60  ;;  %v614_v50 = vld [vmem:[%s5955_s30 + $0x140] sm:$0xff]  ;;  %v713_v0 = vld [vmem:[%s5955_s30 + $0x458] sm:$0xff] }
  0xd6   : > { %1646 = vmatmul.mubr.f32.gmra.mrb[26].mxu0 %v654_v13  ;;  %1394 = vmatprep.mubr.f32.mxu1 %v659_v19  ;;  %v700_v58 = vld [vmem:[%s5955_s30 + $0x3f0] sm:$0xff]  ;;  %v4805_v19 = vpack.c.bf16 %v825_v57, %v820_v32  ;;  %v719_v60 = vld [vmem:[%s5955_s30 + $0x488] sm:$0xff]  ;;  %v885_v56 = vld [vmem:[#allocation7 + $0x3b8] sm:$0xff] }
  0xd7   : > { %4588 = vmatpush1.bf16.msra.mxu0 %v4587_v25  ;;  %1651 = vmatprep.mubr.f32.mxu0 %v661_v59  ;;  %v608_v13 = vld [vmem:[%s5955_s30 + $0x110] sm:$0xff]  ;;  %v707_v25 = vld [vmem:[%s5955_s30 + $0x428] sm:$0xff]  ;;  %v890_v39 = vld [vmem:[#allocation7 + $0x3e0] sm:$0xff] }
  0xd8   : > { %4590 = vmatprep.subr.bf16.mxu0 %v4589_v62  ;;  %4962 = vmatpush1.bf16.msra.mxu1 %v6047_v16  ;;  %v775_v16 = vld [vmem:[#allocation7 + $0x48] sm:$0xff]  ;;  %v830_v62 = vld [vmem:[#allocation7 + $0x200] sm:$0xff]  ;;  %v880_v61 = vld [vmem:[#allocation7 + $0x390] sm:$0xff] }
  0xd9   : > { %1395 = vmatmul.mubr.f32.gmra.mrb[28].mxu1 %v658_v1  ;;  %4947 = vmatprep.subr.bf16.mxu1 %v6050_v23  ;;  %v4597_v23 = vpack.c.bf16 %v774_v38, %v769_v10  ;;  %v4790_v7 = vpack.c.bf16 %v775_v16, %v770_v41  ;;  %v615_v59 = vld [vmem:[%s5955_s30 + $0x148] sm:$0xff]  ;;  %v4808_v1 = vpack.c.bf16 %v835_v44, %v830_v62  ;;  %v850_v10 = vld [vmem:[#allocation7 + $0x2a0] sm:$0xff]  ;;  %v633_v41 = vld [vmem:[%s5955_s30 + $0x1d8] sm:$0xff] }
  0xda   : > { %1652 = vmatmul.mubr.f32.gmra.mrb[28].mxu0 %v660_v2  ;;  %1400 = vmatprep.mubr.f32.mxu1 %v665_v27  ;;  %v621_v2 = vld [vmem:[%s5955_s30 + $0x178] sm:$0xff]  ;;  %v855_v38 = vld [vmem:[#allocation7 + $0x2c8] sm:$0xff]  ;;  %v860_v16 = vld [vmem:[#allocation7 + $0x2f0] sm:$0xff] }
  0xdb   : > { %4592 = vmatpush1.bf16.msra.mxu0 %v4591_v5  ;;  %1657 = vmatprep.mubr.f32.mxu0 %v667_v8  ;;  %v840_v5 = vld [vmem:[#allocation7 + $0x250] sm:$0xff]  ;;  %v845_v27 = vld [vmem:[#allocation7 + $0x278] sm:$0xff]  ;;  %v895_v40 = vld [vmem:[#allocation7 + $0x408] sm:$0xff] }
  0xdc   : > { %4594 = vmatprep.subr.bf16.mxu0 %v4593_v33  ;;  %4963 = vmatpush1.bf16.msra.mxu1 %v6053_v36  ;;  %v585_v36 = vld [vmem:[%s5955_s30 + $0x58] sm:$0xff]  ;;  %v712_v8 = vld [vmem:[%s5955_s30 + $0x450] sm:$0xff]  ;;  %v4811_v9 = vpack.c.bf16 %v845_v27, %v840_v5  ;;  %v910_v32 = vld [vmem:[#allocation7 + $0x480] sm:$0xff] }
  0xdd   : > { %1401 = vmatmul.mubr.f32.gmra.mrb[30].mxu1 %v664_v3  ;;  %4948 = vmatprep.subr.bf16.mxu1 %v6056_v42  ;;  %v676_v42 = vld [vmem:[%s5955_s30 + $0x330] sm:$0xff]  ;;  %v627_v3 = vld [vmem:[%s5955_s30 + $0x1a8] sm:$0xff]  ;;  %v905_v17 = vld [vmem:[#allocation7 + $0x458] sm:$0xff] }
  0xde   : > { %1658 = vmatmul.mubr.f32.gmra.mrb[30].mxu0 %v666_v11  ;;  %1406 = vmatprep.mubr.f32.mxu1 %v671_v18  ;;  %v620_v33 = vld [vmem:[%s5955_s30 + $0x170] sm:$0xff]  ;;  %v718_v11 = vld [vmem:[%s5955_s30 + $0x480] sm:$0xff]  ;;  %v725_v18 = vld [vmem:[%s5955_s30 + $0x4b8] sm:$0xff] }
  0xdf   : > { %4596 = vmatpush1.bf16.msra.mxu0 %v4595_v15  ;;  %1824 = vmatprep.mubr.f32.mxu0 %v579_v43  ;;  %v626_v15 = vld [vmem:[%s5955_s30 + $0x1a0] sm:$0xff]  ;;  %v4814_v43 = vpack.c.bf16 %v855_v38, %v850_v10  ;;  %v900_v4 = vld [vmem:[#allocation7 + $0x430] sm:$0xff]  ;;  %v915_v57 = vld [vmem:[#allocation7 + $0x4a8] sm:$0xff] }
  0xe0   : > { %4789 = vmatprep.subr.bf16.mxu0 %v5778_v22  ;;  %4964 = vmatpush1.bf16.msra.mxu1 %v6059_v53  ;;  %v682_v53 = vld [vmem:[%s5955_s30 + $0x360] sm:$0xff]  ;;  %v920_v62 = vld [vmem:[#allocation7 + $0x4d0] sm:$0xff]  ;;  %v925_v44 = vld [vmem:[#allocation7 + $0x4f8] sm:$0xff] }
  0xe1   : > { %1407 = vmatmul.mubr.f32.gmra.mrb[32].mxu1 %v670_v20  ;;  %4598 = vmatprep.subr.bf16.mxu1 %v4597_v23  ;;  %v865_v23 = vld [vmem:[#allocation7 + $0x318] sm:$0xff]  ;;  %v724_v20 = vld [vmem:[%s5955_s30 + $0x4b0] sm:$0xff]  ;;  %v4835_v5 = vpack.c.bf16 %v925_v44, %v920_v62  ;;  %v675_v27 = vld [vmem:[%s5955_s30 + $0x328] sm:$0xff] }
  0xe2   : > { %1825 = vmatmul.mubr.f32.vlgmr.msra.gmra.mrb[0].mxu0 %v578_v47  ;;  %1412 = vmatprep.mubr.f32.mxu1 %v677_v21  ;;  %v632_v47 = vld [vmem:[%s5955_s30 + $0x1d0] sm:$0xff]  ;;  %v4817_v21 = vpack.c.bf16 %v865_v23, %v860_v16  ;;  %v778_v10 = vld [vmem:[#allocation7 + $0x60] sm:$0xff]  ;;  %v783_v38 = vld [vmem:[#allocation7 + $0x88] sm:$0xff] }
  0xe3   : > { %4791 = vmatpush1.bf16.msra.mxu0 %v4790_v7  ;;  %1830 = vmatprep.mubr.f32.mxu0 %v585_v36  ;;  %v731_v7 = vld [vmem:[%s5955_s30 + $0x4e8] sm:$0xff]  ;;  %v678_v16 = vld [vmem:[%s5955_s30 + $0x340] sm:$0xff]  ;;  %v4603_v23 = vpack.c.bf16 %v783_v38, %v778_v10  ;;  %v704_v62 = vld [vmem:[%s5955_s30 + $0x410] sm:$0xff] }
  0xe4   : > { %4792 = vmatprep.subr.bf16.mxu0 %v5778_v22  ;;  %v639_v36 = vld [vmem:[%s5955_s30 + $0x208] sm:$0xff]  ;;  %v828_v44 = vld [vmem:[#allocation7 + $0x1f0] sm:$0xff]  ;;  %v717_v10 = vld [vmem:[%s5955_s30 + $0x478] sm:$0xff] }
  0xe5   : > { %1413 = vmatmul.mubr.f32.gmra.mrb[34].mxu1 %v676_v42  ;;  %v730_v42 = vld [vmem:[%s5955_s30 + $0x4e0] sm:$0xff] }
  0xe6   : > { %1831 = vmatmul.mubr.f32.gmra.mrb[2].mxu0 %v584_v29  ;;  %1418 = vmatprep.mubr.f32.mxu1 %v683_v51  ;;  %v638_v29 = vld [vmem:[%s5955_s30 + $0x200] sm:$0xff]  ;;  %v737_v51 = vld [vmem:[%s5955_s30 + $0x518] sm:$0xff] }
  0xe7   : > { %1836 = vmatprep.mubr.f32.mxu0 %v591_v31  ;;  %4794 = vmatpush1.bf16.msra.mxu0 %v4793_v55  ;;  %v4820_v55 = vpack.c.bf16 %v875_v28, %v870_v26  ;;  %v645_v31 = vld [vmem:[%s5955_s30 + $0x238] sm:$0xff]  ;;  %v799_v28 = vld [vmem:[#allocation7 + $0x108] sm:$0xff] }
  0xe8   : > { %4795 = vmatprep.subr.bf16.mxu0 %v5778_v22 }
  0xe9   : > { %1419 = vmatmul.mubr.f32.gmra.mrb[36].mxu1 %v682_v53  ;;  %v736_v53 = vld [vmem:[%s5955_s30 + $0x510] sm:$0xff] }
  0xea   : > { %1837 = vmatmul.mubr.f32.gmra.mrb[4].mxu0 %v590_v12  ;;  %1424 = vmatprep.mubr.f32.mxu1 %v689_v34  ;;  %v644_v12 = vld [vmem:[%s5955_s30 + $0x230] sm:$0xff]  ;;  %v743_v34 = vld [vmem:[%s5955_s30 + $0x548] sm:$0xff] }
  0xeb   : > { %1842 = vmatprep.mubr.f32.mxu0 %v597_v37  ;;  %4797 = vmatpush1.bf16.msra.mxu0 %v4796_v35  ;;  %v4823_v35 = vpack.c.bf16 %v885_v56, %v880_v61  ;;  %v651_v37 = vld [vmem:[%s5955_s30 + $0x268] sm:$0xff] }
  0xec   : > { %4798 = vmatprep.subr.bf16.mxu0 %v5778_v22  ;;  %v803_v61 = vld [vmem:[#allocation7 + $0x128] sm:$0xff] }
  0xed   : > { %1425 = vmatmul.mubr.f32.gmra.mrb[38].mxu1 %v688_v6  ;;  %v742_v6 = vld [vmem:[%s5955_s30 + $0x540] sm:$0xff]  ;;  %v691_v56 = vld [vmem:[%s5955_s30 + $0x3a8] sm:$0xff] }
  0xee   : > { %1843 = vmatmul.mubr.f32.gmra.mrb[6].mxu0 %v596_v45  ;;  %1430 = vmatprep.mubr.f32.mxu1 %v695_v14  ;;  %v650_v45 = vld [vmem:[%s5955_s30 + $0x260] sm:$0xff]  ;;  %v749_v14 = vld [vmem:[%s5955_s30 + $0x578] sm:$0xff] }
  0xef   : > { %1848 = vmatprep.mubr.f32.mxu0 %v603_v46  ;;  %4800 = vmatpush1.bf16.msra.mxu0 %v4799_v63  ;;  %v4826_v63 = vpack.c.bf16 %v895_v40, %v890_v39  ;;  %v657_v46 = vld [vmem:[%s5955_s30 + $0x298] sm:$0xff]  ;;  %v692_v40 = vld [vmem:[%s5955_s30 + $0x3b0] sm:$0xff] }
  0xf0   : > { %4801 = vmatprep.subr.bf16.mxu0 %v5778_v22 }
  0xf1   : > { %1431 = vmatmul.mubr.f32.gmra.mrb[40].mxu1 %v694_v48  ;;  %v748_v48 = vld [vmem:[%s5955_s30 + $0x570] sm:$0xff] }
  0xf2   : > { %1849 = vmatmul.mubr.f32.gmra.mrb[8].mxu0 %v602_v49  ;;  %1436 = vmatprep.mubr.f32.mxu1 %v701_v52  ;;  %v656_v49 = vld [vmem:[%s5955_s30 + $0x290] sm:$0xff]  ;;  %v755_v52 = vld [vmem:[%s5955_s30 + $0x5a8] sm:$0xff] }
  0xf3   : > { %1854 = vmatprep.mubr.f32.mxu0 %v609_v54  ;;  %4803 = vmatpush1.bf16.msra.mxu0 %v4802_v24  ;;  %v4829_v24 = vpack.c.bf16 %v905_v17, %v900_v4  ;;  %v663_v54 = vld [vmem:[%s5955_s30 + $0x2c8] sm:$0xff]  ;;  %v824_v17 = vld [vmem:[#allocation7 + $0x1d0] sm:$0xff] }
  0xf4   : > { %4804 = vmatprep.subr.bf16.mxu0 %v5778_v22  ;;  %v819_v4 = vld [vmem:[#allocation7 + $0x1a8] sm:$0xff] }
  0xf5   : > { %1437 = vmatmul.mubr.f32.gmra.mrb[42].mxu1 %v700_v58  ;;  %v754_v58 = vld [vmem:[%s5955_s30 + $0x5a0] sm:$0xff] }
  0xf6   : > { %1855 = vmatmul.mubr.f32.gmra.mrb[10].mxu0 %v608_v13  ;;  %1442 = vmatprep.mubr.f32.mxu1 %v707_v25  ;;  %v662_v13 = vld [vmem:[%s5955_s30 + $0x2c0] sm:$0xff]  ;;  %v761_v25 = vld [vmem:[%s5955_s30 + $0x5d8] sm:$0xff] }
  0xf7   : > { %1860 = vmatprep.mubr.f32.mxu0 %v615_v59  ;;  %4806 = vmatpush1.bf16.msra.mxu0 %v4805_v19  ;;  %v4832_v19 = vpack.c.bf16 %v915_v57, %v910_v32  ;;  %v669_v59 = vld [vmem:[%s5955_s30 + $0x2f8] sm:$0xff]  ;;  %v703_v32 = vld [vmem:[%s5955_s30 + $0x408] sm:$0xff] }
  0xf8   : > { %4807 = vmatprep.subr.bf16.mxu0 %v5778_v22  ;;  %v705_v57 = vld [vmem:[%s5955_s30 + $0x418] sm:$0xff] }
  0xf9   : > { %1443 = vmatmul.mubr.f32.gmra.mrb[44].mxu1 %v706_v30  ;;  %v760_v30 = vld [vmem:[%s5955_s30 + $0x5d0] sm:$0xff] }
  0xfa   : > { %1861 = vmatmul.mubr.f32.gmra.mrb[12].mxu0 %v614_v50  ;;  %1448 = vmatprep.mubr.f32.mxu1 %v713_v0  ;;  %v668_v50 = vld [vmem:[%s5955_s30 + $0x2f0] sm:$0xff]  ;;  %v673_v0 = vld [vmem:[%s5955_s30 + $0x318] sm:$0xff] }
  0xfb   : > { %1866 = vmatprep.mubr.f32.mxu0 %v621_v2  ;;  %4809 = vmatpush1.bf16.msra.mxu0 %v4808_v1  ;;  %v768_v1 = vld [vmem:[#allocation7 + $0x10] sm:$0xff]  ;;  %v773_v2 = vld [vmem:[#allocation7 + $0x38] sm:$0xff] }
  0xfc   : > { %4810 = vmatprep.subr.bf16.mxu0 %v5778_v22 }
  0xfd   : > { %1449 = vmatmul.mubr.f32.gmra.mrb[46].mxu1 %v712_v8  ;;  %v779_v8 = vld [vmem:[#allocation7 + $0x68] sm:$0xff] }
  0xfe   : > { %1867 = vmatmul.mubr.f32.gmra.mrb[14].mxu0 %v620_v33  ;;  %1454 = vmatprep.mubr.f32.mxu1 %v719_v60  ;;  %v784_v33 = vld [vmem:[#allocation7 + $0x90] sm:$0xff] }
  0xff   : > { %1872 = vmatprep.mubr.f32.mxu0 %v627_v3  ;;  %4812 = vmatpush1.bf16.msra.mxu0 %v4811_v9  ;;  %v672_v60 = vld [vmem:[%s5955_s30 + $0x310] sm:$0xff]  ;;  %v4599_v9 = vpack.c.bf16 %v773_v2, %v768_v1  ;;  %v674_v3 = vld [vmem:[%s5955_s30 + $0x320] sm:$0xff]  ;;  %v839_v2 = vld [vmem:[#allocation7 + $0x248] sm:$0xff] }
 0x100   : > { %4813 = vmatprep.subr.bf16.mxu0 %v5778_v22 }
 0x101   : > { %1455 = vmatmul.mubr.f32.gmra.mrb[48].mxu1 %v718_v11  ;;  %v679_v11 = vld [vmem:[%s5955_s30 + $0x348] sm:$0xff] }
 0x102   : > { %1873 = vmatmul.mubr.f32.gmra.mrb[16].mxu0 %v626_v15  ;;  %1460 = vmatprep.mubr.f32.mxu1 %v725_v18  ;;  %v681_v15 = vld [vmem:[%s5955_s30 + $0x358] sm:$0xff]  ;;  %v4601_v18 = vpack.c.bf16 %v784_v33, %v779_v8  ;;  %v710_v33 = vld [vmem:[%s5955_s30 + $0x440] sm:$0xff] }
 0x103   : > { %1878 = vmatprep.mubr.f32.mxu0 %v633_v41  ;;  %4815 = vmatpush1.bf16.msra.mxu0 %v4814_v43  ;;  %v789_v43 = vld [vmem:[#allocation7 + $0xb8] sm:$0xff]  ;;  %v794_v41 = vld [vmem:[#allocation7 + $0xe0] sm:$0xff] }
 0x104   : > { %4816 = vmatprep.subr.bf16.mxu0 %v5778_v22  ;;  %v4605_v26 = vpack.c.bf16 %v794_v41, %v789_v43  ;;  %v716_v41 = vld [vmem:[%s5955_s30 + $0x470] sm:$0xff] }
 0x105   : > { %1461 = vmatmul.mubr.f32.gmra.mrb[50].mxu1 %v724_v20  ;;  %v680_v20 = vld [vmem:[%s5955_s30 + $0x350] sm:$0xff] }
 0x106   : > { %1879 = vmatmul.mubr.f32.gmra.mrb[18].mxu0 %v632_v47  ;;  %1466 = vmatprep.mubr.f32.mxu1 %v731_v7  ;;  %v788_v47 = vld [vmem:[#allocation7 + $0xb0] sm:$0xff]  ;;  %v793_v7 = vld [vmem:[#allocation7 + $0xd8] sm:$0xff] }
 0x107   : > { %1884 = vmatprep.mubr.f32.mxu0 %v639_v36  ;;  %4818 = vmatpush1.bf16.msra.mxu0 %v4817_v21  ;;  %v685_v21 = vld [vmem:[%s5955_s30 + $0x378] sm:$0xff]  ;;  %v687_v36 = vld [vmem:[%s5955_s30 + $0x388] sm:$0xff] }
 0x108   : > { %4819 = vmatprep.subr.bf16.mxu0 %v5778_v22 }
 0x109   : > { %1467 = vmatmul.mubr.f32.gmra.mrb[52].mxu1 %v730_v42  ;;  %v804_v42 = vld [vmem:[#allocation7 + $0x130] sm:$0xff] }
 0x10a   : > { %1885 = vmatmul.mubr.f32.gmra.mrb[20].mxu0 %v638_v29  ;;  %1472 = vmatprep.mubr.f32.mxu1 %v737_v51  ;;  %v684_v29 = vld [vmem:[%s5955_s30 + $0x370] sm:$0xff]  ;;  %v4607_v51 = vpack.c.bf16 %v793_v7, %v788_v47  ;;  %v723_v47 = vld [vmem:[%s5955_s30 + $0x4a8] sm:$0xff] }
 0x10b   : > { %1890 = vmatprep.mubr.f32.mxu0 %v645_v31  ;;  %4821 = vmatpush1.bf16.msra.mxu0 %v4820_v55  ;;  %v686_v55 = vld [vmem:[%s5955_s30 + $0x380] sm:$0xff] }
 0x10c   : > { %4822 = vmatprep.subr.bf16.mxu0 %v5778_v22  ;;  %v798_v31 = vld [vmem:[#allocation7 + $0x100] sm:$0xff] }
 0x10d   : > { %1473 = vmatmul.mubr.f32.gmra.mrb[54].mxu1 %v736_v53  ;;  %v693_v53 = vld [vmem:[%s5955_s30 + $0x3b8] sm:$0xff]  ;;  %v4611_v39 = vpack.c.bf16 %v803_v61, %v798_v31 }
 0x10e   : > { %1891 = vmatmul.mubr.f32.gmra.mrb[22].mxu0 %v644_v12  ;;  %1478 = vmatprep.mubr.f32.mxu1 %v743_v34  ;;  %v4609_v12 = vpack.c.bf16 %v804_v42, %v799_v28  ;;  %v809_v34 = vld [vmem:[#allocation7 + $0x158] sm:$0xff]  ;;  %v722_v42 = vld [vmem:[%s5955_s30 + $0x4a0] sm:$0xff] }
 0x10f   : > { %1896 = vmatprep.mubr.f32.mxu0 %v651_v37  ;;  %4824 = vmatpush1.bf16.msra.mxu0 %v4823_v35  ;;  %v814_v35 = vld [vmem:[#allocation7 + $0x180] sm:$0xff]  ;;  %v729_v31 = vld [vmem:[%s5955_s30 + $0x4d8] sm:$0xff] }
 0x110   : > { %4825 = vmatprep.subr.bf16.mxu0 %v5778_v22  ;;  %v690_v37 = vld [vmem:[%s5955_s30 + $0x3a0] sm:$0xff] }
 0x111   : > { %1479 = vmatmul.mubr.f32.gmra.mrb[56].mxu1 %v742_v6  ;;  %v808_v6 = vld [vmem:[#allocation7 + $0x150] sm:$0xff] }
 0x112   : > { %1897 = vmatmul.mubr.f32.gmra.mrb[24].mxu0 %v650_v45  ;;  %1484 = vmatprep.mubr.f32.mxu1 %v749_v14  ;;  %v813_v45 = vld [vmem:[#allocation7 + $0x178] sm:$0xff] }
 0x113   : > { %1902 = vmatprep.mubr.f32.mxu0 %v657_v46  ;;  %4827 = vmatpush1.bf16.msra.mxu0 %v4826_v63  ;;  %v697_v14 = vld [vmem:[%s5955_s30 + $0x3d8] sm:$0xff]  ;;  %v699_v63 = vld [vmem:[%s5955_s30 + $0x3e8] sm:$0xff]  ;;  %v4613_v46 = vpack.c.bf16 %v814_v35, %v809_v34  ;;  %v728_v35 = vld [vmem:[%s5955_s30 + $0x4d0] sm:$0xff] }
 0x114   : > { %4828 = vmatprep.subr.bf16.mxu0 %v5778_v22 }
 0x115   : > { %1485 = vmatmul.mubr.f32.gmra.mrb[58].mxu1 %v748_v48  ;;  %v696_v48 = vld [vmem:[%s5955_s30 + $0x3d0] sm:$0xff] }
 0x116   : > { %1903 = vmatmul.mubr.f32.gmra.mrb[26].mxu0 %v656_v49  ;;  %1490 = vmatprep.mubr.f32.mxu1 %v755_v52  ;;  %v4615_v49 = vpack.c.bf16 %v813_v45, %v808_v6  ;;  %v698_v52 = vld [vmem:[%s5955_s30 + $0x3e0] sm:$0xff]  ;;  %v735_v6 = vld [vmem:[%s5955_s30 + $0x508] sm:$0xff] }
 0x117   : > { %1908 = vmatprep.mubr.f32.mxu0 %v663_v54  ;;  %4830 = vmatpush1.bf16.msra.mxu0 %v4829_v24  ;;  %v818_v24 = vld [vmem:[#allocation7 + $0x1a0] sm:$0xff]  ;;  %v823_v54 = vld [vmem:[#allocation7 + $0x1c8] sm:$0xff] }
 0x118   : > { %4831 = vmatprep.subr.bf16.mxu0 %v5778_v22 }
 0x119   : > { %1491 = vmatmul.mubr.f32.gmra.mrb[60].mxu1 %v754_v58  ;;  %v4617_v58 = vpack.c.bf16 %v824_v17, %v819_v4  ;;  %v734_v17 = vld [vmem:[%s5955_s30 + $0x500] sm:$0xff] }
 0x11a   : > { %1909 = vmatmul.mubr.f32.gmra.mrb[28].mxu0 %v662_v13  ;;  %1496 = vmatprep.mubr.f32.mxu1 %v761_v25  ;;  %v829_v13 = vld [vmem:[#allocation7 + $0x1f8] sm:$0xff]  ;;  %v834_v25 = vld [vmem:[#allocation7 + $0x220] sm:$0xff] }
 0x11b   : > { %1914 = vmatprep.mubr.f32.mxu0 %v669_v59  ;;  %4833 = vmatpush1.bf16.msra.mxu0 %v4832_v19  ;;  %v702_v19 = vld [vmem:[%s5955_s30 + $0x400] sm:$0xff]  ;;  %v4619_v59 = vpack.c.bf16 %v823_v54, %v818_v24  ;;  %v4621_v1 = vpack.c.bf16 %v834_v25, %v829_v13  ;;  %v741_v24 = vld [vmem:[%s5955_s30 + $0x538] sm:$0xff]  ;;  %v740_v25 = vld [vmem:[%s5955_s30 + $0x530] sm:$0xff] }
 0x11c   : > { %4834 = vmatprep.subr.bf16.mxu0 %v5778_v22 }
 0x11d   : > { %1497 = vmatmul.mubr.f32.gmra.mrb[62].mxu1 %v760_v30  ;;  %v833_v30 = vld [vmem:[#allocation7 + $0x218] sm:$0xff] }
 0x11e   : > { %1915 = vmatmul.mubr.f32.gmra.mrb[30].mxu0 %v668_v50  ;;  %1663 = vmatprep.mubr.f32.mxu1 %v673_v0  ;;  %v709_v50 = vld [vmem:[%s5955_s30 + $0x438] sm:$0xff]  ;;  %v711_v0 = vld [vmem:[%s5955_s30 + $0x448] sm:$0xff]  ;;  %v4623_v8 = vpack.c.bf16 %v833_v30, %v828_v44 }
 0x11f   : > { %1920 = vmatprep.mubr.f32.mxu0 %v675_v27  ;;  %4836 = vmatpush1.bf16.msra.mxu0 %v4835_v5  ;;  %v844_v5 = vld [vmem:[#allocation7 + $0x270] sm:$0xff]  ;;  %v747_v44 = vld [vmem:[%s5955_s30 + $0x568] sm:$0xff] }
 0x120   : > { %4837 = vmatprep.subr.bf16.mxu0 %v5778_v22  ;;  %v708_v27 = vld [vmem:[%s5955_s30 + $0x430] sm:$0xff]  ;;  %v4625_v38 = vpack.c.bf16 %v844_v5, %v839_v2  ;;  %v746_v5 = vld [vmem:[%s5955_s30 + $0x560] sm:$0xff] }
 0x121   : > { %1664 = vmatmul.mubr.f32.vlgmr.msra.gmra.mrb[32].mxu1 %v672_v60  ;;  %v838_v60 = vld [vmem:[#allocation7 + $0x240] sm:$0xff] }
 0x122   : > { %1921 = vmatmul.mubr.f32.gmra.mrb[32].mxu0 %v674_v3  ;;  %4600 = vmatpush1.bf16.msra.mxu1 %v4599_v9  ;;  %v843_v9 = vld [vmem:[#allocation7 + $0x268] sm:$0xff] }
 0x123   : > { %1669 = vmatprep.mubr.f32.mxu1 %v679_v11  ;;  %1926 = vmatprep.mubr.f32.mxu0 %v681_v15  ;;  %v715_v3 = vld [vmem:[%s5955_s30 + $0x468] sm:$0xff]  ;;  %v849_v11 = vld [vmem:[#allocation7 + $0x298] sm:$0xff]  ;;  %v854_v15 = vld [vmem:[#allocation7 + $0x2c0] sm:$0xff]  ;;  %v4627_v43 = vpack.c.bf16 %v843_v9, %v838_v60 }
 0x124   : > { %4602 = vmatprep.subr.bf16.mxu1 %v4601_v18  ;;  %v714_v18 = vld [vmem:[%s5955_s30 + $0x460] sm:$0xff]  ;;  %v4629_v7 = vpack.c.bf16 %v854_v15, %v849_v11  ;;  %v753_v60 = vld [vmem:[%s5955_s30 + $0x598] sm:$0xff]  ;;  %v752_v15 = vld [vmem:[%s5955_s30 + $0x590] sm:$0xff] }
 0x125   : > { %1670 = vmatmul.mubr.f32.gmra.mrb[34].mxu1 %v678_v16  ;;  %v848_v16 = vld [vmem:[#allocation7 + $0x290] sm:$0xff] }
 0x126   : > { %1927 = vmatmul.mubr.f32.gmra.mrb[34].mxu0 %v680_v20  ;;  %4604 = vmatpush1.bf16.msra.mxu1 %v4603_v23  ;;  %v853_v23 = vld [vmem:[#allocation7 + $0x2b8] sm:$0xff] }
 0x127   : > { %1675 = vmatprep.mubr.f32.mxu1 %v685_v21  ;;  %1932 = vmatprep.mubr.f32.mxu0 %v687_v36  ;;  %v721_v20 = vld [vmem:[%s5955_s30 + $0x498] sm:$0xff]  ;;  %v859_v21 = vld [vmem:[#allocation7 + $0x2e8] sm:$0xff]  ;;  %v864_v36 = vld [vmem:[#allocation7 + $0x310] sm:$0xff]  ;;  %v4631_v28 = vpack.c.bf16 %v853_v23, %v848_v16 }
 0x128   : > { %4606 = vmatprep.subr.bf16.mxu1 %v4605_v26  ;;  %v720_v26 = vld [vmem:[%s5955_s30 + $0x490] sm:$0xff]  ;;  %v4633_v61 = vpack.c.bf16 %v864_v36, %v859_v21  ;;  %v759_v16 = vld [vmem:[%s5955_s30 + $0x5c8] sm:$0xff]  ;;  %v758_v36 = vld [vmem:[%s5955_s30 + $0x5c0] sm:$0xff] }
 0x129   : > { %1676 = vmatmul.mubr.f32.gmra.mrb[36].mxu1 %v684_v29  ;;  %v858_v29 = vld [vmem:[#allocation7 + $0x2e0] sm:$0xff] }
 0x12a   : > { %1933 = vmatmul.mubr.f32.gmra.mrb[36].mxu0 %v686_v55  ;;  %4608 = vmatpush1.bf16.msra.mxu1 %v4607_v51  ;;  %v863_v51 = vld [vmem:[#allocation7 + $0x308] sm:$0xff] }
 0x12b   : > { %1681 = vmatprep.mubr.f32.mxu1 %v691_v56  ;;  %1938 = vmatprep.mubr.f32.mxu0 %v693_v53  ;;  %v727_v55 = vld [vmem:[%s5955_s30 + $0x4c8] sm:$0xff]  ;;  %v869_v56 = vld [vmem:[#allocation7 + $0x338] sm:$0xff]  ;;  %v874_v53 = vld [vmem:[#allocation7 + $0x360] sm:$0xff]  ;;  %v4635_v34 = vpack.c.bf16 %v863_v51, %v858_v29 }
 0x12c   : > { %4610 = vmatprep.subr.bf16.mxu1 %v4609_v12  ;;  %v726_v12 = vld [vmem:[%s5955_s30 + $0x4c0] sm:$0xff]  ;;  %v4637_v45 = vpack.c.bf16 %v874_v53, %v869_v56  ;;  %v765_v29 = vld [vmem:[%s5955_s30 + $0x5f8] sm:$0xff]  ;;  %v764_v53 = vld [vmem:[%s5955_s30 + $0x5f0] sm:$0xff] }
 0x12d   : > { %1682 = vmatmul.mubr.f32.gmra.mrb[38].mxu1 %v690_v37  ;;  %v868_v37 = vld [vmem:[#allocation7 + $0x330] sm:$0xff] }
 0x12e   : > { %1939 = vmatmul.mubr.f32.gmra.mrb[38].mxu0 %v692_v40  ;;  %4612 = vmatpush1.bf16.msra.mxu1 %v4611_v39  ;;  %v873_v39 = vld [vmem:[#allocation7 + $0x358] sm:$0xff] }
 0x12f   : > { %1687 = vmatprep.mubr.f32.mxu1 %v697_v14  ;;  %1944 = vmatprep.mubr.f32.mxu0 %v699_v63  ;;  %v733_v40 = vld [vmem:[%s5955_s30 + $0x4f8] sm:$0xff]  ;;  %v879_v14 = vld [vmem:[#allocation7 + $0x388] sm:$0xff]  ;;  %v884_v63 = vld [vmem:[#allocation7 + $0x3b0] sm:$0xff]  ;;  %v4639_v4 = vpack.c.bf16 %v873_v39, %v868_v37 }
 0x130   : > { %4614 = vmatprep.subr.bf16.mxu1 %v4613_v46  ;;  %v732_v46 = vld [vmem:[%s5955_s30 + $0x4f0] sm:$0xff]  ;;  %v4641_v54 = vpack.c.bf16 %v884_v63, %v879_v14  ;;  %v930_v37 = vld [vmem:[#allocation7 + $0x520] sm:$0xff]  ;;  %v935_v39 = vld [vmem:[#allocation7 + $0x548] sm:$0xff] }
 0x131   : > { %1688 = vmatmul.mubr.f32.gmra.mrb[40].mxu1 %v696_v48  ;;  %v878_v48 = vld [vmem:[#allocation7 + $0x380] sm:$0xff]  ;;  %v5434_v14 = vld [vmem:[%s5955_s30 + $0x8] sm:$0xff]  ;;  %v4838_v63 = vpack.c.bf16 %v935_v39, %v930_v37  ;;  %v988_v39 = vld [vmem:[#allocation7 + $0x6f0] sm:$0xff] }
 0x132   : > { %1945 = vmatmul.mubr.f32.gmra.mrb[40].mxu0 %v698_v52  ;;  %4616 = vmatpush1.bf16.msra.mxu1 %v4615_v49  ;;  %v883_v49 = vld [vmem:[#allocation7 + $0x3a8] sm:$0xff] }
 0x133   : > { %1693 = vmatprep.mubr.f32.mxu1 %v703_v32  ;;  %1950 = vmatprep.mubr.f32.mxu0 %v705_v57  ;;  %v739_v52 = vld [vmem:[%s5955_s30 + $0x528] sm:$0xff]  ;;  %v889_v32 = vld [vmem:[#allocation7 + $0x3d8] sm:$0xff]  ;;  %v894_v57 = vld [vmem:[#allocation7 + $0x400] sm:$0xff]  ;;  %v4643_v13 = vpack.c.bf16 %v883_v49, %v878_v48 }
 0x134   : > { %4618 = vmatprep.subr.bf16.mxu1 %v4617_v58  ;;  %v738_v58 = vld [vmem:[%s5955_s30 + $0x520] sm:$0xff]  ;;  %v4645_v30 = vpack.c.bf16 %v894_v57, %v889_v32  ;;  %v940_v48 = vld [vmem:[#allocation7 + $0x570] sm:$0xff]  ;;  %v5436_v32 = vld [vmem:[%s5955_s30 + $0x38] sm:$0xff] }
 0x135   : > { %1694 = vmatmul.mubr.f32.gmra.mrb[42].mxu1 %v702_v19  ;;  %v888_v19 = vld [vmem:[#allocation7 + $0x3d0] sm:$0xff]  ;;  %v5435_v49 = vld [vmem:[%s5955_s30] sm:$0xff] }
 0x136   : > { %1951 = vmatmul.mubr.f32.gmra.mrb[42].mxu0 %v704_v62  ;;  %4620 = vmatpush1.bf16.msra.mxu1 %v4619_v59  ;;  %v893_v59 = vld [vmem:[#allocation7 + $0x3f8] sm:$0xff] }
 0x137   : > { %1699 = vmatprep.mubr.f32.mxu1 %v709_v50  ;;  %1956 = vmatprep.mubr.f32.mxu0 %v711_v0  ;;  %v745_v62 = vld [vmem:[%s5955_s30 + $0x558] sm:$0xff]  ;;  %v899_v50 = vld [vmem:[#allocation7 + $0x428] sm:$0xff]  ;;  %v904_v0 = vld [vmem:[#allocation7 + $0x450] sm:$0xff]  ;;  %v4647_v2 = vpack.c.bf16 %v893_v59, %v888_v19 }
 0x138   : > { %4622 = vmatprep.subr.bf16.mxu1 %v4621_v1  ;;  %v744_v1 = vld [vmem:[%s5955_s30 + $0x550] sm:$0xff]  ;;  %v4649_v9 = vpack.c.bf16 %v904_v0, %v899_v50  ;;  %v953_v19 = vld [vmem:[#allocation7 + $0x5d8] sm:$0xff]  ;;  %v950_v59 = vld [vmem:[#allocation7 + $0x5c0] sm:$0xff] }
 0x139   : > { %1700 = vmatmul.mubr.f32.gmra.mrb[44].mxu1 %v708_v27  ;;  %v898_v27 = vld [vmem:[#allocation7 + $0x420] sm:$0xff]  ;;  %v964_v50 = vld [vmem:[#allocation7 + $0x630] sm:$0xff]  ;;  %v5438_v0 = vld [vmem:[%s5955_s30 + $0x68] sm:$0xff] }
 0x13a   : > { %1957 = vmatmul.mubr.f32.gmra.mrb[44].mxu0 %v710_v33  ;;  %4624 = vmatpush1.bf16.msra.mxu1 %v4623_v8  ;;  %v903_v8 = vld [vmem:[#allocation7 + $0x448] sm:$0xff] }
 0x13b   : > { %1705 = vmatprep.mubr.f32.mxu1 %v715_v3  ;;  %1962 = vmatprep.mubr.f32.mxu0 %v717_v10  ;;  %v751_v33 = vld [vmem:[%s5955_s30 + $0x588] sm:$0xff]  ;;  %v909_v3 = vld [vmem:[#allocation7 + $0x478] sm:$0xff]  ;;  %v914_v10 = vld [vmem:[#allocation7 + $0x4a0] sm:$0xff]  ;;  %v4651_v11 = vpack.c.bf16 %v903_v8, %v898_v27 }
 0x13c   : > { %4626 = vmatprep.subr.bf16.mxu1 %v4625_v38  ;;  %v750_v38 = vld [vmem:[%s5955_s30 + $0x580] sm:$0xff]  ;;  %v4653_v23 = vpack.c.bf16 %v914_v10, %v909_v3  ;;  %v963_v8 = vld [vmem:[#allocation7 + $0x628] sm:$0xff]  ;;  %v969_v3 = vld [vmem:[#allocation7 + $0x658] sm:$0xff] }
 0x13d   : > { %1706 = vmatmul.mubr.f32.gmra.mrb[46].mxu1 %v714_v18  ;;  %v908_v18 = vld [vmem:[#allocation7 + $0x470] sm:$0xff]  ;;  %v958_v27 = vld [vmem:[#allocation7 + $0x600] sm:$0xff] }
 0x13e   : > { %1963 = vmatmul.mubr.f32.gmra.mrb[46].mxu0 %v716_v41  ;;  %4628 = vmatpush1.bf16.msra.mxu1 %v4627_v43  ;;  %v913_v43 = vld [vmem:[#allocation7 + $0x498] sm:$0xff]  ;;  %v974_v10 = vld [vmem:[#allocation7 + $0x680] sm:$0xff] }
 0x13f   : > { %1711 = vmatprep.mubr.f32.mxu1 %v721_v20  ;;  %1968 = vmatprep.mubr.f32.mxu0 %v723_v47  ;;  %v757_v41 = vld [vmem:[%s5955_s30 + $0x5b8] sm:$0xff]  ;;  %v919_v20 = vld [vmem:[#allocation7 + $0x4c8] sm:$0xff]  ;;  %v924_v47 = vld [vmem:[#allocation7 + $0x4f0] sm:$0xff]  ;;  %v4655_v21 = vpack.c.bf16 %v913_v43, %v908_v18  ;;  %v4677_v18 = vpack.c.bf16 %v974_v10, %v969_v3 }
 0x140   : > { %4630 = vmatprep.subr.bf16.mxu1 %v4629_v7  ;;  %v756_v7 = vld [vmem:[%s5955_s30 + $0x5b0] sm:$0xff]  ;;  %v4657_v51 = vpack.c.bf16 %v924_v47, %v919_v20  ;;  %v975_v20 = vld [vmem:[#allocation7 + $0x688] sm:$0xff] }
 0x141   : > { %1712 = vmatmul.mubr.f32.gmra.mrb[48].mxu1 %v720_v26  ;;  %v918_v26 = vld [vmem:[#allocation7 + $0x4c0] sm:$0xff]  ;;  %v968_v43 = vld [vmem:[#allocation7 + $0x650] sm:$0xff]  ;;  %v979_v47 = vld [vmem:[#allocation7 + $0x6a8] sm:$0xff] }
 0x142   : > { %1969 = vmatmul.mubr.f32.gmra.mrb[48].mxu0 %v722_v42  ;;  %4632 = vmatpush1.bf16.msra.mxu1 %v4631_v28  ;;  %v923_v28 = vld [vmem:[#allocation7 + $0x4e8] sm:$0xff] }
 0x143   : > { %1717 = vmatprep.mubr.f32.mxu1 %v727_v55  ;;  %1974 = vmatprep.mubr.f32.mxu0 %v729_v31  ;;  %v763_v42 = vld [vmem:[%s5955_s30 + $0x5e8] sm:$0xff]  ;;  %v929_v55 = vld [vmem:[#allocation7 + $0x518] sm:$0xff]  ;;  %v934_v31 = vld [vmem:[#allocation7 + $0x540] sm:$0xff]  ;;  %v4659_v56 = vpack.c.bf16 %v923_v28, %v918_v26 }
 0x144   : > { %4634 = vmatprep.subr.bf16.mxu1 %v4633_v61  ;;  %v762_v61 = vld [vmem:[%s5955_s30 + $0x5e0] sm:$0xff]  ;;  %v5450_v3 = vld [vmem:[%s5955_s30 + $0x188] sm:$0xff] }
 0x145   : > { %1718 = vmatmul.mubr.f32.gmra.mrb[50].mxu1 %v726_v12  ;;  %v928_v12 = vld [vmem:[#allocation7 + $0x510] sm:$0xff] }
 0x146   : > { %1975 = vmatmul.mubr.f32.gmra.mrb[50].mxu0 %v728_v35  ;;  %4636 = vmatpush1.bf16.msra.mxu1 %v4635_v34  ;;  %v933_v34 = vld [vmem:[#allocation7 + $0x538] sm:$0xff]  ;;  %v4661_v35 = vpack.c.bf16 %v934_v31, %v929_v55  ;;  %v5443_v55 = vld [vmem:[%s5955_s30 + $0xc0] sm:$0xff] }
 0x147   : > { %1723 = vmatprep.mubr.f32.mxu1 %v733_v40  ;;  %1980 = vmatprep.mubr.f32.mxu0 %v735_v6  ;;  %v939_v40 = vld [vmem:[#allocation7 + $0x568] sm:$0xff]  ;;  %v944_v6 = vld [vmem:[#allocation7 + $0x590] sm:$0xff]  ;;  %v985_v31 = vld [vmem:[#allocation7 + $0x6d8] sm:$0xff] }
 0x148   : > { %4638 = vmatprep.subr.bf16.mxu1 %v4637_v45  ;;  %v4663_v45 = vpack.c.bf16 %v933_v34, %v928_v12 }
 0x149   : > { %1724 = vmatmul.mubr.f32.gmra.mrb[52].mxu1 %v732_v46  ;;  %v4665_v46 = vpack.c.bf16 %v944_v6, %v939_v40  ;;  %v993_v40 = vld [vmem:[#allocation7 + $0x718] sm:$0xff]  ;;  %v990_v6 = vld [vmem:[#allocation7 + $0x700] sm:$0xff] }
 0x14a   : > { %1981 = vmatmul.mubr.f32.gmra.mrb[52].mxu0 %v734_v17  ;;  %4640 = vmatpush1.bf16.msra.mxu1 %v4639_v4  ;;  %v938_v4 = vld [vmem:[#allocation7 + $0x560] sm:$0xff]  ;;  %v943_v17 = vld [vmem:[#allocation7 + $0x588] sm:$0xff] }
 0x14b   : > { %1729 = vmatprep.mubr.f32.mxu1 %v739_v52  ;;  %1986 = vmatprep.mubr.f32.mxu0 %v741_v24  ;;  %v945_v52 = vld [vmem:[#allocation7 + $0x598] sm:$0xff]  ;;  %v4667_v57 = vpack.c.bf16 %v943_v17, %v938_v4  ;;  %v1004_v4 = vld [vmem:[#allocation7 + $0x770] sm:$0xff]  ;;  %v5446_v17 = vld [vmem:[%s5955_s30 + $0x128] sm:$0xff] }
 0x14c   : > { %4642 = vmatprep.subr.bf16.mxu1 %v4641_v54  ;;  %v949_v24 = vld [vmem:[#allocation7 + $0x5b8] sm:$0xff]  ;;  %v954_v54 = vld [vmem:[#allocation7 + $0x5e0] sm:$0xff] }
 0x14d   : > { %1730 = vmatmul.mubr.f32.gmra.mrb[54].mxu1 %v738_v58  ;;  %v4841_v58 = vpack.c.bf16 %v945_v52, %v940_v48  ;;  %v4687_v48 = vpack.c.bf16 %v993_v40, %v988_v39 }
 0x14e   : > { %1987 = vmatmul.mubr.f32.gmra.mrb[54].mxu0 %v740_v25  ;;  %4644 = vmatpush1.bf16.msra.mxu1 %v4643_v13  ;;  %v4669_v13 = vpack.c.bf16 %v954_v54, %v949_v24  ;;  %v948_v25 = vld [vmem:[#allocation7 + $0x5b0] sm:$0xff]  ;;  %v998_v54 = vld [vmem:[#allocation7 + $0x740] sm:$0xff] }
 0x14f   : > { %1735 = vmatprep.mubr.f32.mxu1 %v745_v62  ;;  %1992 = vmatprep.mubr.f32.mxu0 %v747_v44  ;;  %v5437_v62 = vld [vmem:[%s5955_s30 + $0x30] sm:$0xff]  ;;  %v955_v44 = vld [vmem:[#allocation7 + $0x5e8] sm:$0xff] }
 0x150   : > { %4646 = vmatprep.subr.bf16.mxu1 %v4645_v30  ;;  %v959_v30 = vld [vmem:[#allocation7 + $0x608] sm:$0xff] }
 0x151   : > { %1736 = vmatmul.mubr.f32.gmra.mrb[56].mxu1 %v744_v1  ;;  %v4671_v1 = vpack.c.bf16 %v953_v19, %v948_v25  ;;  %v1005_v25 = vld [vmem:[#allocation7 + $0x778] sm:$0xff] }
 0x152   : > { %1993 = vmatmul.mubr.f32.gmra.mrb[56].mxu0 %v746_v5  ;;  %4648 = vmatpush1.bf16.msra.mxu1 %v4647_v2  ;;  %v4844_v2 = vpack.c.bf16 %v955_v44, %v950_v59  ;;  %v4673_v5 = vpack.c.bf16 %v964_v50, %v959_v30  ;;  %v1009_v19 = vld [vmem:[#allocation7 + $0x798] sm:$0xff]  ;;  %v1014_v59 = vld [vmem:[#allocation7 + $0x7c0] sm:$0xff] }
 0x153   : > { %1741 = vmatprep.mubr.f32.mxu1 %v751_v33  ;;  %1998 = vmatprep.mubr.f32.mxu0 %v753_v60  ;;  %v960_v33 = vld [vmem:[#allocation7 + $0x610] sm:$0xff]  ;;  %v5439_v60 = vld [vmem:[%s5955_s30 + $0x60] sm:$0xff] }
 0x154   : > { %4650 = vmatprep.subr.bf16.mxu1 %v4649_v9  ;;  %v965_v9 = vld [vmem:[#allocation7 + $0x638] sm:$0xff] }
 0x155   : > { %1742 = vmatmul.mubr.f32.gmra.mrb[58].mxu1 %v750_v38  ;;  %v5440_v38 = vld [vmem:[%s5955_s30 + $0x98] sm:$0xff] }
 0x156   : > { %1999 = vmatmul.mubr.f32.gmra.mrb[58].mxu0 %v752_v15  ;;  %4652 = vmatpush1.bf16.msra.mxu1 %v4651_v11  ;;  %v4675_v11 = vpack.c.bf16 %v963_v8, %v958_v27  ;;  %v4847_v15 = vpack.c.bf16 %v965_v9, %v960_v33  ;;  %v5449_v8 = vld [vmem:[%s5955_s30 + $0x150] sm:$0xff]  ;;  %v1015_v33 = vld [vmem:[#allocation7 + $0x7c8] sm:$0xff] }
 0x157   : > { %1747 = vmatprep.mubr.f32.mxu1 %v757_v41  ;;  %2004 = vmatprep.mubr.f32.mxu0 %v759_v16  ;;  %v973_v41 = vld [vmem:[#allocation7 + $0x678] sm:$0xff]  ;;  %v970_v16 = vld [vmem:[#allocation7 + $0x660] sm:$0xff]  ;;  %v1024_v9 = vld [vmem:[#allocation7 + $0x810] sm:$0xff] }
 0x158   : > { %4654 = vmatprep.subr.bf16.mxu1 %v4653_v23  ;;  %v5441_v23 = vld [vmem:[%s5955_s30 + $0x90] sm:$0xff]  ;;  %v4850_v26 = vpack.c.bf16 %v975_v20, %v970_v16  ;;  %v1025_v20 = vld [vmem:[#allocation7 + $0x818] sm:$0xff] }
 0x159   : > { %1748 = vmatmul.mubr.f32.gmra.mrb[60].mxu1 %v756_v7  ;;  %v984_v7 = vld [vmem:[#allocation7 + $0x6d0] sm:$0xff] }
 0x15a   : > { %2005 = vmatmul.mubr.f32.gmra.mrb[60].mxu0 %v758_v36  ;;  %4656 = vmatpush1.bf16.msra.mxu1 %v4655_v21  ;;  %v5442_v21 = vld [vmem:[%s5955_s30 + $0xc8] sm:$0xff]  ;;  %v4679_v36 = vpack.c.bf16 %v973_v41, %v968_v43  ;;  %v4681_v28 = vpack.c.bf16 %v984_v7, %v979_v47  ;;  %v1020_v41 = vld [vmem:[#allocation7 + $0x7f0] sm:$0xff]  ;;  %v1029_v47 = vld [vmem:[#allocation7 + $0x838] sm:$0xff] }
 0x15b   : > { %1753 = vmatprep.mubr.f32.mxu1 %v763_v42  ;;  %2010 = vmatprep.mubr.f32.mxu0 %v765_v29  ;;  %v978_v42 = vld [vmem:[#allocation7 + $0x6a0] sm:$0xff]  ;;  %v983_v29 = vld [vmem:[#allocation7 + $0x6c8] sm:$0xff] }
 0x15c   : > { %4658 = vmatprep.subr.bf16.mxu1 %v4657_v51  ;;  %v980_v51 = vld [vmem:[#allocation7 + $0x6b0] sm:$0xff]  ;;  %v4683_v12 = vpack.c.bf16 %v983_v29, %v978_v42  ;;  %v1023_v43 = vld [vmem:[#allocation7 + $0x808] sm:$0xff]  ;;  %v1034_v7 = vld [vmem:[#allocation7 + $0x860] sm:$0xff] }
 0x15d   : > { %1754 = vmatmul.mubr.f32.gmra.mrb[62].mxu1 %v762_v61  ;;  %v989_v61 = vld [vmem:[#allocation7 + $0x6f8] sm:$0xff]  ;;  %v4701_v42 = vpack.c.bf16 %v1034_v7, %v1029_v47  ;;  %v1028_v29 = vld [vmem:[#allocation7 + $0x830] sm:$0xff] }
 0x15e   : > { %2011 = vmatmul.mubr.f32.gmra.mrb[62].mxu0 %v764_v53  ;;  %4660 = vmatpush1.bf16.msra.mxu1 %v4659_v56  ;;  %v994_v56 = vld [vmem:[#allocation7 + $0x720] sm:$0xff]  ;;  %v5444_v53 = vld [vmem:[%s5955_s30 + $0xf8] sm:$0xff] }
 0x15f   : > { %2081 = vmatprep.mubr.f32.mxu1 %v5434_v14  ;;  %2852 = vmatprep.mubr.f32.mxu0 %v5434_v14  ;;  %v4685_v37 = vpack.c.bf16 %v994_v56, %v989_v61  ;;  %v5445_v14 = vld [vmem:[%s5955_s30 + $0xf0] sm:$0xff]  ;;  %v1035_v56 = vld [vmem:[#allocation7 + $0x868] sm:$0xff] }
 0x160   : > { %4662 = vmatprep.subr.bf16.mxu1 %v4661_v35  ;;  %v4853_v35 = vpack.c.bf16 %v985_v31, %v980_v51  ;;  %v1033_v51 = vld [vmem:[#allocation7 + $0x858] sm:$0xff]  ;;  %v5453_v61 = vld [vmem:[%s5955_s30 + $0x1b0] sm:$0xff] }
 0x161   : > { %2082 = vmatmul.mubr.f32.vlgmr.msra.gmra.mrb[64].mxu1 %v5435_v49 }
 0x162   : > { %2853 = vmatmul.mubr.f32.vlgmr.msra.gmra.mrb[64].mxu0 %v5435_v49  ;;  %4664 = vmatpush1.bf16.msra.mxu1 %v4663_v45 }
 0x163   : > { %4839 = vmatpush1.bf16.msra.mxu0 %v4838_v63  ;;  %2087 = vmatprep.mubr.f32.mxu1 %v5436_v32  ;;  %v995_v63 = vld [vmem:[#allocation7 + $0x728] sm:$0xff] }
 0x164   : > { %2857 = vmatprep.mubr.f32.mxu0 %v5436_v32  ;;  %4666 = vmatprep.subr.bf16.mxu1 %v4665_v46  ;;  %v999_v46 = vld [vmem:[#allocation7 + $0x748] sm:$0xff]  ;;  %v4856_v52 = vpack.c.bf16 %v995_v63, %v990_v6 }
 0x165   : > { %2088 = vmatmul.mubr.f32.gmra.mrb[66].mxu1 %v5437_v62  ;;  %4840 = vmatprep.subr.bf16.mxu0 %v5778_v22  ;;  %v4689_v24 = vpack.c.bf16 %v1004_v4, %v999_v46  ;;  %v1003_v32 = vld [vmem:[#allocation7 + $0x768] sm:$0xff]  ;;  %v1040_v46 = vld [vmem:[#allocation7 + $0x890] sm:$0xff] }
 0x166   : > { %2858 = vmatmul.mubr.f32.gmra.mrb[66].mxu0 %v5437_v62  ;;  %2093 = vmatprep.mubr.f32.mxu1 %v5438_v0  ;;  %v5448_v62 = vld [vmem:[%s5955_s30 + $0x158] sm:$0xff]  ;;  %v4691_v44 = vpack.c.bf16 %v1003_v32, %v998_v54  ;;  %v1043_v63 = vld [vmem:[#allocation7 + $0x8a8] sm:$0xff] }
 0x167   : > { %2862 = vmatprep.mubr.f32.mxu0 %v5438_v0  ;;  %4668 = vmatpush1.bf16.msra.mxu1 %v4667_v57  ;;  %v1000_v57 = vld [vmem:[#allocation7 + $0x750] sm:$0xff]  ;;  %v4693_v0 = vpack.c.bf16 %v1014_v59, %v1009_v19  ;;  %v5456_v54 = vld [vmem:[%s5955_s30 + $0x218] sm:$0xff] }
 0x168   : > { %4842 = vmatpush1.bf16.msra.mxu0 %v4841_v58  ;;  %4670 = vmatprep.subr.bf16.mxu1 %v4669_v13  ;;  %v5447_v13 = vld [vmem:[%s5955_s30 + $0x120] sm:$0xff]  ;;  %v4859_v50 = vpack.c.bf16 %v1005_v25, %v1000_v57  ;;  %v1048_v19 = vld [vmem:[#allocation7 + $0x8d0] sm:$0xff]  ;;  %v1053_v59 = vld [vmem:[#allocation7 + $0x8f8] sm:$0xff] }
 0x169   : > { %2094 = vmatmul.mubr.f32.gmra.mrb[68].mxu1 %v5439_v60  ;;  %4843 = vmatprep.subr.bf16.mxu0 %v5778_v22 }
 0x16a   : > { %2863 = vmatmul.mubr.f32.gmra.mrb[68].mxu0 %v5439_v60  ;;  %2099 = vmatprep.mubr.f32.mxu1 %v5440_v38  ;;  %v1019_v60 = vld [vmem:[#allocation7 + $0x7e8] sm:$0xff] }
 0x16b   : > { %2867 = vmatprep.mubr.f32.mxu0 %v5440_v38  ;;  %4672 = vmatpush1.bf16.msra.mxu1 %v4671_v1  ;;  %v1008_v1 = vld [vmem:[#allocation7 + $0x790] sm:$0xff] }
 0x16c   : > { %4845 = vmatpush1.bf16.msra.mxu0 %v4844_v2  ;;  %4674 = vmatprep.subr.bf16.mxu1 %v4673_v5  ;;  %v1013_v2 = vld [vmem:[#allocation7 + $0x7b8] sm:$0xff]  ;;  %v1010_v5 = vld [vmem:[#allocation7 + $0x7a0] sm:$0xff] }
 0x16d   : > { %2100 = vmatmul.mubr.f32.gmra.mrb[70].mxu1 %v5441_v23  ;;  %4846 = vmatprep.subr.bf16.mxu0 %v5778_v22  ;;  %v4695_v10 = vpack.c.bf16 %v1013_v2, %v1008_v1  ;;  %v1059_v1 = vld [vmem:[#allocation7 + $0x928] sm:$0xff]  ;;  %v1064_v2 = vld [vmem:[#allocation7 + $0x950] sm:$0xff] }
 0x16e   : > { %2868 = vmatmul.mubr.f32.gmra.mrb[70].mxu0 %v5441_v23  ;;  %2105 = vmatprep.mubr.f32.mxu1 %v5442_v21  ;;  %v5451_v23 = vld [vmem:[%s5955_s30 + $0x180] sm:$0xff] }
 0x16f   : > { %2872 = vmatprep.mubr.f32.mxu0 %v5442_v21  ;;  %4676 = vmatpush1.bf16.msra.mxu1 %v4675_v11  ;;  %v4862_v11 = vpack.c.bf16 %v1015_v33, %v1010_v5  ;;  %v5452_v21 = vld [vmem:[%s5955_s30 + $0x1b8] sm:$0xff]  ;;  %v5458_v5 = vld [vmem:[%s5955_s30 + $0x248] sm:$0xff] }
 0x170   : > { %4848 = vmatpush1.bf16.msra.mxu0 %v4847_v15  ;;  %4678 = vmatprep.subr.bf16.mxu1 %v4677_v18  ;;  %v4697_v15 = vpack.c.bf16 %v1024_v9, %v1019_v60  ;;  %v1018_v18 = vld [vmem:[#allocation7 + $0x7e0] sm:$0xff]  ;;  %v4713_v9 = vpack.c.bf16 %v1064_v2, %v1059_v1 }
 0x171   : > { %2106 = vmatmul.mubr.f32.gmra.mrb[72].mxu1 %v5443_v55  ;;  %4849 = vmatprep.subr.bf16.mxu0 %v5778_v22 }
 0x172   : > { %2873 = vmatmul.mubr.f32.gmra.mrb[72].mxu0 %v5443_v55  ;;  %2111 = vmatprep.mubr.f32.mxu1 %v5444_v53  ;;  %v1030_v55 = vld [vmem:[#allocation7 + $0x840] sm:$0xff] }
 0x173   : > { %2877 = vmatprep.mubr.f32.mxu0 %v5444_v53  ;;  %4680 = vmatpush1.bf16.msra.mxu1 %v4679_v36  ;;  %v4699_v36 = vpack.c.bf16 %v1023_v43, %v1018_v18  ;;  %v1039_v53 = vld [vmem:[#allocation7 + $0x888] sm:$0xff]  ;;  %v4868_v40 = vpack.c.bf16 %v1035_v56, %v1030_v55  ;;  %v5459_v18 = vld [vmem:[%s5955_s30 + $0x240] sm:$0xff]  ;;  %v1065_v43 = vld [vmem:[#allocation7 + $0x958] sm:$0xff] }
 0x174   : > { %v6317_v34 = vpop.f32.mrb[0].mxu1  ;;  %4851 = vmatpush1.bf16.msra.mxu0 %v4850_v26  ;;  %4682 = vmatprep.subr.bf16.mxu1 %v4681_v28  ;;  %v4865_v28 = vpack.c.bf16 %v1025_v20, %v1020_v41  ;;  %v1069_v41 = vld [vmem:[#allocation7 + $0x978] sm:$0xff]  ;;  %v5461_v55 = vld [vmem:[%s5955_s30 + $0x270] sm:$0xff]  ;;  %v1079_v56 = vld [vmem:[#allocation7 + $0x9c8] sm:$0xff] }
 0x175   : > { %v6319_v45 = vpop.f32.mrb[1].mxu1  ;;  %2112 = vmatmul.mubr.f32.gmra.mrb[74].mxu1 %v5445_v14  ;;  %4852 = vmatprep.subr.bf16.mxu0 %v5778_v22  ;;  %v5460_v20 = vld [vmem:[%s5955_s30 + $0x278] sm:$0xff] }
 0x176   : > { %2878 = vmatmul.mubr.f32.gmra.mrb[74].mxu0 %v5445_v14  ;;  %2117 = vmatprep.mubr.f32.mxu1 %v5446_v17  ;;  %v1038_v14 = vld [vmem:[#allocation7 + $0x880] sm:$0xff] }
 0x177   : > { %2882 = vmatprep.mubr.f32.mxu0 %v5446_v17  ;;  %4684 = vmatpush1.bf16.msra.mxu1 %v4683_v12  ;;  %v1044_v12 = vld [vmem:[#allocation7 + $0x8b0] sm:$0xff]  ;;  %v5455_v17 = vld [vmem:[%s5955_s30 + $0x1e0] sm:$0xff]  ;;  %v4707_v32 = vpack.c.bf16 %v1043_v63, %v1038_v14  ;;  %v1083_v63 = vld [vmem:[#allocation7 + $0x9e8] sm:$0xff] }
 0x178   : > { %v6324_v49 = vpop.f32.mrb[2].mxu1  ;;  %4854 = vmatpush1.bf16.msra.mxu0 %v4853_v35  ;;  %4686 = vmatprep.subr.bf16.mxu1 %v4685_v37  ;;  %v5454_v35 = vld [vmem:[%s5955_s30 + $0x1e8] sm:$0xff]  ;;  %v4703_v37 = vpack.c.bf16 %v1033_v51, %v1028_v29  ;;  %v4705_v6 = vpack.c.bf16 %v1044_v12, %v1039_v53  ;;  %v1070_v29 = vld [vmem:[#allocation7 + $0x980] sm:$0xff]  ;;  %v1084_v53 = vld [vmem:[#allocation7 + $0x9f0] sm:$0xff] }
 0x179   : > { %v6326_v58 = vpop.f32.mrb[3].mxu1  ;;  %2118 = vmatmul.mubr.f32.gmra.mrb[76].mxu1 %v5447_v13  ;;  %4855 = vmatprep.subr.bf16.mxu0 %v5778_v22  ;;  %v5462_v12 = vld [vmem:[%s5955_s30 + $0x2a8] sm:$0xff]  ;;  %v1078_v14 = vld [vmem:[#allocation7 + $0x9c0] sm:$0xff] }
 0x17a   : > { %2883 = vmatmul.mubr.f32.gmra.mrb[76].mxu0 %v5447_v13  ;;  %2123 = vmatprep.mubr.f32.mxu1 %v5448_v62 }
 0x17b   : > { %2887 = vmatprep.mubr.f32.mxu0 %v5448_v62  ;;  %4688 = vmatpush1.bf16.msra.mxu1 %v4687_v48  ;;  %v1045_v48 = vld [vmem:[#allocation7 + $0x8b8] sm:$0xff]  ;;  %v1050_v62 = vld [vmem:[#allocation7 + $0x8e0] sm:$0xff] }
 0x17c   : > { %v6331_v30 = vpop.f32.mrb[4].mxu1  ;;  %4857 = vmatpush1.bf16.msra.mxu0 %v4856_v52  ;;  %4690 = vmatprep.subr.bf16.mxu1 %v4689_v24  ;;  %v1049_v52 = vld [vmem:[#allocation7 + $0x8d8] sm:$0xff]  ;;  %v1054_v24 = vld [vmem:[#allocation7 + $0x900] sm:$0xff]  ;;  %v4871_v13 = vpack.c.bf16 %v1045_v48, %v1040_v46  ;;  %v1080_v46 = vld [vmem:[#allocation7 + $0x9d0] sm:$0xff] }
 0x17d   : > { %v6333_v27 = vpop.f32.mrb[5].mxu1  ;;  %2124 = vmatmul.mubr.f32.gmra.mrb[78].mxu1 %v5449_v8  ;;  %4858 = vmatprep.subr.bf16.mxu0 %v5778_v22  ;;  %v4709_v25 = vpack.c.bf16 %v1054_v24, %v1049_v52  ;;  %v5463_v48 = vld [vmem:[%s5955_s30 + $0x2a0] sm:$0xff]  ;;  %v1085_v52 = vld [vmem:[#allocation7 + $0x9f8] sm:$0xff] }
 0x17e   : > { %2888 = vmatmul.mubr.f32.gmra.mrb[78].mxu0 %v5449_v8  ;;  %2129 = vmatprep.mubr.f32.mxu1 %v5450_v3  ;;  %v4711_v8 = vpack.c.bf16 %v1053_v59, %v1048_v19  ;;  %v1089_v24 = vld [vmem:[#allocation7 + $0xa18] sm:$0xff]  ;;  %v4883_v19 = vpack.c.bf16 %v1085_v52, %v1080_v46  ;;  %v5479_v46 = vld [vmem:[%s5955_s30 + $0x420] sm:$0xff] }
 0x17f   : > { %2892 = vmatprep.mubr.f32.mxu0 %v5450_v3  ;;  %4692 = vmatpush1.bf16.msra.mxu1 %v4691_v44  ;;  %v1058_v3 = vld [vmem:[#allocation7 + $0x920] sm:$0xff] }
 0x180   : > { %v6338_v38 = vpop.f32.mrb[6].mxu1  ;;  %4860 = vmatpush1.bf16.msra.mxu0 %v4859_v50  ;;  %4694 = vmatprep.subr.bf16.mxu1 %v4693_v0  ;;  %v5457_v50 = vld [vmem:[%s5955_s30 + $0x210] sm:$0xff]  ;;  %v1055_v0 = vld [vmem:[#allocation7 + $0x908] sm:$0xff] }
 0x181   : > { %v6340_v16 = vpop.f32.mrb[7].mxu1  ;;  %2130 = vmatmul.mubr.f32.gmra.mrb[80].mxu1 %v5451_v23  ;;  %4861 = vmatprep.subr.bf16.mxu0 %v5778_v22  ;;  %v4874_v60 = vpack.c.bf16 %v1055_v0, %v1050_v62  ;;  %v5466_v0 = vld [vmem:[%s5955_s30 + $0x308] sm:$0xff] }
 0x182   : > { %2893 = vmatmul.mubr.f32.gmra.mrb[80].mxu0 %v5451_v23  ;;  %2135 = vmatprep.mubr.f32.mxu1 %v5452_v21  ;;  %v1074_v23 = vld [vmem:[#allocation7 + $0x9a0] sm:$0xff] }
 0x183   : > { %2897 = vmatprep.mubr.f32.mxu0 %v5452_v21  ;;  %4696 = vmatpush1.bf16.msra.mxu1 %v4695_v10  ;;  %v1063_v10 = vld [vmem:[#allocation7 + $0x948] sm:$0xff] }
 0x184   : > { %v6345_v26 = vpop.f32.mrb[8].mxu1  ;;  %4863 = vmatpush1.bf16.msra.mxu0 %v4862_v11  ;;  %4698 = vmatprep.subr.bf16.mxu1 %v4697_v15  ;;  %v1060_v11 = vld [vmem:[#allocation7 + $0x930] sm:$0xff]  ;;  %v4715_v47 = vpack.c.bf16 %v1063_v10, %v1058_v3  ;;  %v5470_v10 = vld [vmem:[%s5955_s30 + $0x368] sm:$0xff] }
 0x185   : > { %v6347_v31 = vpop.f32.mrb[9].mxu1  ;;  %2136 = vmatmul.mubr.f32.gmra.mrb[82].mxu1 %v5453_v61  ;;  %4864 = vmatprep.subr.bf16.mxu0 %v5778_v22  ;;  %v4877_v21 = vpack.c.bf16 %v1065_v43, %v1060_v11  ;;  %v5469_v3 = vld [vmem:[%s5955_s30 + $0x330] sm:$0xff]  ;;  %v5471_v43 = vld [vmem:[%s5955_s30 + $0x360] sm:$0xff] }
 0x186   : > { %2898 = vmatmul.mubr.f32.gmra.mrb[82].mxu0 %v5453_v61  ;;  %2141 = vmatprep.mubr.f32.mxu1 %v5454_v35  ;;  %v1075_v61 = vld [vmem:[#allocation7 + $0x9a8] sm:$0xff] }
 0x187   : > { %2902 = vmatprep.mubr.f32.mxu0 %v5454_v35  ;;  %4700 = vmatpush1.bf16.msra.mxu1 %v4699_v36  ;;  %v4717_v36 = vpack.c.bf16 %v1074_v23, %v1069_v41  ;;  %v5472_v41 = vld [vmem:[%s5955_s30 + $0x398] sm:$0xff] }
 0x188   : > { %v6352_v39 = vpop.f32.mrb[10].mxu1  ;;  %4866 = vmatpush1.bf16.msra.mxu0 %v4865_v28  ;;  %4702 = vmatprep.subr.bf16.mxu1 %v4701_v42  ;;  %v1068_v28 = vld [vmem:[#allocation7 + $0x970] sm:$0xff]  ;;  %v1073_v42 = vld [vmem:[#allocation7 + $0x998] sm:$0xff] }
 0x189   : > { %v6354_v4 = vpop.f32.mrb[11].mxu1  ;;  %2142 = vmatmul.mubr.f32.gmra.mrb[84].mxu1 %v5455_v17  ;;  %4867 = vmatprep.subr.bf16.mxu0 %v5778_v22  ;;  %v4719_v35 = vpack.c.bf16 %v1073_v42, %v1068_v28  ;;  %v5475_v42 = vld [vmem:[%s5955_s30 + $0x3c0] sm:$0xff] }
 0x18a   : > { %2903 = vmatmul.mubr.f32.gmra.mrb[84].mxu0 %v5455_v17  ;;  %2147 = vmatprep.mubr.f32.mxu1 %v5456_v54 }
 0x18b   : > { %2907 = vmatprep.mubr.f32.mxu0 %v5456_v54  ;;  %4704 = vmatpush1.bf16.msra.mxu1 %v4703_v37  ;;  %v1094_v54 = vld [vmem:[#allocation7 + $0xa40] sm:$0xff] }
 0x18c   : > { %v6359_v57 = vpop.f32.mrb[12].mxu1  ;;  %4869 = vmatpush1.bf16.msra.mxu0 %v4868_v40  ;;  %4706 = vmatprep.subr.bf16.mxu1 %v4705_v6  ;;  %v4880_v40 = vpack.c.bf16 %v1075_v61, %v1070_v29  ;;  %v4721_v6 = vpack.c.bf16 %v1084_v53, %v1079_v56  ;;  %v4725_v59 = vpack.c.bf16 %v1094_v54, %v1089_v24  ;;  %v5476_v29 = vld [vmem:[%s5955_s30 + $0x3f8] sm:$0xff]  ;;  %v6426_v61 = vstv %s3946_s21  ;;  %v5477_v56 = vld [vmem:[%s5955_s30 + $0x3f0] sm:$0xff] }
 0x18d   : > { %v6361_v44 = vpop.f32.mrb[13].mxu1  ;;  %2148 = vmatmul.mubr.f32.gmra.mrb[86].mxu1 %v5457_v50  ;;  %4870 = vmatprep.subr.bf16.mxu0 %v5778_v22 }
 0x18e   : > { %2908 = vmatmul.mubr.f32.gmra.mrb[86].mxu0 %v5457_v50  ;;  %2153 = vmatprep.mubr.f32.mxu1 %v5458_v5  ;;  %v5465_v50 = vld [vmem:[%s5955_s30 + $0x2d0] sm:$0xff] }
 0x18f   : > { %2912 = vmatprep.mubr.f32.mxu0 %v5458_v5  ;;  %4708 = vmatpush1.bf16.msra.mxu1 %v4707_v32  ;;  %v5464_v32 = vld [vmem:[%s5955_s30 + $0x2d8] sm:$0xff]  ;;  %v5467_v5 = vld [vmem:[%s5955_s30 + $0x300] sm:$0xff] }
 0x190   : > { %v6366_v33 = vpop.f32.mrb[14].mxu1  ;;  %4872 = vmatpush1.bf16.msra.mxu0 %v4871_v13  ;;  %4710 = vmatprep.subr.bf16.mxu1 %v4709_v25  ;;  %v4723_v13 = vpack.c.bf16 %v1083_v63, %v1078_v14 }
 0x191   : > { %v6368_v15 = vpop.f32.mrb[15].mxu1  ;;  %2154 = vmatmul.mubr.f32.gmra.mrb[88].mxu1 %v5459_v18  ;;  %4873 = vmatprep.subr.bf16.mxu0 %v5778_v22 }
 0x192   : > { %2913 = vmatmul.mubr.f32.gmra.mrb[88].mxu0 %v5459_v18  ;;  %2159 = vmatprep.mubr.f32.mxu1 %v5460_v20 }
 0x193   : > { %2917 = vmatprep.mubr.f32.mxu0 %v5460_v20  ;;  %4712 = vmatpush1.bf16.msra.mxu1 %v4711_v8  ;;  %v5468_v8 = vld [vmem:[%s5955_s30 + $0x338] sm:$0xff] }
 0x194   : > { %v6373_v7 = vpop.f32.mrb[16].mxu1  ;;  %4875 = vmatpush1.bf16.msra.mxu0 %v4874_v60  ;;  %4714 = vmatprep.subr.bf16.mxu1 %v4713_v9 }
 0x195   : > { %v6375_v51 = vpop.f32.mrb[17].mxu1  ;;  %2160 = vmatmul.mubr.f32.gmra.mrb[90].mxu1 %v5461_v55  ;;  %4876 = vmatprep.subr.bf16.mxu0 %v5778_v22 }
 0x196   : > { %2918 = vmatmul.mubr.f32.gmra.mrb[90].mxu0 %v5461_v55  ;;  %2165 = vmatprep.mubr.f32.mxu1 %v5462_v12 }
 0x197   : > { %2922 = vmatprep.mubr.f32.mxu0 %v5462_v12  ;;  %4716 = vmatpush1.bf16.msra.mxu1 %v4715_v47  ;;  %v5473_v47 = vld [vmem:[%s5955_s30 + $0x390] sm:$0xff] }
 0x198   : > { %v6380_v37 = vpop.f32.mrb[18].mxu1  ;;  %4878 = vmatpush1.bf16.msra.mxu0 %v4877_v21  ;;  %4718 = vmatprep.subr.bf16.mxu1 %v4717_v36  ;;  %v5474_v21 = vld [vmem:[%s5955_s30 + $0x3c8] sm:$0xff] }
 0x199   : > { %v6382_v17 = vpop.f32.mrb[19].mxu1  ;;  %2166 = vmatmul.mubr.f32.gmra.mrb[92].mxu1 %v5463_v48  ;;  %4879 = vmatprep.subr.bf16.mxu0 %v5778_v22 }
 0x19a   : > { %2923 = vmatmul.mubr.f32.gmra.mrb[92].mxu0 %v5463_v48  ;;  %2171 = vmatprep.mubr.f32.mxu1 %v5464_v32 }
 0x19b   : > { %2927 = vmatprep.mubr.f32.mxu0 %v5464_v32  ;;  %4720 = vmatpush1.bf16.msra.mxu1 %v4719_v35  ;;  %v5478_v35 = vld [vmem:[%s5955_s30 + $0x428] sm:$0xff] }
 0x19c   : > { %v6387_v25 = vpop.f32.mrb[20].mxu1  ;;  %4881 = vmatpush1.bf16.msra.mxu0 %v4880_v40  ;;  %4722 = vmatprep.subr.bf16.mxu1 %v4721_v6 }
 0x19d   : > { %v6389_v62 = vpop.f32.mrb[21].mxu1  ;;  %2172 = vmatmul.mubr.f32.gmra.mrb[94].mxu1 %v5465_v50  ;;  %4882 = vmatprep.subr.bf16.mxu0 %v5778_v22 }
 0x19e   : > { %2928 = vmatmul.mubr.f32.gmra.mrb[94].mxu0 %v5465_v50  ;;  %2177 = vmatprep.mubr.f32.mxu1 %v5466_v0 }
 0x19f   : > { %2932 = vmatprep.mubr.f32.mxu0 %v5466_v0  ;;  %4724 = vmatpush1.bf16.msra.mxu1 %v4723_v13  ;;  %v5481_v13 = vld [vmem:[%s5955_s30 + $0x450] sm:$0xff] }
 0x1a0   : > { %v6394_v1 = vpop.f32.mrb[22].mxu1  ;;  %4884 = vmatpush1.bf16.msra.mxu0 %v4883_v19  ;;  %4726 = vmatprep.subr.bf16.mxu1 %v4725_v59  ;;  %v5482_v59 = vld [vmem:[%s5955_s30 + $0x488] sm:$0xff] }
 0x1a1   : > { %v6396_v2 = vpop.f32.mrb[23].mxu1  ;;  %2178 = vmatmul.mubr.f32.gmra.mrb[96].mxu1 %v5467_v5  ;;  %4885 = vmatprep.subr.bf16.mxu0 %v5778_v22 }
 0x1a2   : > { %2933 = vmatmul.mubr.f32.gmra.mrb[96].mxu0 %v5467_v5  ;;  %2183 = vmatprep.mubr.f32.mxu1 %v5468_v8 }
 0x1a3   : > { %2937 = vmatprep.mubr.f32.mxu0 %v5468_v8  ;;  %v5483_v8 = vld [vmem:[%s5955_s30 + $0x480] sm:$0xff] }
 0x1a4   : > { %v6401_v60 = vpop.f32.mrb[24].mxu1 }
 0x1a5   : > { %v6403_v9 = vpop.f32.mrb[25].mxu1  ;;  %2184 = vmatmul.mubr.f32.gmra.mrb[98].mxu1 %v5469_v3 }
 0x1a6   : > { %2938 = vmatmul.mubr.f32.gmra.mrb[98].mxu0 %v5469_v3  ;;  %2189 = vmatprep.mubr.f32.mxu1 %v5470_v10 }
 0x1a7   : > { %2942 = vmatprep.mubr.f32.mxu0 %v5470_v10  ;;  %v5484_v10 = vld [vmem:[%s5955_s30 + $0x4b8] sm:$0xff] }
 0x1a8   : > { %v6407_v11 = vpop.f32.mrb[26].mxu1 }
 0x1a9   : > { %v6409_v18 = vpop.f32.mrb[27].mxu1  ;;  %2190 = vmatmul.mubr.f32.gmra.mrb[100].mxu1 %v5471_v43 }
 0x1aa   : > { %2943 = vmatmul.mubr.f32.gmra.mrb[100].mxu0 %v5471_v43  ;;  %2195 = vmatprep.mubr.f32.mxu1 %v5472_v41 }
 0x1ab   : > { %2947 = vmatprep.mubr.f32.mxu0 %v5472_v41 }
 0x1ac   : > { %v6413_v23 = vpop.f32.mrb[28].mxu1 }
 0x1ad   : > { %v6415_v20 = vpop.f32.mrb[29].mxu1  ;;  %2196 = vmatmul.mubr.f32.gmra.mrb[102].mxu1 %v5473_v47 }
 0x1ae   : > { %2948 = vmatmul.mubr.f32.gmra.mrb[102].mxu0 %v5473_v47  ;;  %2201 = vmatprep.mubr.f32.mxu1 %v5474_v21 }
 0x1af   : > { %2952 = vmatprep.mubr.f32.mxu0 %v5474_v21  ;;  %v5485_v21 = vld [vmem:[%s5955_s30 + $0x4b0] sm:$0xff] }
 0x1b0   : > { %v6419_v36 = vpop.f32.mrb[30].mxu1 }
 0x1b1   : > { %v6421_v28 = vpop.f32.mrb[31].mxu1  ;;  %2202 = vmatmul.mubr.f32.gmra.mrb[104].mxu1 %v5475_v42 }
 0x1b2   : > { %2953 = vmatmul.mubr.f32.gmra.mrb[104].mxu0 %v5475_v42  ;;  %2207 = vmatprep.mubr.f32.mxu1 %v5476_v29 }
 0x1b3   : > { %2957 = vmatprep.mubr.f32.mxu0 %v5476_v29  ;;  %v5486_v29 = vld [vmem:[%s5955_s30 + $0x4e8] sm:$0xff] }
 0x1b5   : > { %v1826_v55 = vpop.f32.mrb[0].mxu0  ;;  %2208 = vmatmul.mubr.f32.gmra.mrb[106].mxu1 %v5477_v56 }
 0x1b6   : > { %v4965_v53 = vadd.f32 %v1826_v55, %v6317_v34  ;;  %v1828_v12 = vpop.f32.mrb[1].mxu0  ;;  %2958 = vmatmul.mubr.f32.gmra.mrb[106].mxu0 %v5477_v56  ;;  %2213 = vmatprep.mubr.f32.mxu1 %v5478_v35 }
 0x1b7   : > { %v4966_v40 = vadd.f32 %v1828_v12, %v6319_v45  ;;  %2962 = vmatprep.mubr.f32.mxu0 %v5478_v35  ;;  %v5480_v45 = vld [vmem:[%s5955_s30 + $0x458] sm:$0xff]  ;;  %v5487_v12 = vld [vmem:[%s5955_s30 + $0x4e0] sm:$0xff] }
 0x1b8   : > { %v3948_v6 = vmul.f32 %v4965_v53, %v6426_v61 }
 0x1b9   : > { %v3949_v14 = vmul.f32 %v4966_v40, %v6426_v61  ;;  %v1832_v63 = vpop.f32.mrb[2].mxu0  ;;  %2214 = vmatmul.mubr.f32.gmra.mrb[108].mxu1 %v5479_v46  ;;  %v5488_v40 = vld [vmem:[%s5955_s30 + $0x518] sm:$0xff] }
 0x1ba   : > { %4108 = vst [vmem:[%s6435_s25] sm:$0xff] %v3948_v6  ;;  %v4967_v34 = vadd.f32 %v1832_v63, %v6324_v49  ;;  %v1834_v48 = vpop.f32.mrb[3].mxu0  ;;  %2963 = vmatmul.mubr.f32.gmra.mrb[108].mxu0 %v5479_v46  ;;  %2219 = vmatprep.mubr.f32.mxu1 %v5480_v45  ;;  %v5489_v46 = vld [vmem:[%s5955_s30 + $0x510] sm:$0xff] }
 0x1bb   : > { %4109 = vst [vmem:[%s6435_s25 + $0x8] sm:$0xff] %v3949_v14  ;;  %v4968_v52 = vadd.f32 %v1834_v48, %v6326_v58  ;;  %2967 = vmatprep.mubr.f32.mxu0 %v5480_v45  ;;  %v5490_v48 = vld [vmem:[%s5955_s30 + $0x548] sm:$0xff] }
 0x1bc   : > { %v3953_v24 = vmul.f32 %v4967_v34, %v6426_v61 }
 0x1bd   : > { %v3954_v54 = vmul.f32 %v4968_v52, %v6426_v61  ;;  %v1838_v32 = vpop.f32.mrb[4].mxu0  ;;  %2220 = vmatmul.mubr.f32.gmra.mrb[110].mxu1 %v5481_v13 }
 0x1be   : > { %4113 = vst [vmem:[%s6435_s25 + $0x28] sm:$0xff] %v3953_v24  ;;  %v4969_v49 = vadd.f32 %v1838_v32, %v6331_v30  ;;  %v1840_v19 = vpop.f32.mrb[5].mxu0  ;;  %2968 = vmatmul.mubr.f32.gmra.mrb[110].mxu0 %v5481_v13  ;;  %2225 = vmatprep.mubr.f32.mxu1 %v5482_v59  ;;  %v5492_v13 = vld [vmem:[%s5955_s30 + $0x578] sm:$0xff] }
 0x1bf   : > { %4114 = vst [vmem:[%s6435_s25 + $0x30] sm:$0xff] %v3954_v54  ;;  %v4970_v58 = vadd.f32 %v1840_v19, %v6333_v27  ;;  %2972 = vmatprep.mubr.f32.mxu0 %v5482_v59  ;;  %v5491_v54 = vld [vmem:[%s5955_s30 + $0x540] sm:$0xff] }
 0x1c0   : > { %v3958_v50 = vmul.f32 %v4969_v49, %v6426_v61 }
 0x1c1   : > { %v3959_v0 = vmul.f32 %v4970_v58, %v6426_v61  ;;  %v1844_v5 = vpop.f32.mrb[6].mxu0  ;;  %2226 = vmatmul.mubr.f32.gmra.mrb[112].mxu1 %v5483_v8  ;;  %v5493_v58 = vld [vmem:[%s5955_s30 + $0x570] sm:$0xff] }
 0x1c2   : > { %4118 = vst [vmem:[%s6435_s25 + $0x50] sm:$0xff] %v3958_v50  ;;  %v4971_v30 = vadd.f32 %v1844_v5, %v6338_v38  ;;  %v1846_v3 = vpop.f32.mrb[7].mxu0  ;;  %2973 = vmatmul.mubr.f32.gmra.mrb[112].mxu0 %v5483_v8  ;;  %2231 = vmatprep.mubr.f32.mxu1 %v5484_v10 }
 0x1c3   : > { %4119 = vst [vmem:[%s6435_s25 + $0x58] sm:$0xff] %v3959_v0  ;;  %v4972_v27 = vadd.f32 %v1846_v3, %v6340_v16  ;;  %2977 = vmatprep.mubr.f32.mxu0 %v5484_v10  ;;  %v5494_v0 = vld [vmem:[%s5955_s30 + $0x5a8] sm:$0xff]  ;;  %v5495_v3 = vld [vmem:[%s5955_s30 + $0x5a0] sm:$0xff] }
 0x1c4   : > { %v3963_v43 = vmul.f32 %v4971_v30, %v6426_v61 }
 0x1c5   : > { %v3964_v41 = vmul.f32 %v4972_v27, %v6426_v61  ;;  %v1850_v47 = vpop.f32.mrb[8].mxu0  ;;  %2232 = vmatmul.mubr.f32.gmra.mrb[114].mxu1 %v5485_v21  ;;  %v5496_v27 = vld [vmem:[%s5955_s30 + $0x5d8] sm:$0xff] }
 0x1c6   : > { %4123 = vst [vmem:[%s6435_s25 + $0x78] sm:$0xff] %v3963_v43  ;;  %v4973_v38 = vadd.f32 %v1850_v47, %v6345_v26  ;;  %v1852_v42 = vpop.f32.mrb[9].mxu0  ;;  %2978 = vmatmul.mubr.f32.gmra.mrb[114].mxu0 %v5485_v21  ;;  %2237 = vmatprep.mubr.f32.mxu1 %v5486_v29  ;;  %v1088_v43 = vld [vmem:[#allocation7 + $0xa10] sm:$0xff]  ;;  %v1090_v21 = vld [vmem:[#allocation7 + $0xa20] sm:$0xff] }
 0x1c7   : > { %4124 = vst [vmem:[%s6435_s25 + $0x80] sm:$0xff] %v3964_v41  ;;  %v4974_v16 = vadd.f32 %v1852_v42, %v6347_v31  ;;  %2982 = vmatprep.mubr.f32.mxu0 %v5486_v29  ;;  %v1093_v41 = vld [vmem:[#allocation7 + $0xa38] sm:$0xff]  ;;  %v5497_v29 = vld [vmem:[%s5955_s30 + $0x5d0] sm:$0xff] }
 0x1c8   : > { %v3968_v55 = vmul.f32 %v4973_v38, %v6426_v61  ;;  %v1095_v38 = vld [vmem:[#allocation7 + $0xa48] sm:$0xff] }
 0x1c9   : > { %v3969_v56 = vmul.f32 %v4974_v16, %v6426_v61  ;;  %v1856_v53 = vpop.f32.mrb[10].mxu0  ;;  %2238 = vmatmul.mubr.f32.gmra.mrb[116].mxu1 %v5487_v12  ;;  %v1099_v16 = vld [vmem:[#allocation7 + $0xa68] sm:$0xff] }
 0x1ca   : > { %4128 = vst [vmem:[%s6435_s25 + $0xa0] sm:$0xff] %v3968_v55  ;;  %v4975_v26 = vadd.f32 %v1856_v53, %v6352_v39  ;;  %v1858_v35 = vpop.f32.mrb[11].mxu0  ;;  %2983 = vmatmul.mubr.f32.gmra.mrb[116].mxu0 %v5487_v12  ;;  %2243 = vmatprep.mubr.f32.mxu1 %v5488_v40  ;;  %v1104_v55 = vld [vmem:[#allocation7 + $0xa90] sm:$0xff]  ;;  %v5498_v53 = vld [vmem:[%s5955_s30 + $0x18] sm:$0xff]  ;;  %v4727_v12 = vpack.c.bf16 %v1093_v41, %v1088_v43 }
 0x1cb   : > { %4129 = vst [vmem:[%s6435_s25 + $0xa8] sm:$0xff] %v3969_v56  ;;  %v4976_v31 = vadd.f32 %v1858_v35, %v6354_v4  ;;  %2987 = vmatprep.mubr.f32.mxu0 %v5488_v40  ;;  %v4886_v35 = vpack.c.bf16 %v1095_v38, %v1090_v21  ;;  %v1129_v21 = vld [vmem:[#allocation7 + $0xb58] sm:$0xff]  ;;  %v1134_v38 = vld [vmem:[#allocation7 + $0xb80] sm:$0xff] }
 0x1cc   : > { %v3973_v6 = vmul.f32 %v4975_v26, %v6426_v61 }
 0x1cd   : > { %v3974_v14 = vmul.f32 %v4976_v31, %v6426_v61  ;;  %v1862_v63 = vpop.f32.mrb[12].mxu0  ;;  %2244 = vmatmul.mubr.f32.gmra.mrb[118].mxu1 %v5489_v46  ;;  %v4729_v31 = vpack.c.bf16 %v1104_v55, %v1099_v16 }
 0x1ce   : > { %4133 = vst [vmem:[%s6435_s25 + $0xc8] sm:$0xff] %v3973_v6  ;;  %v4977_v39 = vadd.f32 %v1862_v63, %v6359_v57  ;;  %v1864_v34 = vpop.f32.mrb[13].mxu0  ;;  %2988 = vmatmul.mubr.f32.gmra.mrb[118].mxu0 %v5489_v46  ;;  %2249 = vmatprep.mubr.f32.mxu1 %v5490_v48  ;;  %v1098_v6 = vld [vmem:[#allocation7 + $0xa60] sm:$0xff]  ;;  %v1100_v63 = vld [vmem:[#allocation7 + $0xa70] sm:$0xff] }
 0x1cf   : > { %4134 = vst [vmem:[%s6435_s25 + $0xd0] sm:$0xff] %v3974_v14  ;;  %v4978_v4 = vadd.f32 %v1864_v34, %v6361_v44  ;;  %2992 = vmatprep.mubr.f32.mxu0 %v5490_v48  ;;  %v1103_v14 = vld [vmem:[#allocation7 + $0xa88] sm:$0xff]  ;;  %v1105_v34 = vld [vmem:[#allocation7 + $0xa98] sm:$0xff] }
 0x1d0   : > { %v3978_v45 = vmul.f32 %v4977_v39, %v6426_v61  ;;  %v5499_v39 = vld [vmem:[%s5955_s30 + $0x10] sm:$0xff]  ;;  %v1109_v48 = vld [vmem:[#allocation7 + $0xab8] sm:$0xff] }
 0x1d1   : > { %v3979_v52 = vmul.f32 %v4978_v4, %v6426_v61  ;;  %v1868_v24 = vpop.f32.mrb[14].mxu0  ;;  %2250 = vmatmul.mubr.f32.gmra.mrb[120].mxu1 %v5491_v54  ;;  %v1114_v4 = vld [vmem:[#allocation7 + $0xae0] sm:$0xff] }
 0x1d2   : > { %4138 = vst [vmem:[%s6435_s25 + $0xf0] sm:$0xff] %v3978_v45  ;;  %v4979_v57 = vadd.f32 %v1868_v24, %v6366_v33  ;;  %v1870_v32 = vpop.f32.mrb[15].mxu0  ;;  %2993 = vmatmul.mubr.f32.gmra.mrb[120].mxu0 %v5491_v54  ;;  %2255 = vmatprep.mubr.f32.mxu1 %v5492_v13  ;;  %v5500_v24 = vld [vmem:[%s5955_s30 + $0x48] sm:$0xff]  ;;  %v4731_v54 = vpack.c.bf16 %v1103_v14, %v1098_v6  ;;  %v1144_v14 = vld [vmem:[#allocation7 + $0xbd0] sm:$0xff] }
 0x1d3   : > { %4139 = vst [vmem:[%s6435_s25 + $0xf8] sm:$0xff] %v3979_v52  ;;  %v4980_v44 = vadd.f32 %v1870_v32, %v6368_v15  ;;  %2997 = vmatprep.mubr.f32.mxu0 %v5492_v13  ;;  %v4889_v32 = vpack.c.bf16 %v1105_v34, %v1100_v63  ;;  %v4733_v13 = vpack.c.bf16 %v1114_v4, %v1109_v48  ;;  %v1139_v6 = vld [vmem:[#allocation7 + $0xba8] sm:$0xff] }
 0x1d4   : > { %v3983_v49 = vmul.f32 %v4979_v57, %v6426_v61 }
 0x1d5   : > { %v3984_v19 = vmul.f32 %v4980_v44, %v6426_v61  ;;  %v1874_v59 = vpop.f32.mrb[16].mxu0  ;;  %2256 = vmatmul.mubr.f32.gmra.mrb[122].mxu1 %v5493_v58  ;;  %v1113_v44 = vld [vmem:[#allocation7 + $0xad8] sm:$0xff] }
 0x1d6   : > { %4143 = vst [vmem:[%s6435_s25 + $0x118] sm:$0xff] %v3983_v49  ;;  %v4981_v33 = vadd.f32 %v1874_v59, %v6373_v7  ;;  %v1876_v50 = vpop.f32.mrb[17].mxu0  ;;  %2998 = vmatmul.mubr.f32.gmra.mrb[122].mxu0 %v5493_v58  ;;  %2261 = vmatprep.mubr.f32.mxu1 %v5494_v0  ;;  %v1110_v49 = vld [vmem:[#allocation7 + $0xac0] sm:$0xff]  ;;  %v1115_v58 = vld [vmem:[#allocation7 + $0xae8] sm:$0xff] }
 0x1d7   : > { %4144 = vst [vmem:[%s6435_s25 + $0x120] sm:$0xff] %v3984_v19  ;;  %v4982_v15 = vadd.f32 %v1876_v50, %v6375_v51  ;;  %3002 = vmatprep.mubr.f32.mxu0 %v5494_v0  ;;  %v1124_v50 = vld [vmem:[#allocation7 + $0xb30] sm:$0xff] }
 0x1d8   : > { %v3988_v5 = vmul.f32 %v4981_v33, %v6426_v61  ;;  %v1119_v33 = vld [vmem:[#allocation7 + $0xb08] sm:$0xff] }
 0x1d9   : > { %v3989_v8 = vmul.f32 %v4982_v15, %v6426_v61  ;;  %v1880_v30 = vpop.f32.mrb[18].mxu0  ;;  %2262 = vmatmul.mubr.f32.gmra.mrb[124].mxu1 %v5495_v3 }
 0x1da   : > { %4148 = vst [vmem:[%s6435_s25 + $0x140] sm:$0xff] %v3988_v5  ;;  %v4983_v7 = vadd.f32 %v1880_v30, %v6380_v37  ;;  %v1882_v10 = vpop.f32.mrb[19].mxu0  ;;  %3003 = vmatmul.mubr.f32.gmra.mrb[124].mxu0 %v5495_v3  ;;  %2267 = vmatprep.mubr.f32.mxu1 %v5496_v27  ;;  %v5502_v5 = vld [vmem:[%s5955_s30 + $0x78] sm:$0xff] }
 0x1db   : > { %4149 = vst [vmem:[%s6435_s25 + $0x148] sm:$0xff] %v3989_v8  ;;  %v4984_v51 = vadd.f32 %v1882_v10, %v6382_v17  ;;  %3007 = vmatprep.mubr.f32.mxu0 %v5496_v27  ;;  %v4737_v10 = vpack.c.bf16 %v1124_v50, %v1119_v33  ;;  %v1123_v27 = vld [vmem:[#allocation7 + $0xb28] sm:$0xff] }
 0x1dc   : > { %v3993_v47 = vmul.f32 %v4983_v7, %v6426_v61  ;;  %v4892_v7 = vpack.c.bf16 %v1115_v58, %v1110_v49  ;;  %v5508_v49 = vld [vmem:[%s5955_s30 + $0x108] sm:$0xff] }
 0x1dd   : > { %v3994_v42 = vmul.f32 %v4984_v51, %v6426_v61  ;;  %v1886_v37 = vpop.f32.mrb[20].mxu0  ;;  %2268 = vmatmul.mubr.f32.gmra.mrb[126].mxu1 %v5497_v29  ;;  %v1120_v51 = vld [vmem:[#allocation7 + $0xb10] sm:$0xff] }
 0x1de   : > { %4153 = vst [vmem:[%s6435_s25 + $0x168] sm:$0xff] %v3993_v47  ;;  %v4985_v56 = vadd.f32 %v1886_v37, %v6387_v25  ;;  %v1888_v17 = vpop.f32.mrb[21].mxu0  ;;  %3008 = vmatmul.mubr.f32.gmra.mrb[126].mxu0 %v5497_v29  ;;  %2338 = vmatprep.mubr.f32.mxu1 %v5498_v53  ;;  %v5503_v47 = vld [vmem:[%s5955_s30 + $0x70] sm:$0xff]  ;;  %v5504_v29 = vld [vmem:[%s5955_s30 + $0xa8] sm:$0xff] }
 0x1df   : > { %4154 = vst [vmem:[%s6435_s25 + $0x170] sm:$0xff] %v3994_v42  ;;  %v4986_v26 = vadd.f32 %v1888_v17, %v6389_v62  ;;  %3077 = vmatprep.mubr.f32.mxu0 %v5498_v53  ;;  %v4741_v53 = vpack.c.bf16 %v1134_v38, %v1129_v21 }
 0x1e0   : > { %v3998_v40 = vmul.f32 %v4985_v56, %v6426_v61 }
 0x1e1   : > { %v3999_v25 = vmul.f32 %v4986_v26, %v6426_v61  ;;  %v1892_v46 = vpop.f32.mrb[22].mxu0  ;;  %2339 = vmatmul.mubr.f32.vlgmr.msra.gmra.mrb[64].mxu1 %v5499_v39  ;;  %v1130_v26 = vld [vmem:[#allocation7 + $0xb60] sm:$0xff] }
 0x1e2   : > { %4158 = vst [vmem:[%s6435_s25 + $0x190] sm:$0xff] %v3998_v40  ;;  %v4987_v62 = vadd.f32 %v1892_v46, %v6394_v1  ;;  %v1894_v45 = vpop.f32.mrb[23].mxu0  ;;  %3078 = vmatmul.mubr.f32.vlgmr.msra.gmra.mrb[64].mxu0 %v5499_v39  ;;  %4728 = vmatpush1.bf16.msra.mxu1 %v4727_v12  ;;  %v1108_v1 = vld [vmem:[#allocation7 + $0xab0] sm:$0xff]  ;;  %v1133_v12 = vld [vmem:[#allocation7 + $0xb78] sm:$0xff] }
 0x1e3   : > { %4159 = vst [vmem:[%s6435_s25 + $0x198] sm:$0xff] %v3999_v25  ;;  %v4988_v52 = vadd.f32 %v1894_v45, %v6396_v2  ;;  %4887 = vmatpush1.bf16.msra.mxu0 %v4886_v35  ;;  %2344 = vmatprep.mubr.f32.mxu1 %v5500_v24  ;;  %v5501_v2 = vld [vmem:[%s5955_s30 + $0x40] sm:$0xff]  ;;  %v4735_v30 = vpack.c.bf16 %v1113_v44, %v1108_v1  ;;  %v5506_v46 = vld [vmem:[%s5955_s30 + $0xd8] sm:$0xff]  ;;  %v1143_v45 = vld [vmem:[#allocation7 + $0xbc8] sm:$0xff] }
 0x1e4   : > { %v4003_v57 = vmul.f32 %v4987_v62, %v6426_v61  ;;  %3082 = vmatprep.mubr.f32.mxu0 %v5500_v24  ;;  %4730 = vmatprep.subr.bf16.mxu1 %v4729_v31  ;;  %v5505_v31 = vld [vmem:[%s5955_s30 + $0xa0] sm:$0xff]  ;;  %v4745_v62 = vpack.c.bf16 %v1144_v14, %v1139_v6 }
 0x1e5   : > { %v4004_v19 = vmul.f32 %v4988_v52, %v6426_v61  ;;  %v1898_v59 = vpop.f32.mrb[24].mxu0  ;;  %2345 = vmatmul.mubr.f32.gmra.mrb[66].mxu1 %v5501_v2  ;;  %4888 = vmatprep.subr.bf16.mxu0 %v5778_v22  ;;  %v1140_v52 = vld [vmem:[#allocation7 + $0xbb0] sm:$0xff] }
 0x1e6   : > { %4163 = vst [vmem:[%s6435_s25 + $0x1b8] sm:$0xff] %v4003_v57  ;;  %v4989_v0 = vadd.f32 %v1898_v59, %v6401_v60  ;;  %v1900_v15 = vpop.f32.mrb[25].mxu0  ;;  %3083 = vmatmul.mubr.f32.gmra.mrb[66].mxu0 %v5501_v2  ;;  %2350 = vmatprep.mubr.f32.mxu1 %v5502_v5  ;;  %v1118_v60 = vld [vmem:[#allocation7 + $0xb00] sm:$0xff]  ;;  %v5507_v57 = vld [vmem:[%s5955_s30 + $0xd0] sm:$0xff] }
 0x1e7   : > { %4164 = vst [vmem:[%s6435_s25 + $0x1c0] sm:$0xff] %v4004_v19  ;;  %v4990_v8 = vadd.f32 %v1900_v15, %v6403_v9  ;;  %3087 = vmatprep.mubr.f32.mxu0 %v5502_v5  ;;  %4732 = vmatpush1.bf16.msra.mxu1 %v4731_v54  ;;  %v1125_v9 = vld [vmem:[#allocation7 + $0xb38] sm:$0xff]  ;;  %v4739_v55 = vpack.c.bf16 %v1123_v27, %v1118_v60  ;;  %v1150_v15 = vld [vmem:[#allocation7 + $0xc00] sm:$0xff] }
 0x1e8   : > { %v4008_v3 = vmul.f32 %v4989_v0, %v6426_v61  ;;  %4890 = vmatpush1.bf16.msra.mxu0 %v4889_v32  ;;  %4734 = vmatprep.subr.bf16.mxu1 %v4733_v13  ;;  %v4895_v17 = vpack.c.bf16 %v1125_v9, %v1120_v51  ;;  %v1149_v32 = vld [vmem:[#allocation7 + $0xbf8] sm:$0xff]  ;;  %v1154_v13 = vld [vmem:[#allocation7 + $0xc20] sm:$0xff] }
 0x1e9   : > { %v4009_v43 = vmul.f32 %v4990_v8, %v6426_v61  ;;  %v1904_v41 = vpop.f32.mrb[26].mxu0  ;;  %2351 = vmatmul.mubr.f32.gmra.mrb[68].mxu1 %v5503_v47  ;;  %4891 = vmatprep.subr.bf16.mxu0 %v5778_v22  ;;  %v4749_v50 = vpack.c.bf16 %v1154_v13, %v1149_v32  ;;  %v1153_v0 = vld [vmem:[#allocation7 + $0xc18] sm:$0xff] }
 0x1ea   : > { %4168 = vst [vmem:[%s6435_s25 + $0x1e0] sm:$0xff] %v4008_v3  ;;  %v4991_v42 = vadd.f32 %v1904_v41, %v6407_v11  ;;  %v1906_v37 = vpop.f32.mrb[27].mxu0  ;;  %3088 = vmatmul.mubr.f32.gmra.mrb[68].mxu0 %v5503_v47  ;;  %2356 = vmatprep.mubr.f32.mxu1 %v5504_v29  ;;  %v1128_v11 = vld [vmem:[#allocation7 + $0xb50] sm:$0xff]  ;;  %v1155_v3 = vld [vmem:[#allocation7 + $0xc28] sm:$0xff]  ;;  %v5510_v51 = vld [vmem:[%s5955_s30 + $0x138] sm:$0xff] }
 0x1eb   : > { %4169 = vst [vmem:[%s6435_s25 + $0x1e8] sm:$0xff] %v4009_v43  ;;  %v4992_v16 = vadd.f32 %v1906_v37, %v6409_v18  ;;  %3092 = vmatprep.mubr.f32.mxu0 %v5504_v29  ;;  %4736 = vmatpush1.bf16.msra.mxu1 %v4735_v30  ;;  %v1135_v18 = vld [vmem:[#allocation7 + $0xb88] sm:$0xff]  ;;  %v4743_v34 = vpack.c.bf16 %v1133_v12, %v1128_v11  ;;  %v5509_v30 = vld [vmem:[%s5955_s30 + $0x100] sm:$0xff]  ;;  %v1160_v29 = vld [vmem:[#allocation7 + $0xc50] sm:$0xff] }
 0x1ec   : > { %v4013_v56 = vmul.f32 %v4991_v42, %v6426_v61  ;;  %4893 = vmatpush1.bf16.msra.mxu0 %v4892_v7  ;;  %4738 = vmatprep.subr.bf16.mxu1 %v4737_v10  ;;  %v4898_v4 = vpack.c.bf16 %v1135_v18, %v1130_v26  ;;  %v1159_v7 = vld [vmem:[#allocation7 + $0xc48] sm:$0xff]  ;;  %v1164_v10 = vld [vmem:[#allocation7 + $0xc70] sm:$0xff]  ;;  %v4904_v21 = vpack.c.bf16 %v1155_v3, %v1150_v15  ;;  %v1158_v42 = vld [vmem:[#allocation7 + $0xc40] sm:$0xff] }
 0x1ed   : > { %v4014_v35 = vmul.f32 %v4992_v16, %v6426_v61  ;;  %v1910_v40 = vpop.f32.mrb[28].mxu0  ;;  %2357 = vmatmul.mubr.f32.gmra.mrb[70].mxu1 %v5505_v31  ;;  %4894 = vmatprep.subr.bf16.mxu0 %v5778_v22  ;;  %v4753_v38 = vpack.c.bf16 %v1164_v10, %v1159_v7  ;;  %v1163_v37 = vld [vmem:[#allocation7 + $0xc68] sm:$0xff]  ;;  %v1169_v11 = vld [vmem:[#allocation7 + $0xc98] sm:$0xff]  ;;  %v1174_v12 = vld [vmem:[#allocation7 + $0xcc0] sm:$0xff] }
 0x1ee   : > { %4173 = vst [vmem:[%s6435_s25 + $0x208] sm:$0xff] %v4013_v56  ;;  %v4993_v63 = vadd.f32 %v1910_v40, %v6413_v23  ;;  %v1912_v25 = vpop.f32.mrb[29].mxu0  ;;  %3093 = vmatmul.mubr.f32.gmra.mrb[70].mxu0 %v5505_v31  ;;  %2362 = vmatprep.mubr.f32.mxu1 %v5506_v46  ;;  %v1138_v23 = vld [vmem:[#allocation7 + $0xba0] sm:$0xff]  ;;  %v5512_v40 = vld [vmem:[%s5955_s30 + $0x168] sm:$0xff]  ;;  %v4755_v18 = vpack.c.bf16 %v1163_v37, %v1158_v42  ;;  %v1185_v15 = vld [vmem:[#allocation7 + $0xd18] sm:$0xff] }
 0x1ef   : > { %4174 = vst [vmem:[%s6435_s25 + $0x210] sm:$0xff] %v4014_v35  ;;  %v4994_v39 = vadd.f32 %v1912_v25, %v6415_v20  ;;  %3097 = vmatprep.mubr.f32.mxu0 %v5506_v46  ;;  %4740 = vmatpush1.bf16.msra.mxu1 %v4739_v55  ;;  %v1145_v20 = vld [vmem:[#allocation7 + $0xbd8] sm:$0xff]  ;;  %v4747_v59 = vpack.c.bf16 %v1143_v45, %v1138_v23  ;;  %v1168_v46 = vld [vmem:[#allocation7 + $0xc90] sm:$0xff]  ;;  %v5513_v23 = vld [vmem:[%s5955_s30 + $0x160] sm:$0xff] }
 0x1f0   : > { %v4018_v48 = vmul.f32 %v4993_v63, %v6426_v61  ;;  %4896 = vmatpush1.bf16.msra.mxu0 %v4895_v17  ;;  %4742 = vmatprep.subr.bf16.mxu1 %v4741_v53  ;;  %v4901_v33 = vpack.c.bf16 %v1145_v20, %v1140_v52  ;;  %v5511_v17 = vld [vmem:[%s5955_s30 + $0x130] sm:$0xff]  ;;  %v1165_v53 = vld [vmem:[#allocation7 + $0xc78] sm:$0xff]  ;;  %v4757_v25 = vpack.c.bf16 %v1174_v12, %v1169_v11  ;;  %v1175_v45 = vld [vmem:[#allocation7 + $0xcc8] sm:$0xff] }
 0x1f1   : > { %v4019_v24 = vmul.f32 %v4994_v39, %v6426_v61  ;;  %v1916_v54 = vpop.f32.mrb[30].mxu0  ;;  %2363 = vmatmul.mubr.f32.gmra.mrb[72].mxu1 %v5507_v57  ;;  %4897 = vmatprep.subr.bf16.mxu0 %v5778_v22  ;;  %v4907_v63 = vpack.c.bf16 %v1165_v53, %v1160_v29  ;;  %v1173_v39 = vld [vmem:[#allocation7 + $0xcb8] sm:$0xff]  ;;  %v1179_v52 = vld [vmem:[#allocation7 + $0xce8] sm:$0xff]  ;;  %v5517_v37 = vld [vmem:[%s5955_s30 + $0x1c0] sm:$0xff] }
 0x1f2   : > { %4178 = vst [vmem:[%s6435_s25 + $0x230] sm:$0xff] %v4018_v48  ;;  %v4995_v1 = vadd.f32 %v1916_v54, %v6419_v36  ;;  %v1918_v44 = vpop.f32.mrb[31].mxu0  ;;  %3098 = vmatmul.mubr.f32.gmra.mrb[72].mxu0 %v5507_v57  ;;  %2368 = vmatprep.mubr.f32.mxu1 %v5508_v49  ;;  %v1148_v36 = vld [vmem:[#allocation7 + $0xbf0] sm:$0xff]  ;;  %v5514_v20 = vld [vmem:[%s5955_s30 + $0x198] sm:$0xff]  ;;  %v4759_v13 = vpack.c.bf16 %v1173_v39, %v1168_v46  ;;  %v5516_v3 = vld [vmem:[%s5955_s30 + $0x1c8] sm:$0xff] }
 0x1f3   : > { %4179 = vst [vmem:[%s6435_s25 + $0x238] sm:$0xff] %v4019_v24  ;;  %v4996_v19 = vadd.f32 %v1918_v44, %v6421_v28  ;;  %3102 = vmatprep.mubr.f32.mxu0 %v5508_v49  ;;  %4744 = vmatpush1.bf16.msra.mxu1 %v4743_v34  ;;  %v4751_v41 = vpack.c.bf16 %v1153_v0, %v1148_v36  ;;  %v1170_v34 = vld [vmem:[#allocation7 + $0xca0] sm:$0xff]  ;;  %v1184_v24 = vld [vmem:[#allocation7 + $0xd10] sm:$0xff]  ;;  %v1195_v29 = vld [vmem:[#allocation7 + $0xd68] sm:$0xff] }
 0x1f4   : > { %v4023_v2 = vmul.f32 %v4995_v1, %v6426_v61  ;;  %v1665_v58 = vpop.f32.mrb[32].mxu1  ;;  %4899 = vmatpush1.bf16.msra.mxu0 %v4898_v4  ;;  %4746 = vmatprep.subr.bf16.mxu1 %v4745_v62  ;;  %v4910_v49 = vpack.c.bf16 %v1175_v45, %v1170_v34  ;;  %v5515_v0 = vld [vmem:[%s5955_s30 + $0x190] sm:$0xff]  ;;  %v5518_v53 = vld [vmem:[%s5955_s30 + $0x1f8] sm:$0xff]  ;;  %v5520_v45 = vld [vmem:[%s5955_s30 + $0x228] sm:$0xff] }
 0x1f5   : > { %v4024_v5 = vmul.f32 %v4996_v19, %v6426_v61  ;;  %v1922_v28 = vpop.f32.mrb[32].mxu0  ;;  %v1667_v8 = vpop.f32.mrb[33].mxu1  ;;  %2369 = vmatmul.mubr.f32.gmra.mrb[74].mxu1 %v5509_v30  ;;  %4900 = vmatprep.subr.bf16.mxu0 %v5778_v22  ;;  %v4761_v19 = vpack.c.bf16 %v1184_v24, %v1179_v52  ;;  %v5519_v39 = vld [vmem:[%s5955_s30 + $0x1f0] sm:$0xff]  ;;  %v1205_v34 = vld [vmem:[#allocation7 + $0xdb8] sm:$0xff] }
 0x1f6   : > { %4183 = vst [vmem:[%s6435_s25 + $0x258] sm:$0xff] %v4023_v2  ;;  %v4997_v60 = vadd.f32 %v1922_v28, %v1665_v58  ;;  %v1924_v27 = vpop.f32.mrb[33].mxu0  ;;  %3103 = vmatmul.mubr.f32.gmra.mrb[74].mxu0 %v5509_v30  ;;  %2374 = vmatprep.mubr.f32.mxu1 %v5510_v51  ;;  %v1183_v2 = vld [vmem:[#allocation7 + $0xd08] sm:$0xff]  ;;  %v1180_v58 = vld [vmem:[#allocation7 + $0xcf0] sm:$0xff]  ;;  %v1194_v28 = vld [vmem:[#allocation7 + $0xd60] sm:$0xff] }
 0x1f7   : > { %4184 = vst [vmem:[%s6435_s25 + $0x260] sm:$0xff] %v4024_v5  ;;  %v4998_v43 = vadd.f32 %v1924_v27, %v1667_v8  ;;  %3107 = vmatprep.mubr.f32.mxu0 %v5510_v51  ;;  %4748 = vmatpush1.bf16.msra.mxu1 %v4747_v59  ;;  %v1178_v59 = vld [vmem:[#allocation7 + $0xce0] sm:$0xff]  ;;  %v1189_v5 = vld [vmem:[#allocation7 + $0xd38] sm:$0xff]  ;;  %v4913_v51 = vpack.c.bf16 %v1185_v15, %v1180_v58  ;;  %v1215_v58 = vld [vmem:[#allocation7 + $0xe08] sm:$0xff] }
 0x1f8   : > { %v4028_v47 = vmul.f32 %v4997_v60, %v6426_v61  ;;  %v1671_v9 = vpop.f32.mrb[34].mxu1  ;;  %4902 = vmatpush1.bf16.msra.mxu0 %v4901_v33  ;;  %4750 = vmatprep.subr.bf16.mxu1 %v4749_v50  ;;  %v4763_v10 = vpack.c.bf16 %v1183_v2, %v1178_v59  ;;  %v5521_v2 = vld [vmem:[%s5955_s30 + $0x220] sm:$0xff]  ;;  %v5522_v15 = vld [vmem:[%s5955_s30 + $0x258] sm:$0xff] }
 0x1f9   : > { %v4029_v16 = vmul.f32 %v4998_v43, %v6426_v61  ;;  %v1928_v55 = vpop.f32.mrb[34].mxu0  ;;  %v1673_v56 = vpop.f32.mrb[35].mxu1  ;;  %2375 = vmatmul.mubr.f32.gmra.mrb[76].mxu1 %v5511_v17  ;;  %4903 = vmatprep.subr.bf16.mxu0 %v5778_v22  ;;  %v4765_v43 = vpack.c.bf16 %v1194_v28, %v1189_v5 }
 0x1fa   : > { %4188 = vst [vmem:[%s6435_s25 + $0x280] sm:$0xff] %v4028_v47  ;;  %v4999_v26 = vadd.f32 %v1928_v55, %v1671_v9  ;;  %v1930_v35 = vpop.f32.mrb[35].mxu0  ;;  %3108 = vmatmul.mubr.f32.gmra.mrb[76].mxu0 %v5511_v17  ;;  %2380 = vmatprep.mubr.f32.mxu1 %v5512_v40  ;;  %v1193_v47 = vld [vmem:[#allocation7 + $0xd58] sm:$0xff]  ;;  %v1190_v9 = vld [vmem:[#allocation7 + $0xd40] sm:$0xff]  ;;  %v1204_v55 = vld [vmem:[#allocation7 + $0xdb0] sm:$0xff] }
 0x1fb   : > { %4189 = vst [vmem:[%s6435_s25 + $0x288] sm:$0xff] %v4029_v16  ;;  %v5000_v31 = vadd.f32 %v1930_v35, %v1673_v56  ;;  %3112 = vmatprep.mubr.f32.mxu0 %v5512_v40  ;;  %4752 = vmatpush1.bf16.msra.mxu1 %v4751_v41  ;;  %v1188_v41 = vld [vmem:[#allocation7 + $0xd30] sm:$0xff]  ;;  %v1199_v16 = vld [vmem:[#allocation7 + $0xd88] sm:$0xff]  ;;  %v4916_v40 = vpack.c.bf16 %v1195_v29, %v1190_v9  ;;  %v1225_v9 = vld [vmem:[#allocation7 + $0xe58] sm:$0xff] }
 0x1fc   : > { %v4033_v6 = vmul.f32 %v4999_v26, %v6426_v61  ;;  %v1677_v14 = vpop.f32.mrb[36].mxu1  ;;  %4905 = vmatpush1.bf16.msra.mxu0 %v4904_v21  ;;  %4754 = vmatprep.subr.bf16.mxu1 %v4753_v38  ;;  %v4767_v12 = vpack.c.bf16 %v1193_v47, %v1188_v41  ;;  %v5523_v47 = vld [vmem:[%s5955_s30 + $0x250] sm:$0xff]  ;;  %v5524_v29 = vld [vmem:[%s5955_s30 + $0x288] sm:$0xff] }
 0x1fd   : > { %v4034_v48 = vmul.f32 %v5000_v31, %v6426_v61  ;;  %v1934_v4 = vpop.f32.mrb[36].mxu0  ;;  %v1679_v62 = vpop.f32.mrb[37].mxu1  ;;  %2381 = vmatmul.mubr.f32.gmra.mrb[78].mxu1 %v5513_v23  ;;  %4906 = vmatprep.subr.bf16.mxu0 %v5778_v22  ;;  %v4769_v31 = vpack.c.bf16 %v1204_v55, %v1199_v16 }
 0x1fe   : > { %4193 = vst [vmem:[%s6435_s25 + $0x2a8] sm:$0xff] %v4033_v6  ;;  %v5001_v54 = vadd.f32 %v1934_v4, %v1677_v14  ;;  %v1936_v57 = vpop.f32.mrb[37].mxu0  ;;  %3113 = vmatmul.mubr.f32.gmra.mrb[78].mxu0 %v5513_v23  ;;  %2386 = vmatprep.mubr.f32.mxu1 %v5514_v20  ;;  %v1203_v6 = vld [vmem:[#allocation7 + $0xda8] sm:$0xff]  ;;  %v1200_v14 = vld [vmem:[#allocation7 + $0xd90] sm:$0xff]  ;;  %v1214_v4 = vld [vmem:[#allocation7 + $0xe00] sm:$0xff] }
 0x1ff   : > { %4194 = vst [vmem:[%s6435_s25 + $0x2b0] sm:$0xff] %v4034_v48  ;;  %v5002_v32 = vadd.f32 %v1936_v57, %v1679_v62  ;;  %3117 = vmatprep.mubr.f32.mxu0 %v5514_v20  ;;  %4756 = vmatpush1.bf16.msra.mxu1 %v4755_v18  ;;  %v1198_v18 = vld [vmem:[#allocation7 + $0xd80] sm:$0xff]  ;;  %v1209_v48 = vld [vmem:[#allocation7 + $0xdd8] sm:$0xff]  ;;  %v4919_v20 = vpack.c.bf16 %v1205_v34, %v1200_v14  ;;  %v1235_v14 = vld [vmem:[#allocation7 + $0xea8] sm:$0xff] }
 0x200   : > { %v4038_v1 = vmul.f32 %v5001_v54, %v6426_v61  ;;  %v1683_v44 = vpop.f32.mrb[38].mxu1  ;;  %4908 = vmatpush1.bf16.msra.mxu0 %v4907_v63  ;;  %4758 = vmatprep.subr.bf16.mxu1 %v4757_v25  ;;  %v4771_v24 = vpack.c.bf16 %v1203_v6, %v1198_v18  ;;  %v5525_v6 = vld [vmem:[%s5955_s30 + $0x280] sm:$0xff]  ;;  %v5526_v34 = vld [vmem:[%s5955_s30 + $0x2b8] sm:$0xff] }
 0x201   : > { %v4039_v33 = vmul.f32 %v5002_v32, %v6426_v61  ;;  %v1940_v50 = vpop.f32.mrb[38].mxu0  ;;  %v1685_v36 = vpop.f32.mrb[39].mxu1  ;;  %2387 = vmatmul.mubr.f32.gmra.mrb[80].mxu1 %v5515_v0  ;;  %4909 = vmatprep.subr.bf16.mxu0 %v5778_v22  ;;  %v4773_v32 = vpack.c.bf16 %v1214_v4, %v1209_v48 }
 0x202   : > { %4198 = vst [vmem:[%s6435_s25 + $0x2d0] sm:$0xff] %v4038_v1  ;;  %v5003_v8 = vadd.f32 %v1940_v50, %v1683_v44  ;;  %v1942_v30 = vpop.f32.mrb[39].mxu0  ;;  %3118 = vmatmul.mubr.f32.gmra.mrb[80].mxu0 %v5515_v0  ;;  %2392 = vmatprep.mubr.f32.mxu1 %v5516_v3  ;;  %v1213_v1 = vld [vmem:[#allocation7 + $0xdf8] sm:$0xff]  ;;  %v1210_v44 = vld [vmem:[#allocation7 + $0xde0] sm:$0xff]  ;;  %v1224_v50 = vld [vmem:[#allocation7 + $0xe50] sm:$0xff] }
 0x203   : > { %4199 = vst [vmem:[%s6435_s25 + $0x2d8] sm:$0xff] %v4039_v33  ;;  %v5004_v7 = vadd.f32 %v1942_v30, %v1685_v36  ;;  %3122 = vmatprep.mubr.f32.mxu0 %v5516_v3  ;;  %4760 = vmatpush1.bf16.msra.mxu1 %v4759_v13  ;;  %v1208_v13 = vld [vmem:[#allocation7 + $0xdd0] sm:$0xff]  ;;  %v1219_v33 = vld [vmem:[#allocation7 + $0xe28] sm:$0xff]  ;;  %v4922_v3 = vpack.c.bf16 %v1215_v58, %v1210_v44  ;;  %v1245_v44 = vld [vmem:[#allocation7 + $0xef8] sm:$0xff] }
 0x204   : > { %v4043_v60 = vmul.f32 %v5003_v8, %v6426_v61  ;;  %v1689_v27 = vpop.f32.mrb[40].mxu1  ;;  %4911 = vmatpush1.bf16.msra.mxu0 %v4910_v49  ;;  %4762 = vmatprep.subr.bf16.mxu1 %v4761_v19  ;;  %v4775_v28 = vpack.c.bf16 %v1213_v1, %v1208_v13  ;;  %v5527_v13 = vld [vmem:[%s5955_s30 + $0x2b0] sm:$0xff] }
 0x205   : > { %v4044_v21 = vmul.f32 %v5004_v7, %v6426_v61  ;;  %v1946_v38 = vpop.f32.mrb[40].mxu0  ;;  %v1691_v42 = vpop.f32.mrb[41].mxu1  ;;  %2393 = vmatmul.mubr.f32.gmra.mrb[82].mxu1 %v5517_v37  ;;  %4912 = vmatprep.subr.bf16.mxu0 %v5778_v22  ;;  %v4777_v7 = vpack.c.bf16 %v1224_v50, %v1219_v33  ;;  %v1240_v1 = vld [vmem:[#allocation7 + $0xed0] sm:$0xff] }
 0x206   : > { %4203 = vst [vmem:[%s6435_s25 + $0x2f8] sm:$0xff] %v4043_v60  ;;  %v5005_v56 = vadd.f32 %v1946_v38, %v1689_v27  ;;  %v1948_v17 = vpop.f32.mrb[41].mxu0  ;;  %3123 = vmatmul.mubr.f32.gmra.mrb[82].mxu0 %v5517_v37  ;;  %2398 = vmatprep.mubr.f32.mxu1 %v5518_v53  ;;  %v1223_v60 = vld [vmem:[#allocation7 + $0xe48] sm:$0xff]  ;;  %v1220_v27 = vld [vmem:[#allocation7 + $0xe30] sm:$0xff]  ;;  %v1234_v38 = vld [vmem:[#allocation7 + $0xea0] sm:$0xff] }
 0x207   : > { %4204 = vst [vmem:[%s6435_s25 + $0x300] sm:$0xff] %v4044_v21  ;;  %v5006_v11 = vadd.f32 %v1948_v17, %v1691_v42  ;;  %3127 = vmatprep.mubr.f32.mxu0 %v5518_v53  ;;  %4764 = vmatpush1.bf16.msra.mxu1 %v4763_v10  ;;  %v1218_v10 = vld [vmem:[#allocation7 + $0xe20] sm:$0xff]  ;;  %v1229_v21 = vld [vmem:[#allocation7 + $0xe78] sm:$0xff]  ;;  %v4925_v53 = vpack.c.bf16 %v1225_v9, %v1220_v27  ;;  %v5532_v9 = vld [vmem:[%s5955_s30 + $0x348] sm:$0xff] }
 0x208   : > { %v4048_v26 = vmul.f32 %v5005_v56, %v6426_v61  ;;  %v1695_v35 = vpop.f32.mrb[42].mxu1  ;;  %4914 = vmatpush1.bf16.msra.mxu0 %v4913_v51  ;;  %4766 = vmatprep.subr.bf16.mxu1 %v4765_v43  ;;  %v4779_v55 = vpack.c.bf16 %v1223_v60, %v1218_v10 }
 0x209   : > { %v4049_v63 = vmul.f32 %v5006_v11, %v6426_v61  ;;  %v1952_v25 = vpop.f32.mrb[42].mxu0  ;;  %v1697_v46 = vpop.f32.mrb[43].mxu1  ;;  %2399 = vmatmul.mubr.f32.gmra.mrb[84].mxu1 %v5519_v39  ;;  %4915 = vmatprep.subr.bf16.mxu0 %v5778_v22  ;;  %v4781_v11 = vpack.c.bf16 %v1234_v38, %v1229_v21 }
 0x20a   : > { %4208 = vst [vmem:[%s6435_s25 + $0x320] sm:$0xff] %v4048_v26  ;;  %v5007_v62 = vadd.f32 %v1952_v25, %v1695_v35  ;;  %v1954_v23 = vpop.f32.mrb[43].mxu0  ;;  %3128 = vmatmul.mubr.f32.gmra.mrb[84].mxu0 %v5519_v39  ;;  %2404 = vmatprep.mubr.f32.mxu1 %v5520_v45  ;;  %v1233_v26 = vld [vmem:[#allocation7 + $0xe98] sm:$0xff]  ;;  %v1230_v35 = vld [vmem:[#allocation7 + $0xe80] sm:$0xff]  ;;  %v1244_v25 = vld [vmem:[#allocation7 + $0xef0] sm:$0xff] }
 0x20b   : > { %4209 = vst [vmem:[%s6435_s25 + $0x328] sm:$0xff] %v4049_v63  ;;  %v5008_v52 = vadd.f32 %v1954_v23, %v1697_v46  ;;  %3132 = vmatprep.mubr.f32.mxu0 %v5520_v45  ;;  %4768 = vmatpush1.bf16.msra.mxu1 %v4767_v12  ;;  %v1228_v12 = vld [vmem:[#allocation7 + $0xe70] sm:$0xff]  ;;  %v1239_v63 = vld [vmem:[#allocation7 + $0xec8] sm:$0xff]  ;;  %v4928_v45 = vpack.c.bf16 %v1235_v14, %v1230_v35 }
 0x20c   : > { %v4053_v54 = vmul.f32 %v5007_v62, %v6426_v61  ;;  %v1701_v57 = vpop.f32.mrb[44].mxu1  ;;  %4917 = vmatpush1.bf16.msra.mxu0 %v4916_v40  ;;  %4770 = vmatprep.subr.bf16.mxu1 %v4769_v31  ;;  %v4783_v4 = vpack.c.bf16 %v1233_v26, %v1228_v12 }
 0x20d   : > { %v4054_v49 = vmul.f32 %v5008_v52, %v6426_v61  ;;  %v1958_v19 = vpop.f32.mrb[44].mxu0  ;;  %v1703_v59 = vpop.f32.mrb[45].mxu1  ;;  %2405 = vmatmul.mubr.f32.gmra.mrb[86].mxu1 %v5521_v2  ;;  %4918 = vmatprep.subr.bf16.mxu0 %v5778_v22  ;;  %v4785_v52 = vpack.c.bf16 %v1244_v25, %v1239_v63  ;;  %v5536_v63 = vld [vmem:[%s5955_s30 + $0x3a8] sm:$0xff] }
 0x20e   : > { %4213 = vst [vmem:[%s6435_s25 + $0x348] sm:$0xff] %v4053_v54  ;;  %v5009_v36 = vadd.f32 %v1958_v19, %v1701_v57  ;;  %v1960_v0 = vpop.f32.mrb[45].mxu0  ;;  %3133 = vmatmul.mubr.f32.gmra.mrb[86].mxu0 %v5521_v2  ;;  %2410 = vmatprep.mubr.f32.mxu1 %v5522_v15  ;;  %v1243_v54 = vld [vmem:[#allocation7 + $0xee8] sm:$0xff] }
 0x20f   : > { %4214 = vst [vmem:[%s6435_s25 + $0x350] sm:$0xff] %v4054_v49  ;;  %v5010_v5 = vadd.f32 %v1960_v0, %v1703_v59  ;;  %3137 = vmatprep.mubr.f32.mxu0 %v5522_v15  ;;  %4772 = vmatpush1.bf16.msra.mxu1 %v4771_v24  ;;  %v1238_v24 = vld [vmem:[#allocation7 + $0xec0] sm:$0xff]  ;;  %v5528_v59 = vld [vmem:[%s5955_s30 + $0x2e8] sm:$0xff] }
 0x210   : > { %v4058_v8 = vmul.f32 %v5009_v36, %v6426_v61  ;;  %v1707_v30 = vpop.f32.mrb[46].mxu1  ;;  %4920 = vmatpush1.bf16.msra.mxu0 %v4919_v20  ;;  %4774 = vmatprep.subr.bf16.mxu1 %v4773_v32  ;;  %v4787_v58 = vpack.c.bf16 %v1243_v54, %v1238_v24  ;;  %v4931_v36 = vpack.c.bf16 %v1245_v44, %v1240_v1  ;;  %v5539_v1 = vld [vmem:[%s5955_s30 + $0x3d0] sm:$0xff] }
 0x211   : > { %v4059_v51 = vmul.f32 %v5010_v5, %v6426_v61  ;;  %v1964_v43 = vpop.f32.mrb[46].mxu0  ;;  %v1709_v41 = vpop.f32.mrb[47].mxu1  ;;  %2411 = vmatmul.mubr.f32.gmra.mrb[88].mxu1 %v5523_v47  ;;  %4921 = vmatprep.subr.bf16.mxu0 %v5778_v22 }
 0x212   : > { %4218 = vst [vmem:[%s6435_s25 + $0x370] sm:$0xff] %v4058_v8  ;;  %v5011_v42 = vadd.f32 %v1964_v43, %v1707_v30  ;;  %v1966_v37 = vpop.f32.mrb[47].mxu0  ;;  %3138 = vmatmul.mubr.f32.gmra.mrb[88].mxu0 %v5523_v47  ;;  %2416 = vmatprep.mubr.f32.mxu1 %v5524_v29  ;;  %v5531_v43 = vld [vmem:[%s5955_s30 + $0x310] sm:$0xff] }
 0x213   : > { %4219 = vst [vmem:[%s6435_s25 + $0x378] sm:$0xff] %v4059_v51  ;;  %v5012_v16 = vadd.f32 %v1966_v37, %v1709_v41  ;;  %3142 = vmatprep.mubr.f32.mxu0 %v5524_v29  ;;  %4776 = vmatpush1.bf16.msra.mxu1 %v4775_v28  ;;  %v5529_v28 = vld [vmem:[%s5955_s30 + $0x2e0] sm:$0xff] }
 0x214   : > { %v4063_v56 = vmul.f32 %v5011_v42, %v6426_v61  ;;  %v1713_v17 = vpop.f32.mrb[48].mxu1  ;;  %4923 = vmatpush1.bf16.msra.mxu0 %v4922_v3  ;;  %4778 = vmatprep.subr.bf16.mxu1 %v4777_v7  ;;  %v5530_v3 = vld [vmem:[%s5955_s30 + $0x318] sm:$0xff] }
 0x215   : > { %v4064_v40 = vmul.f32 %v5012_v16, %v6426_v61  ;;  %v1970_v31 = vpop.f32.mrb[48].mxu0  ;;  %v1715_v18 = vpop.f32.mrb[49].mxu1  ;;  %2417 = vmatmul.mubr.f32.gmra.mrb[90].mxu1 %v5525_v6  ;;  %4924 = vmatprep.subr.bf16.mxu0 %v5778_v22 }
 0x216   : > { %4223 = vst [vmem:[%s6435_s25 + $0x398] sm:$0xff] %v4063_v56  ;;  %v5013_v46 = vadd.f32 %v1970_v31, %v1713_v17  ;;  %v1972_v39 = vpop.f32.mrb[49].mxu0  ;;  %3143 = vmatmul.mubr.f32.gmra.mrb[90].mxu0 %v5525_v6  ;;  %2422 = vmatprep.mubr.f32.mxu1 %v5526_v34 }
 0x217   : > { %4224 = vst [vmem:[%s6435_s25 + $0x3a0] sm:$0xff] %v4064_v40  ;;  %v5014_v48 = vadd.f32 %v1972_v39, %v1715_v18  ;;  %3147 = vmatprep.mubr.f32.mxu0 %v5526_v34  ;;  %4780 = vmatpush1.bf16.msra.mxu1 %v4779_v55  ;;  %v5533_v55 = vld [vmem:[%s5955_s30 + $0x340] sm:$0xff]  ;;  %v5535_v18 = vld [vmem:[%s5955_s30 + $0x370] sm:$0xff] }
 0x218   : > { %v4068_v62 = vmul.f32 %v5013_v46, %v6426_v61  ;;  %v1719_v23 = vpop.f32.mrb[50].mxu1  ;;  %4926 = vmatpush1.bf16.msra.mxu0 %v4925_v53  ;;  %4782 = vmatprep.subr.bf16.mxu1 %v4781_v11  ;;  %v5534_v53 = vld [vmem:[%s5955_s30 + $0x378] sm:$0xff] }
 0x219   : > { %v4069_v57 = vmul.f32 %v5014_v48, %v6426_v61  ;;  %v1976_v20 = vpop.f32.mrb[50].mxu0  ;;  %v1721_v32 = vpop.f32.mrb[51].mxu1  ;;  %2423 = vmatmul.mubr.f32.gmra.mrb[92].mxu1 %v5527_v13  ;;  %4927 = vmatprep.subr.bf16.mxu0 %v5778_v22 }
 0x21a   : > { %4228 = vst [vmem:[%s6435_s25 + $0x3c0] sm:$0xff] %v4068_v62  ;;  %v5015_v49 = vadd.f32 %v1976_v20, %v1719_v23  ;;  %v1978_v19 = vpop.f32.mrb[51].mxu0  ;;  %3148 = vmatmul.mubr.f32.gmra.mrb[92].mxu0 %v5527_v13  ;;  %2428 = vmatprep.mubr.f32.mxu1 %v5528_v59  ;;  %v5537_v62 = vld [vmem:[%s5955_s30 + $0x3a0] sm:$0xff] }
 0x21b   : > { %4229 = vst [vmem:[%s6435_s25 + $0x3c8] sm:$0xff] %v4069_v57  ;;  %v5016_v2 = vadd.f32 %v1978_v19, %v1721_v32  ;;  %3152 = vmatprep.mubr.f32.mxu0 %v5528_v59  ;;  %4784 = vmatpush1.bf16.msra.mxu1 %v4783_v4  ;;  %v5540_v19 = vld [vmem:[%s5955_s30 + $0x408] sm:$0xff] }
 0x21c   : > { %v4073_v33 = vmul.f32 %v5015_v49, %v6426_v61  ;;  %v1725_v50 = vpop.f32.mrb[52].mxu1  ;;  %4929 = vmatpush1.bf16.msra.mxu0 %v4928_v45  ;;  %4786 = vmatprep.subr.bf16.mxu1 %v4785_v52  ;;  %v5538_v52 = vld [vmem:[%s5955_s30 + $0x3d8] sm:$0xff] }
 0x21d   : > { %v4074_v0 = vmul.f32 %v5016_v2, %v6426_v61  ;;  %v1982_v15 = vpop.f32.mrb[52].mxu0  ;;  %v1727_v5 = vpop.f32.mrb[53].mxu1  ;;  %2429 = vmatmul.mubr.f32.gmra.mrb[94].mxu1 %v5529_v28  ;;  %4930 = vmatprep.subr.bf16.mxu0 %v5778_v22 }
 0x21e   : > { %4233 = vst [vmem:[%s6435_s25 + $0x3e8] sm:$0xff] %v4073_v33  ;;  %v5017_v8 = vadd.f32 %v1982_v15, %v1725_v50  ;;  %v1984_v30 = vpop.f32.mrb[53].mxu0  ;;  %3153 = vmatmul.mubr.f32.gmra.mrb[94].mxu0 %v5529_v28  ;;  %2434 = vmatprep.mubr.f32.mxu1 %v5530_v3  ;;  %v5541_v33 = vld [vmem:[%s5955_s30 + $0x400] sm:$0xff]  ;;  %v5542_v50 = vld [vmem:[%s5955_s30 + $0x438] sm:$0xff]  ;;  %v5547_v28 = vld [vmem:[%s5955_s30 + $0x490] sm:$0xff] }
 0x21f   : > { %4234 = vst [vmem:[%s6435_s25 + $0x3f0] sm:$0xff] %v4074_v0  ;;  %v5018_v7 = vadd.f32 %v1984_v30, %v1727_v5  ;;  %3157 = vmatprep.mubr.f32.mxu0 %v5530_v3  ;;  %4788 = vmatpush1.bf16.msra.mxu1 %v4787_v58  ;;  %v5544_v0 = vld [vmem:[%s5955_s30 + $0x468] sm:$0xff]  ;;  %v5545_v15 = vld [vmem:[%s5955_s30 + $0x460] sm:$0xff]  ;;  %v5546_v5 = vld [vmem:[%s5955_s30 + $0x498] sm:$0xff] }
 0x220   : > { %v4078_v10 = vmul.f32 %v5017_v8, %v6426_v61  ;;  %v1731_v60 = vpop.f32.mrb[54].mxu1  ;;  %4932 = vmatpush1.bf16.msra.mxu0 %v4931_v36  ;;  %v5543_v36 = vld [vmem:[%s5955_s30 + $0x430] sm:$0xff]  ;;  %v5548_v8 = vld [vmem:[%s5955_s30 + $0x4c8] sm:$0xff]  ;;  %v5549_v30 = vld [vmem:[%s5955_s30 + $0x4c0] sm:$0xff] }
 0x221   : > { %v4079_v22 = vmul.f32 %v5018_v7, %v6426_v61  ;;  %v1988_v27 = vpop.f32.mrb[54].mxu0  ;;  %v1733_v51 = vpop.f32.mrb[55].mxu1  ;;  %2435 = vmatmul.mubr.f32.gmra.mrb[96].mxu1 %v5531_v43  ;;  %v5550_v3 = vld [vmem:[%s5955_s30 + $0x4f8] sm:$0xff]  ;;  %v5551_v7 = vld [vmem:[%s5955_s30 + $0x4f0] sm:$0xff] }
 0x222   : > { %4238 = vst [vmem:[%s6435_s25 + $0x410] sm:$0xff] %v4078_v10  ;;  %v5019_v41 = vadd.f32 %v1988_v27, %v1731_v60  ;;  %v1990_v47 = vpop.f32.mrb[55].mxu0  ;;  %3158 = vmatmul.mubr.f32.gmra.mrb[96].mxu0 %v5531_v43  ;;  %2440 = vmatprep.mubr.f32.mxu1 %v5532_v9  ;;  %v5552_v10 = vld [vmem:[%s5955_s30 + $0x528] sm:$0xff]  ;;  %v5553_v60 = vld [vmem:[%s5955_s30 + $0x520] sm:$0xff]  ;;  %v5555_v27 = vld [vmem:[%s5955_s30 + $0x550] sm:$0xff] }
 0x223   : > { %4239 = vst [vmem:[%s6435_s25 + $0x418] sm:$0xff] %v4079_v22  ;;  %v5020_v21 = vadd.f32 %v1990_v47, %v1733_v51  ;;  %3162 = vmatprep.mubr.f32.mxu0 %v5532_v9  ;;  %v5554_v22 = vld [vmem:[%s5955_s30 + $0x558] sm:$0xff]  ;;  %v5556_v51 = vld [vmem:[%s5955_s30 + $0x588] sm:$0xff]  ;;  %v5557_v43 = vld [vmem:[%s5955_s30 + $0x580] sm:$0xff] }
 0x224   : > { %v4083_v38 = vmul.f32 %v5019_v41, %v6426_v61  ;;  %v1737_v42 = vpop.f32.mrb[56].mxu1  ;;  %v5558_v41 = vld [vmem:[%s5955_s30 + $0x5b8] sm:$0xff]  ;;  %v5559_v47 = vld [vmem:[%s5955_s30 + $0x5b0] sm:$0xff]  ;;  %v5560_v9 = vld [vmem:[%s5955_s30 + $0x5e8] sm:$0xff] }
 0x225   : > { %v4084_v37 = vmul.f32 %v5020_v21, %v6426_v61  ;;  %v1994_v29 = vpop.f32.mrb[56].mxu0  ;;  %v1739_v16 = vpop.f32.mrb[57].mxu1  ;;  %2441 = vmatmul.mubr.f32.gmra.mrb[98].mxu1 %v5533_v55  ;;  %v5561_v21 = vld [vmem:[%s5955_s30 + $0x5e0] sm:$0xff] }
 0x226   : > { %4243 = vst [vmem:[%s6435_s25 + $0x438] sm:$0xff] %v4083_v38  ;;  %v5021_v56 = vadd.f32 %v1994_v29, %v1737_v42  ;;  %v1996_v17 = vpop.f32.mrb[57].mxu0  ;;  %3163 = vmatmul.mubr.f32.gmra.mrb[98].mxu0 %v5533_v55  ;;  %2446 = vmatprep.mubr.f32.mxu1 %v5534_v53  ;;  %v5562_v38 = vld [vmem:[%s5955_s30 + $0x28] sm:$0xff]  ;;  %v5563_v42 = vld [vmem:[%s5955_s30 + $0x20] sm:$0xff]  ;;  %v5565_v29 = vld [vmem:[%s5955_s30 + $0x50] sm:$0xff] }
 0x227   : > { %4244 = vst [vmem:[%s6435_s25 + $0x440] sm:$0xff] %v4084_v37  ;;  %v5022_v11 = vadd.f32 %v1996_v17, %v1739_v16  ;;  %3167 = vmatprep.mubr.f32.mxu0 %v5534_v53  ;;  %v5564_v37 = vld [vmem:[%s5955_s30 + $0x58] sm:$0xff]  ;;  %v5566_v16 = vld [vmem:[%s5955_s30 + $0x88] sm:$0xff]  ;;  %v5567_v55 = vld [vmem:[%s5955_s30 + $0x80] sm:$0xff] }
 0x228   : > { %v4088_v12 = vmul.f32 %v5021_v56, %v6426_v61  ;;  %v1743_v26 = vpop.f32.mrb[58].mxu1  ;;  %v5568_v56 = vld [vmem:[%s5955_s30 + $0xb8] sm:$0xff]  ;;  %v5569_v17 = vld [vmem:[%s5955_s30 + $0xb0] sm:$0xff]  ;;  %v5570_v53 = vld [vmem:[%s5955_s30 + $0xe8] sm:$0xff] }
 0x229   : > { %v4089_v35 = vmul.f32 %v5022_v11, %v6426_v61  ;;  %v2000_v40 = vpop.f32.mrb[58].mxu0  ;;  %v1745_v31 = vpop.f32.mrb[59].mxu1  ;;  %2447 = vmatmul.mubr.f32.gmra.mrb[100].mxu1 %v5535_v18  ;;  %v5571_v11 = vld [vmem:[%s5955_s30 + $0xe0] sm:$0xff] }
 0x22a   : > { %4248 = vst [vmem:[%s6435_s25 + $0x460] sm:$0xff] %v4088_v12  ;;  %v5023_v6 = vadd.f32 %v2000_v40, %v1743_v26  ;;  %v2002_v14 = vpop.f32.mrb[59].mxu0  ;;  %3168 = vmatmul.mubr.f32.gmra.mrb[100].mxu0 %v5535_v18  ;;  %2452 = vmatprep.mubr.f32.mxu1 %v5536_v63  ;;  %v5572_v12 = vld [vmem:[%s5955_s30 + $0x118] sm:$0xff]  ;;  %v5573_v26 = vld [vmem:[%s5955_s30 + $0x110] sm:$0xff]  ;;  %v5575_v40 = vld [vmem:[%s5955_s30 + $0x140] sm:$0xff] }
 0x22b   : > { %4249 = vst [vmem:[%s6435_s25 + $0x468] sm:$0xff] %v4089_v35  ;;  %v5024_v25 = vadd.f32 %v2002_v14, %v1745_v31  ;;  %3172 = vmatprep.mubr.f32.mxu0 %v5536_v63  ;;  %v5574_v35 = vld [vmem:[%s5955_s30 + $0x148] sm:$0xff]  ;;  %v5576_v31 = vld [vmem:[%s5955_s30 + $0x178] sm:$0xff]  ;;  %v5577_v18 = vld [vmem:[%s5955_s30 + $0x170] sm:$0xff] }
 0x22c   : > { %v4093_v46 = vmul.f32 %v5023_v6, %v6426_v61  ;;  %v1749_v39 = vpop.f32.mrb[60].mxu1  ;;  %v5578_v6 = vld [vmem:[%s5955_s30 + $0x1a8] sm:$0xff]  ;;  %v5579_v14 = vld [vmem:[%s5955_s30 + $0x1a0] sm:$0xff]  ;;  %v5580_v63 = vld [vmem:[%s5955_s30 + $0x1d8] sm:$0xff] }
 0x22d   : > { %v4094_v34 = vmul.f32 %v5024_v25, %v6426_v61  ;;  %v2006_v48 = vpop.f32.mrb[60].mxu0  ;;  %v1751_v4 = vpop.f32.mrb[61].mxu1  ;;  %2453 = vmatmul.mubr.f32.gmra.mrb[102].mxu1 %v5537_v62  ;;  %v5581_v25 = vld [vmem:[%s5955_s30 + $0x1d0] sm:$0xff] }
 0x22e   : > { %4253 = vst [vmem:[%s6435_s25 + $0x488] sm:$0xff] %v4093_v46  ;;  %v5025_v23 = vadd.f32 %v2006_v48, %v1749_v39  ;;  %v2008_v45 = vpop.f32.mrb[61].mxu0  ;;  %3173 = vmatmul.mubr.f32.gmra.mrb[102].mxu0 %v5537_v62  ;;  %2458 = vmatprep.mubr.f32.mxu1 %v5538_v52  ;;  %v5582_v46 = vld [vmem:[%s5955_s30 + $0x208] sm:$0xff]  ;;  %v5583_v39 = vld [vmem:[%s5955_s30 + $0x200] sm:$0xff]  ;;  %v5585_v48 = vld [vmem:[%s5955_s30 + $0x230] sm:$0xff] }
 0x22f   : > { %4254 = vst [vmem:[%s6435_s25 + $0x490] sm:$0xff] %v4094_v34  ;;  %v5026_v24 = vadd.f32 %v2008_v45, %v1751_v4  ;;  %3177 = vmatprep.mubr.f32.mxu0 %v5538_v52  ;;  %v5584_v34 = vld [vmem:[%s5955_s30 + $0x238] sm:$0xff]  ;;  %v5586_v4 = vld [vmem:[%s5955_s30 + $0x268] sm:$0xff]  ;;  %v5587_v62 = vld [vmem:[%s5955_s30 + $0x260] sm:$0xff] }
 0x230   : > { %v4098_v54 = vmul.f32 %v5025_v23, %v6426_v61  ;;  %v1755_v57 = vpop.f32.mrb[62].mxu1  ;;  %v5588_v23 = vld [vmem:[%s5955_s30 + $0x298] sm:$0xff]  ;;  %v5589_v45 = vld [vmem:[%s5955_s30 + $0x290] sm:$0xff]  ;;  %v5590_v52 = vld [vmem:[%s5955_s30 + $0x2c8] sm:$0xff] }
 0x231   : > { %v4099_v20 = vmul.f32 %v5026_v24, %v6426_v61  ;;  %v2012_v32 = vpop.f32.mrb[62].mxu0  ;;  %v1757_v13 = vpop.f32.mrb[63].mxu1  ;;  %2459 = vmatmul.mubr.f32.gmra.mrb[104].mxu1 %v5539_v1  ;;  %v5591_v24 = vld [vmem:[%s5955_s30 + $0x2c0] sm:$0xff] }
 0x232   : > { %4258 = vst [vmem:[%s6435_s25 + $0x4b0] sm:$0xff] %v4098_v54  ;;  %v5027_v44 = vadd.f32 %v2012_v32, %v1755_v57  ;;  %v2014_v49 = vpop.f32.mrb[63].mxu0  ;;  %3178 = vmatmul.mubr.f32.gmra.mrb[104].mxu0 %v5539_v1  ;;  %2464 = vmatprep.mubr.f32.mxu1 %v5540_v19  ;;  %v5592_v54 = vld [vmem:[%s5955_s30 + $0x2f8] sm:$0xff]  ;;  %v5593_v57 = vld [vmem:[%s5955_s30 + $0x2f0] sm:$0xff]  ;;  %v5595_v32 = vld [vmem:[%s5955_s30 + $0x320] sm:$0xff] }
 0x233   : > { %4259 = vst [vmem:[%s6435_s25 + $0x4b8] sm:$0xff] %v4099_v20  ;;  %v5028_v59 = vadd.f32 %v2014_v49, %v1757_v13  ;;  %3182 = vmatprep.mubr.f32.mxu0 %v5540_v19  ;;  %v5594_v20 = vld [vmem:[%s5955_s30 + $0x328] sm:$0xff]  ;;  %v5596_v13 = vld [vmem:[%s5955_s30 + $0x358] sm:$0xff]  ;;  %v5597_v1 = vld [vmem:[%s5955_s30 + $0x350] sm:$0xff] }
 0x234   : > { %v4103_v2 = vmul.f32 %v5027_v44, %v6426_v61  ;;  %v5598_v44 = vld [vmem:[%s5955_s30 + $0x388] sm:$0xff]  ;;  %v5599_v49 = vld [vmem:[%s5955_s30 + $0x380] sm:$0xff]  ;;  %v5600_v19 = vld [vmem:[%s5955_s30 + $0x3b8] sm:$0xff] }
 0x235   : > { %v4104_v58 = vmul.f32 %v5028_v59, %v6426_v61  ;;  %2465 = vmatmul.mubr.f32.gmra.mrb[106].mxu1 %v5541_v33  ;;  %v5601_v59 = vld [vmem:[%s5955_s30 + $0x3b0] sm:$0xff] }
 0x236   : > { %4263 = vst [vmem:[%s6435_s25 + $0x4d8] sm:$0xff] %v4103_v2  ;;  %3183 = vmatmul.mubr.f32.gmra.mrb[106].mxu0 %v5541_v33  ;;  %2470 = vmatprep.mubr.f32.mxu1 %v5542_v50  ;;  %v5602_v2 = vld [vmem:[%s5955_s30 + $0x3e8] sm:$0xff]  ;;  %v5604_v33 = vld [vmem:[%s5955_s30 + $0x418] sm:$0xff] }
 0x237   : > { %4264 = vst [vmem:[%s6435_s25 + $0x4e0] sm:$0xff] %v4104_v58  ;;  %3187 = vmatprep.mubr.f32.mxu0 %v5542_v50  ;;  %v5603_v58 = vld [vmem:[%s5955_s30 + $0x3e0] sm:$0xff]  ;;  %v5605_v50 = vld [vmem:[%s5955_s30 + $0x410] sm:$0xff] }
 0x239   : > { %2471 = vmatmul.mubr.f32.gmra.mrb[108].mxu1 %v5543_v36 }
 0x23a   : > { %3188 = vmatmul.mubr.f32.gmra.mrb[108].mxu0 %v5543_v36  ;;  %2476 = vmatprep.mubr.f32.mxu1 %v5544_v0  ;;  %v5606_v36 = vld [vmem:[%s5955_s30 + $0x448] sm:$0xff] }
 0x23b   : > { %3192 = vmatprep.mubr.f32.mxu0 %v5544_v0  ;;  %v5607_v0 = vld [vmem:[%s5955_s30 + $0x440] sm:$0xff] }
 0x23d   : > { %2477 = vmatmul.mubr.f32.gmra.mrb[110].mxu1 %v5545_v15 }
 0x23e   : > { %3193 = vmatmul.mubr.f32.gmra.mrb[110].mxu0 %v5545_v15  ;;  %2482 = vmatprep.mubr.f32.mxu1 %v5546_v5  ;;  %v5608_v15 = vld [vmem:[%s5955_s30 + $0x478] sm:$0xff] }
 0x23f   : > { %3197 = vmatprep.mubr.f32.mxu0 %v5546_v5  ;;  %v5609_v5 = vld [vmem:[%s5955_s30 + $0x470] sm:$0xff] }
 0x241   : > { %2483 = vmatmul.mubr.f32.gmra.mrb[112].mxu1 %v5547_v28 }
 0x242   : > { %3198 = vmatmul.mubr.f32.gmra.mrb[112].mxu0 %v5547_v28  ;;  %2488 = vmatprep.mubr.f32.mxu1 %v5548_v8  ;;  %v5610_v28 = vld [vmem:[%s5955_s30 + $0x4a8] sm:$0xff] }
 0x243   : > { %3202 = vmatprep.mubr.f32.mxu0 %v5548_v8  ;;  %v5611_v8 = vld [vmem:[%s5955_s30 + $0x4a0] sm:$0xff] }
 0x245   : > { %2489 = vmatmul.mubr.f32.gmra.mrb[114].mxu1 %v5549_v30 }
 0x246   : > { %3203 = vmatmul.mubr.f32.gmra.mrb[114].mxu0 %v5549_v30  ;;  %2494 = vmatprep.mubr.f32.mxu1 %v5550_v3  ;;  %v5612_v30 = vld [vmem:[%s5955_s30 + $0x4d8] sm:$0xff] }
 0x247   : > { %3207 = vmatprep.mubr.f32.mxu0 %v5550_v3  ;;  %v5613_v3 = vld [vmem:[%s5955_s30 + $0x4d0] sm:$0xff] }
 0x249   : > { %2495 = vmatmul.mubr.f32.gmra.mrb[116].mxu1 %v5551_v7 }
 0x24a   : > { %3208 = vmatmul.mubr.f32.gmra.mrb[116].mxu0 %v5551_v7  ;;  %2500 = vmatprep.mubr.f32.mxu1 %v5552_v10  ;;  %v5614_v7 = vld [vmem:[%s5955_s30 + $0x508] sm:$0xff] }
 0x24b   : > { %3212 = vmatprep.mubr.f32.mxu0 %v5552_v10  ;;  %v5615_v10 = vld [vmem:[%s5955_s30 + $0x500] sm:$0xff] }
 0x24d   : > { %2501 = vmatmul.mubr.f32.gmra.mrb[118].mxu1 %v5553_v60 }
 0x24e   : > { %3213 = vmatmul.mubr.f32.gmra.mrb[118].mxu0 %v5553_v60  ;;  %2506 = vmatprep.mubr.f32.mxu1 %v5554_v22  ;;  %v5616_v60 = vld [vmem:[%s5955_s30 + $0x538] sm:$0xff] }
 0x24f   : > { %3217 = vmatprep.mubr.f32.mxu0 %v5554_v22  ;;  %v5617_v22 = vld [vmem:[%s5955_s30 + $0x530] sm:$0xff] }
 0x251   : > { %2507 = vmatmul.mubr.f32.gmra.mrb[120].mxu1 %v5555_v27 }
 0x252   : > { %3218 = vmatmul.mubr.f32.gmra.mrb[120].mxu0 %v5555_v27  ;;  %2512 = vmatprep.mubr.f32.mxu1 %v5556_v51  ;;  %v5618_v27 = vld [vmem:[%s5955_s30 + $0x568] sm:$0xff] }
 0x253   : > { %3222 = vmatprep.mubr.f32.mxu0 %v5556_v51  ;;  %v5619_v51 = vld [vmem:[%s5955_s30 + $0x560] sm:$0xff] }
 0x255   : > { %2513 = vmatmul.mubr.f32.gmra.mrb[122].mxu1 %v5557_v43 }
 0x256   : > { %3223 = vmatmul.mubr.f32.gmra.mrb[122].mxu0 %v5557_v43  ;;  %2518 = vmatprep.mubr.f32.mxu1 %v5558_v41  ;;  %v5620_v43 = vld [vmem:[%s5955_s30 + $0x598] sm:$0xff] }
 0x257   : > { %3227 = vmatprep.mubr.f32.mxu0 %v5558_v41  ;;  %v5621_v41 = vld [vmem:[%s5955_s30 + $0x590] sm:$0xff] }
 0x259   : > { %2519 = vmatmul.mubr.f32.gmra.mrb[124].mxu1 %v5559_v47 }
 0x25a   : > { %3228 = vmatmul.mubr.f32.gmra.mrb[124].mxu0 %v5559_v47  ;;  %2524 = vmatprep.mubr.f32.mxu1 %v5560_v9  ;;  %v5622_v47 = vld [vmem:[%s5955_s30 + $0x5c8] sm:$0xff] }
 0x25b   : > { %3232 = vmatprep.mubr.f32.mxu0 %v5560_v9  ;;  %v5623_v9 = vld [vmem:[%s5955_s30 + $0x5c0] sm:$0xff] }
 0x25d   : > { %2525 = vmatmul.mubr.f32.gmra.mrb[126].mxu1 %v5561_v21 }
 0x25e   : > { %3233 = vmatmul.mubr.f32.gmra.mrb[126].mxu0 %v5561_v21  ;;  %2595 = vmatprep.mubr.f32.mxu1 %v5562_v38  ;;  %v5624_v21 = vld [vmem:[%s5955_s30 + $0x5f8] sm:$0xff] }
 0x25f   : > { %3302 = vmatprep.mubr.f32.mxu0 %v5562_v38  ;;  %v5625_v38 = vld [vmem:[%s5955_s30 + $0x5f0] sm:$0xff] }
 0x261   : > { %2596 = vmatmul.mubr.f32.vlgmr.msra.gmra.mrb[64].mxu1 %v5563_v42 }
 0x262   : > { %3303 = vmatmul.mubr.f32.vlgmr.msra.gmra.mrb[64].mxu0 %v5563_v42  ;;  %2601 = vmatprep.mubr.f32.mxu1 %v5564_v37 }
 0x263   : > { %3307 = vmatprep.mubr.f32.mxu0 %v5564_v37 }
 0x265   : > { %2602 = vmatmul.mubr.f32.gmra.mrb[66].mxu1 %v5565_v29 }
 0x266   : > { %3308 = vmatmul.mubr.f32.gmra.mrb[66].mxu0 %v5565_v29  ;;  %2607 = vmatprep.mubr.f32.mxu1 %v5566_v16 }
 0x267   : > { %3312 = vmatprep.mubr.f32.mxu0 %v5566_v16 }
 0x269   : > { %2608 = vmatmul.mubr.f32.gmra.mrb[68].mxu1 %v5567_v55 }
 0x26a   : > { %3313 = vmatmul.mubr.f32.gmra.mrb[68].mxu0 %v5567_v55  ;;  %2613 = vmatprep.mubr.f32.mxu1 %v5568_v56 }
 0x26b   : > { %3317 = vmatprep.mubr.f32.mxu0 %v5568_v56 }
 0x26d   : > { %2614 = vmatmul.mubr.f32.gmra.mrb[70].mxu1 %v5569_v17 }
 0x26e   : > { %3318 = vmatmul.mubr.f32.gmra.mrb[70].mxu0 %v5569_v17  ;;  %2619 = vmatprep.mubr.f32.mxu1 %v5570_v53 }
 0x26f   : > { %3322 = vmatprep.mubr.f32.mxu0 %v5570_v53 }
 0x271   : > { %2620 = vmatmul.mubr.f32.gmra.mrb[72].mxu1 %v5571_v11 }
 0x272   : > { %3323 = vmatmul.mubr.f32.gmra.mrb[72].mxu0 %v5571_v11  ;;  %2625 = vmatprep.mubr.f32.mxu1 %v5572_v12 }
 0x273   : > { %3327 = vmatprep.mubr.f32.mxu0 %v5572_v12 }
 0x275   : > { %2626 = vmatmul.mubr.f32.gmra.mrb[74].mxu1 %v5573_v26 }
 0x276   : > { %3328 = vmatmul.mubr.f32.gmra.mrb[74].mxu0 %v5573_v26  ;;  %2631 = vmatprep.mubr.f32.mxu1 %v5574_v35 }
 0x277   : > { %3332 = vmatprep.mubr.f32.mxu0 %v5574_v35 }
 0x279   : > { %2632 = vmatmul.mubr.f32.gmra.mrb[76].mxu1 %v5575_v40 }
 0x27a   : > { %3333 = vmatmul.mubr.f32.gmra.mrb[76].mxu0 %v5575_v40  ;;  %2637 = vmatprep.mubr.f32.mxu1 %v5576_v31 }
 0x27b   : > { %3337 = vmatprep.mubr.f32.mxu0 %v5576_v31 }
 0x27d   : > { %2638 = vmatmul.mubr.f32.gmra.mrb[78].mxu1 %v5577_v18 }
 0x27e   : > { %3338 = vmatmul.mubr.f32.gmra.mrb[78].mxu0 %v5577_v18  ;;  %2643 = vmatprep.mubr.f32.mxu1 %v5578_v6 }
 0x27f   : > { %3342 = vmatprep.mubr.f32.mxu0 %v5578_v6 }
 0x281   : > { %2644 = vmatmul.mubr.f32.gmra.mrb[80].mxu1 %v5579_v14 }
 0x282   : > { %3343 = vmatmul.mubr.f32.gmra.mrb[80].mxu0 %v5579_v14  ;;  %2649 = vmatprep.mubr.f32.mxu1 %v5580_v63 }
 0x283   : > { %3347 = vmatprep.mubr.f32.mxu0 %v5580_v63 }
 0x285   : > { %2650 = vmatmul.mubr.f32.gmra.mrb[82].mxu1 %v5581_v25 }
 0x286   : > { %3348 = vmatmul.mubr.f32.gmra.mrb[82].mxu0 %v5581_v25  ;;  %2655 = vmatprep.mubr.f32.mxu1 %v5582_v46 }
 0x287   : > { %3352 = vmatprep.mubr.f32.mxu0 %v5582_v46 }
 0x289   : > { %2656 = vmatmul.mubr.f32.gmra.mrb[84].mxu1 %v5583_v39 }
 0x28a   : > { %3353 = vmatmul.mubr.f32.gmra.mrb[84].mxu0 %v5583_v39  ;;  %2661 = vmatprep.mubr.f32.mxu1 %v5584_v34 }
 0x28b   : > { %3357 = vmatprep.mubr.f32.mxu0 %v5584_v34 }
 0x28d   : > { %2662 = vmatmul.mubr.f32.gmra.mrb[86].mxu1 %v5585_v48 }
 0x28e   : > { %3358 = vmatmul.mubr.f32.gmra.mrb[86].mxu0 %v5585_v48  ;;  %2667 = vmatprep.mubr.f32.mxu1 %v5586_v4 }
 0x28f   : > { %3362 = vmatprep.mubr.f32.mxu0 %v5586_v4 }
 0x291   : > { %2668 = vmatmul.mubr.f32.gmra.mrb[88].mxu1 %v5587_v62 }
 0x292   : > { %3363 = vmatmul.mubr.f32.gmra.mrb[88].mxu0 %v5587_v62  ;;  %2673 = vmatprep.mubr.f32.mxu1 %v5588_v23 }
 0x293   : > { %3367 = vmatprep.mubr.f32.mxu0 %v5588_v23 }
 0x295   : > { %2674 = vmatmul.mubr.f32.gmra.mrb[90].mxu1 %v5589_v45 }
 0x296   : > { %3368 = vmatmul.mubr.f32.gmra.mrb[90].mxu0 %v5589_v45  ;;  %2679 = vmatprep.mubr.f32.mxu1 %v5590_v52 }
 0x297   : > { %3372 = vmatprep.mubr.f32.mxu0 %v5590_v52 }
 0x299   : > { %2680 = vmatmul.mubr.f32.gmra.mrb[92].mxu1 %v5591_v24 }
 0x29a   : > { %3373 = vmatmul.mubr.f32.gmra.mrb[92].mxu0 %v5591_v24  ;;  %2685 = vmatprep.mubr.f32.mxu1 %v5592_v54 }
 0x29b   : > { %3377 = vmatprep.mubr.f32.mxu0 %v5592_v54 }
 0x29d   : > { %2686 = vmatmul.mubr.f32.gmra.mrb[94].mxu1 %v5593_v57 }
 0x29e   : > { %3378 = vmatmul.mubr.f32.gmra.mrb[94].mxu0 %v5593_v57  ;;  %2691 = vmatprep.mubr.f32.mxu1 %v5594_v20 }
 0x29f   : > { %3382 = vmatprep.mubr.f32.mxu0 %v5594_v20 }
 0x2a1   : > { %2692 = vmatmul.mubr.f32.gmra.mrb[96].mxu1 %v5595_v32 }
 0x2a2   : > { %3383 = vmatmul.mubr.f32.gmra.mrb[96].mxu0 %v5595_v32  ;;  %2697 = vmatprep.mubr.f32.mxu1 %v5596_v13 }
 0x2a3   : > { %3387 = vmatprep.mubr.f32.mxu0 %v5596_v13 }
 0x2a5   : > { %2698 = vmatmul.mubr.f32.gmra.mrb[98].mxu1 %v5597_v1 }
 0x2a6   : > { %3388 = vmatmul.mubr.f32.gmra.mrb[98].mxu0 %v5597_v1  ;;  %2703 = vmatprep.mubr.f32.mxu1 %v5598_v44 }
 0x2a7   : > { %3392 = vmatprep.mubr.f32.mxu0 %v5598_v44 }
 0x2a9   : > { %2704 = vmatmul.mubr.f32.gmra.mrb[100].mxu1 %v5599_v49 }
 0x2aa   : > { %3393 = vmatmul.mubr.f32.gmra.mrb[100].mxu0 %v5599_v49  ;;  %2709 = vmatprep.mubr.f32.mxu1 %v5600_v19 }
 0x2ab   : > { %3397 = vmatprep.mubr.f32.mxu0 %v5600_v19 }
 0x2ad   : > { %2710 = vmatmul.mubr.f32.gmra.mrb[102].mxu1 %v5601_v59 }
 0x2ae   : > { %3398 = vmatmul.mubr.f32.gmra.mrb[102].mxu0 %v5601_v59  ;;  %2715 = vmatprep.mubr.f32.mxu1 %v5602_v2 }
 0x2af   : > { %3402 = vmatprep.mubr.f32.mxu0 %v5602_v2 }
 0x2b1   : > { %2716 = vmatmul.mubr.f32.gmra.mrb[104].mxu1 %v5603_v58 }
 0x2b2   : > { %3403 = vmatmul.mubr.f32.gmra.mrb[104].mxu0 %v5603_v58  ;;  %2721 = vmatprep.mubr.f32.mxu1 %v5604_v33 }
 0x2b3   : > { %3407 = vmatprep.mubr.f32.mxu0 %v5604_v33 }
 0x2b5   : > { %2722 = vmatmul.mubr.f32.gmra.mrb[106].mxu1 %v5605_v50 }
 0x2b6   : > { %3408 = vmatmul.mubr.f32.gmra.mrb[106].mxu0 %v5605_v50  ;;  %2727 = vmatprep.mubr.f32.mxu1 %v5606_v36 }
 0x2b7   : > { %3412 = vmatprep.mubr.f32.mxu0 %v5606_v36 }
 0x2b9   : > { %2728 = vmatmul.mubr.f32.gmra.mrb[108].mxu1 %v5607_v0 }
 0x2ba   : > { %3413 = vmatmul.mubr.f32.gmra.mrb[108].mxu0 %v5607_v0  ;;  %2733 = vmatprep.mubr.f32.mxu1 %v5608_v15 }
 0x2bb   : > { %3417 = vmatprep.mubr.f32.mxu0 %v5608_v15 }
 0x2bd   : > { %2734 = vmatmul.mubr.f32.gmra.mrb[110].mxu1 %v5609_v5 }
 0x2be   : > { %3418 = vmatmul.mubr.f32.gmra.mrb[110].mxu0 %v5609_v5  ;;  %2739 = vmatprep.mubr.f32.mxu1 %v5610_v28 }
 0x2bf   : > { %3422 = vmatprep.mubr.f32.mxu0 %v5610_v28 }
 0x2c1   : > { %2740 = vmatmul.mubr.f32.gmra.mrb[112].mxu1 %v5611_v8 }
 0x2c2   : > { %3423 = vmatmul.mubr.f32.gmra.mrb[112].mxu0 %v5611_v8  ;;  %2745 = vmatprep.mubr.f32.mxu1 %v5612_v30 }
 0x2c3   : > { %3427 = vmatprep.mubr.f32.mxu0 %v5612_v30 }
 0x2c5   : > { %2746 = vmatmul.mubr.f32.gmra.mrb[114].mxu1 %v5613_v3 }
 0x2c6   : > { %3428 = vmatmul.mubr.f32.gmra.mrb[114].mxu0 %v5613_v3  ;;  %2751 = vmatprep.mubr.f32.mxu1 %v5614_v7 }
 0x2c7   : > { %3432 = vmatprep.mubr.f32.mxu0 %v5614_v7 }
 0x2c9   : > { %2752 = vmatmul.mubr.f32.gmra.mrb[116].mxu1 %v5615_v10 }
 0x2ca   : > { %3433 = vmatmul.mubr.f32.gmra.mrb[116].mxu0 %v5615_v10  ;;  %2757 = vmatprep.mubr.f32.mxu1 %v5616_v60 }
 0x2cb   : > { %3437 = vmatprep.mubr.f32.mxu0 %v5616_v60 }
 0x2cd   : > { %2758 = vmatmul.mubr.f32.gmra.mrb[118].mxu1 %v5617_v22 }
 0x2ce   : > { %3438 = vmatmul.mubr.f32.gmra.mrb[118].mxu0 %v5617_v22  ;;  %2763 = vmatprep.mubr.f32.mxu1 %v5618_v27 }
 0x2cf   : > { %3442 = vmatprep.mubr.f32.mxu0 %v5618_v27 }
 0x2d1   : > { %2764 = vmatmul.mubr.f32.gmra.mrb[120].mxu1 %v5619_v51 }
 0x2d2   : > { %3443 = vmatmul.mubr.f32.gmra.mrb[120].mxu0 %v5619_v51  ;;  %2769 = vmatprep.mubr.f32.mxu1 %v5620_v43 }
 0x2d3   : > { %3447 = vmatprep.mubr.f32.mxu0 %v5620_v43 }
 0x2d5   : > { %2770 = vmatmul.mubr.f32.gmra.mrb[122].mxu1 %v5621_v41 }
 0x2d6   : > { %3448 = vmatmul.mubr.f32.gmra.mrb[122].mxu0 %v5621_v41  ;;  %2775 = vmatprep.mubr.f32.mxu1 %v5622_v47 }
 0x2d7   : > { %3452 = vmatprep.mubr.f32.mxu0 %v5622_v47 }
 0x2d9   : > { %2776 = vmatmul.mubr.f32.gmra.mrb[124].mxu1 %v5623_v9 }
 0x2da   : > { %3453 = vmatmul.mubr.f32.gmra.mrb[124].mxu0 %v5623_v9  ;;  %2781 = vmatprep.mubr.f32.mxu1 %v5624_v21 }
 0x2db   : > { %3457 = vmatprep.mubr.f32.mxu0 %v5624_v21 }
 0x2dd   : > { %2782 = vmatmul.mubr.f32.gmra.mrb[126].mxu1 %v5625_v38 }
 0x2de   : > { %3458 = vmatmul.mubr.f32.gmra.mrb[126].mxu0 %v5625_v38 }
 0x334   : > { %v2597_v42 = vpop.f32.mrb[64].mxu1 }
 0x335   : > { %v3950_v37 = vmul.f32 %v6426_v61, %v2597_v42  ;;  %v3304_v29 = vpop.f32.mrb[64].mxu0  ;;  %v2599_v16 = vpop.f32.mrb[65].mxu1 }
 0x336   : > { %v3952_v55 = vmul.f32 %v6426_v61, %v3304_v29  ;;  %v3951_v56 = vmul.f32 %v6426_v61, %v2599_v16  ;;  %v3306_v17 = vpop.f32.mrb[65].mxu0 }
 0x337   : > { %4110 = vst [vmem:[%s6435_s25 + $0x10] sm:$0xff] %v3950_v37 }
 0x338   : > { %4112 = vst [vmem:[%s6435_s25 + $0x20] sm:$0xff] %v3952_v55  ;;  %4111 = vst [vmem:[%s6435_s25 + $0x18] sm:$0xff] %v3951_v56  ;;  %v2603_v53 = vpop.f32.mrb[66].mxu1 }
 0x339   : > { %v3955_v11 = vmul.f32 %v6426_v61, %v2603_v53  ;;  %v3309_v12 = vpop.f32.mrb[66].mxu0  ;;  %v2605_v26 = vpop.f32.mrb[67].mxu1 }
 0x33a   : > { %v3957_v35 = vmul.f32 %v6426_v61, %v3309_v12  ;;  %v3956_v40 = vmul.f32 %v6426_v61, %v2605_v26  ;;  %v3311_v31 = vpop.f32.mrb[67].mxu0 }
 0x33b   : > { %4115 = vst [vmem:[%s6435_s25 + $0x38] sm:$0xff] %v3955_v11 }
 0x33c   : > { %4117 = vst [vmem:[%s6435_s25 + $0x48] sm:$0xff] %v3957_v35  ;;  %4116 = vst [vmem:[%s6435_s25 + $0x40] sm:$0xff] %v3956_v40  ;;  %v2609_v18 = vpop.f32.mrb[68].mxu1 }
 0x33d   : > { %v3960_v6 = vmul.f32 %v6426_v61, %v2609_v18  ;;  %v3314_v14 = vpop.f32.mrb[68].mxu0  ;;  %v2611_v63 = vpop.f32.mrb[69].mxu1 }
 0x33e   : > { %v3962_v25 = vmul.f32 %v6426_v61, %v3314_v14  ;;  %v3961_v46 = vmul.f32 %v6426_v61, %v2611_v63  ;;  %v3316_v39 = vpop.f32.mrb[69].mxu0 }
 0x33f   : > { %4120 = vst [vmem:[%s6435_s25 + $0x60] sm:$0xff] %v3960_v6 }
 0x340   : > { %4122 = vst [vmem:[%s6435_s25 + $0x70] sm:$0xff] %v3962_v25  ;;  %4121 = vst [vmem:[%s6435_s25 + $0x68] sm:$0xff] %v3961_v46  ;;  %v2615_v34 = vpop.f32.mrb[70].mxu1 }
 0x341   : > { %v3965_v48 = vmul.f32 %v6426_v61, %v2615_v34  ;;  %v3319_v4 = vpop.f32.mrb[70].mxu0  ;;  %v2617_v62 = vpop.f32.mrb[71].mxu1 }
 0x342   : > { %v3967_v23 = vmul.f32 %v6426_v61, %v3319_v4  ;;  %v3966_v45 = vmul.f32 %v6426_v61, %v2617_v62  ;;  %v3321_v52 = vpop.f32.mrb[71].mxu0 }
 0x343   : > { %4125 = vst [vmem:[%s6435_s25 + $0x88] sm:$0xff] %v3965_v48 }
 0x344   : > { %4127 = vst [vmem:[%s6435_s25 + $0x98] sm:$0xff] %v3967_v23  ;;  %4126 = vst [vmem:[%s6435_s25 + $0x90] sm:$0xff] %v3966_v45  ;;  %v2621_v24 = vpop.f32.mrb[72].mxu1 }
 0x345   : > { %v3970_v54 = vmul.f32 %v6426_v61, %v2621_v24  ;;  %v3324_v57 = vpop.f32.mrb[72].mxu0  ;;  %v2623_v20 = vpop.f32.mrb[73].mxu1 }
 0x346   : > { %v3972_v32 = vmul.f32 %v6426_v61, %v3324_v57  ;;  %v3971_v13 = vmul.f32 %v6426_v61, %v2623_v20  ;;  %v3326_v1 = vpop.f32.mrb[73].mxu0 }
 0x347   : > { %4130 = vst [vmem:[%s6435_s25 + $0xb0] sm:$0xff] %v3970_v54 }
 0x348   : > { %4132 = vst [vmem:[%s6435_s25 + $0xc0] sm:$0xff] %v3972_v32  ;;  %4131 = vst [vmem:[%s6435_s25 + $0xb8] sm:$0xff] %v3971_v13  ;;  %v2627_v44 = vpop.f32.mrb[74].mxu1 }
 0x349   : > { %v3975_v49 = vmul.f32 %v6426_v61, %v2627_v44  ;;  %v3329_v19 = vpop.f32.mrb[74].mxu0  ;;  %v2629_v59 = vpop.f32.mrb[75].mxu1 }
 0x34a   : > { %v3977_v2 = vmul.f32 %v6426_v61, %v3329_v19  ;;  %v3976_v58 = vmul.f32 %v6426_v61, %v2629_v59  ;;  %v3331_v33 = vpop.f32.mrb[75].mxu0 }
 0x34b   : > { %4135 = vst [vmem:[%s6435_s25 + $0xd8] sm:$0xff] %v3975_v49 }
 0x34c   : > { %4137 = vst [vmem:[%s6435_s25 + $0xe8] sm:$0xff] %v3977_v2  ;;  %4136 = vst [vmem:[%s6435_s25 + $0xe0] sm:$0xff] %v3976_v58  ;;  %v2633_v50 = vpop.f32.mrb[76].mxu1 }
 0x34d   : > { %v3980_v36 = vmul.f32 %v6426_v61, %v2633_v50  ;;  %v3334_v0 = vpop.f32.mrb[76].mxu0  ;;  %v2635_v15 = vpop.f32.mrb[77].mxu1 }
 0x34e   : > { %v3982_v5 = vmul.f32 %v6426_v61, %v3334_v0  ;;  %v3981_v28 = vmul.f32 %v6426_v61, %v2635_v15  ;;  %v3336_v8 = vpop.f32.mrb[77].mxu0 }
 0x34f   : > { %4140 = vst [vmem:[%s6435_s25 + $0x100] sm:$0xff] %v3980_v36 }
 0x350   : > { %4142 = vst [vmem:[%s6435_s25 + $0x110] sm:$0xff] %v3982_v5  ;;  %4141 = vst [vmem:[%s6435_s25 + $0x108] sm:$0xff] %v3981_v28  ;;  %v2639_v30 = vpop.f32.mrb[78].mxu1 }
 0x351   : > { %v3985_v3 = vmul.f32 %v6426_v61, %v2639_v30  ;;  %v3339_v7 = vpop.f32.mrb[78].mxu0  ;;  %v2641_v10 = vpop.f32.mrb[79].mxu1 }
 0x352   : > { %v3987_v60 = vmul.f32 %v6426_v61, %v3339_v7  ;;  %v3986_v22 = vmul.f32 %v6426_v61, %v2641_v10  ;;  %v3341_v27 = vpop.f32.mrb[79].mxu0 }
 0x353   : > { %4145 = vst [vmem:[%s6435_s25 + $0x128] sm:$0xff] %v3985_v3 }
 0x354   : > { %4147 = vst [vmem:[%s6435_s25 + $0x138] sm:$0xff] %v3987_v60  ;;  %4146 = vst [vmem:[%s6435_s25 + $0x130] sm:$0xff] %v3986_v22  ;;  %v2645_v51 = vpop.f32.mrb[80].mxu1 }
 0x355   : > { %v3990_v43 = vmul.f32 %v6426_v61, %v2645_v51  ;;  %v3344_v41 = vpop.f32.mrb[80].mxu0  ;;  %v2647_v47 = vpop.f32.mrb[81].mxu1 }
 0x356   : > { %v3992_v9 = vmul.f32 %v6426_v61, %v3344_v41  ;;  %v3991_v21 = vmul.f32 %v6426_v61, %v2647_v47  ;;  %v3346_v38 = vpop.f32.mrb[81].mxu0 }
 0x357   : > { %4150 = vst [vmem:[%s6435_s25 + $0x150] sm:$0xff] %v3990_v43 }
 0x358   : > { %4152 = vst [vmem:[%s6435_s25 + $0x160] sm:$0xff] %v3992_v9  ;;  %4151 = vst [vmem:[%s6435_s25 + $0x158] sm:$0xff] %v3991_v21  ;;  %v2651_v42 = vpop.f32.mrb[82].mxu1 }
 0x359   : > { %v3995_v37 = vmul.f32 %v6426_v61, %v2651_v42  ;;  %v3349_v29 = vpop.f32.mrb[82].mxu0  ;;  %v2653_v16 = vpop.f32.mrb[83].mxu1 }
 0x35a   : > { %v3997_v55 = vmul.f32 %v6426_v61, %v3349_v29  ;;  %v3996_v56 = vmul.f32 %v6426_v61, %v2653_v16  ;;  %v3351_v17 = vpop.f32.mrb[83].mxu0 }
 0x35b   : > { %4155 = vst [vmem:[%s6435_s25 + $0x178] sm:$0xff] %v3995_v37 }
 0x35c   : > { %4157 = vst [vmem:[%s6435_s25 + $0x188] sm:$0xff] %v3997_v55  ;;  %4156 = vst [vmem:[%s6435_s25 + $0x180] sm:$0xff] %v3996_v56  ;;  %v2657_v53 = vpop.f32.mrb[84].mxu1 }
 0x35d   : > { %v4000_v11 = vmul.f32 %v6426_v61, %v2657_v53  ;;  %v3354_v12 = vpop.f32.mrb[84].mxu0  ;;  %v2659_v26 = vpop.f32.mrb[85].mxu1 }
 0x35e   : > { %v4002_v35 = vmul.f32 %v6426_v61, %v3354_v12  ;;  %v4001_v40 = vmul.f32 %v6426_v61, %v2659_v26  ;;  %v3356_v31 = vpop.f32.mrb[85].mxu0 }
 0x35f   : > { %4160 = vst [vmem:[%s6435_s25 + $0x1a0] sm:$0xff] %v4000_v11 }
 0x360   : > { %4162 = vst [vmem:[%s6435_s25 + $0x1b0] sm:$0xff] %v4002_v35  ;;  %4161 = vst [vmem:[%s6435_s25 + $0x1a8] sm:$0xff] %v4001_v40  ;;  %v2663_v18 = vpop.f32.mrb[86].mxu1 }
 0x361   : > { %v4005_v6 = vmul.f32 %v6426_v61, %v2663_v18  ;;  %v3359_v14 = vpop.f32.mrb[86].mxu0  ;;  %v2665_v63 = vpop.f32.mrb[87].mxu1 }
 0x362   : > { %v4007_v25 = vmul.f32 %v6426_v61, %v3359_v14  ;;  %v4006_v46 = vmul.f32 %v6426_v61, %v2665_v63  ;;  %v3361_v39 = vpop.f32.mrb[87].mxu0 }
 0x363   : > { %4165 = vst [vmem:[%s6435_s25 + $0x1c8] sm:$0xff] %v4005_v6 }
 0x364   : > { %4167 = vst [vmem:[%s6435_s25 + $0x1d8] sm:$0xff] %v4007_v25  ;;  %4166 = vst [vmem:[%s6435_s25 + $0x1d0] sm:$0xff] %v4006_v46  ;;  %v2669_v34 = vpop.f32.mrb[88].mxu1 }
 0x365   : > { %v4010_v48 = vmul.f32 %v6426_v61, %v2669_v34  ;;  %v3364_v4 = vpop.f32.mrb[88].mxu0  ;;  %v2671_v62 = vpop.f32.mrb[89].mxu1 }
 0x366   : > { %v4012_v23 = vmul.f32 %v6426_v61, %v3364_v4  ;;  %v4011_v45 = vmul.f32 %v6426_v61, %v2671_v62  ;;  %v3366_v52 = vpop.f32.mrb[89].mxu0 }
 0x367   : > { %4170 = vst [vmem:[%s6435_s25 + $0x1f0] sm:$0xff] %v4010_v48 }
 0x368   : > { %4172 = vst [vmem:[%s6435_s25 + $0x200] sm:$0xff] %v4012_v23  ;;  %4171 = vst [vmem:[%s6435_s25 + $0x1f8] sm:$0xff] %v4011_v45  ;;  %v2675_v24 = vpop.f32.mrb[90].mxu1 }
 0x369   : > { %v4015_v54 = vmul.f32 %v6426_v61, %v2675_v24  ;;  %v3369_v57 = vpop.f32.mrb[90].mxu0  ;;  %v2677_v20 = vpop.f32.mrb[91].mxu1 }
 0x36a   : > { %v4017_v32 = vmul.f32 %v6426_v61, %v3369_v57  ;;  %v4016_v13 = vmul.f32 %v6426_v61, %v2677_v20  ;;  %v3371_v1 = vpop.f32.mrb[91].mxu0 }
 0x36b   : > { %4175 = vst [vmem:[%s6435_s25 + $0x218] sm:$0xff] %v4015_v54 }
 0x36c   : > { %4177 = vst [vmem:[%s6435_s25 + $0x228] sm:$0xff] %v4017_v32  ;;  %4176 = vst [vmem:[%s6435_s25 + $0x220] sm:$0xff] %v4016_v13  ;;  %v2681_v44 = vpop.f32.mrb[92].mxu1 }
 0x36d   : > { %v4020_v49 = vmul.f32 %v6426_v61, %v2681_v44  ;;  %v3374_v19 = vpop.f32.mrb[92].mxu0  ;;  %v2683_v59 = vpop.f32.mrb[93].mxu1 }
 0x36e   : > { %v4022_v2 = vmul.f32 %v6426_v61, %v3374_v19  ;;  %v4021_v58 = vmul.f32 %v6426_v61, %v2683_v59  ;;  %v3376_v33 = vpop.f32.mrb[93].mxu0 }
 0x36f   : > { %4180 = vst [vmem:[%s6435_s25 + $0x240] sm:$0xff] %v4020_v49 }
 0x370   : > { %4182 = vst [vmem:[%s6435_s25 + $0x250] sm:$0xff] %v4022_v2  ;;  %4181 = vst [vmem:[%s6435_s25 + $0x248] sm:$0xff] %v4021_v58  ;;  %v2687_v50 = vpop.f32.mrb[94].mxu1 }
 0x371   : > { %v4025_v36 = vmul.f32 %v6426_v61, %v2687_v50  ;;  %v3379_v0 = vpop.f32.mrb[94].mxu0  ;;  %v2689_v15 = vpop.f32.mrb[95].mxu1 }
 0x372   : > { %v4027_v5 = vmul.f32 %v6426_v61, %v3379_v0  ;;  %v4026_v28 = vmul.f32 %v6426_v61, %v2689_v15  ;;  %v3381_v8 = vpop.f32.mrb[95].mxu0 }
 0x373   : > { %4185 = vst [vmem:[%s6435_s25 + $0x268] sm:$0xff] %v4025_v36 }
 0x374   : > { %4187 = vst [vmem:[%s6435_s25 + $0x278] sm:$0xff] %v4027_v5  ;;  %4186 = vst [vmem:[%s6435_s25 + $0x270] sm:$0xff] %v4026_v28  ;;  %v2693_v30 = vpop.f32.mrb[96].mxu1 }
 0x375   : > { %v4030_v3 = vmul.f32 %v6426_v61, %v2693_v30  ;;  %v3384_v7 = vpop.f32.mrb[96].mxu0  ;;  %v2695_v10 = vpop.f32.mrb[97].mxu1 }
 0x376   : > { %v4032_v60 = vmul.f32 %v6426_v61, %v3384_v7  ;;  %v4031_v22 = vmul.f32 %v6426_v61, %v2695_v10  ;;  %v3386_v27 = vpop.f32.mrb[97].mxu0 }
 0x377   : > { %4190 = vst [vmem:[%s6435_s25 + $0x290] sm:$0xff] %v4030_v3 }
 0x378   : > { %4192 = vst [vmem:[%s6435_s25 + $0x2a0] sm:$0xff] %v4032_v60  ;;  %4191 = vst [vmem:[%s6435_s25 + $0x298] sm:$0xff] %v4031_v22  ;;  %v2699_v51 = vpop.f32.mrb[98].mxu1 }
 0x379   : > { %v4035_v43 = vmul.f32 %v6426_v61, %v2699_v51  ;;  %v3389_v41 = vpop.f32.mrb[98].mxu0  ;;  %v2701_v47 = vpop.f32.mrb[99].mxu1 }
 0x37a   : > { %v4037_v9 = vmul.f32 %v6426_v61, %v3389_v41  ;;  %v4036_v21 = vmul.f32 %v6426_v61, %v2701_v47  ;;  %v3391_v38 = vpop.f32.mrb[99].mxu0 }
 0x37b   : > { %4195 = vst [vmem:[%s6435_s25 + $0x2b8] sm:$0xff] %v4035_v43 }
 0x37c   : > { %4197 = vst [vmem:[%s6435_s25 + $0x2c8] sm:$0xff] %v4037_v9  ;;  %4196 = vst [vmem:[%s6435_s25 + $0x2c0] sm:$0xff] %v4036_v21  ;;  %v2705_v42 = vpop.f32.mrb[100].mxu1 }
 0x37d   : > { %v4040_v37 = vmul.f32 %v6426_v61, %v2705_v42  ;;  %v3394_v29 = vpop.f32.mrb[100].mxu0  ;;  %v2707_v16 = vpop.f32.mrb[101].mxu1 }
 0x37e   : > { %v4042_v55 = vmul.f32 %v6426_v61, %v3394_v29  ;;  %v4041_v56 = vmul.f32 %v6426_v61, %v2707_v16  ;;  %v3396_v17 = vpop.f32.mrb[101].mxu0 }
 0x37f   : > { %4200 = vst [vmem:[%s6435_s25 + $0x2e0] sm:$0xff] %v4040_v37 }
 0x380   : > { %4202 = vst [vmem:[%s6435_s25 + $0x2f0] sm:$0xff] %v4042_v55  ;;  %4201 = vst [vmem:[%s6435_s25 + $0x2e8] sm:$0xff] %v4041_v56  ;;  %v2711_v53 = vpop.f32.mrb[102].mxu1 }
 0x381   : > { %v4045_v11 = vmul.f32 %v6426_v61, %v2711_v53  ;;  %v3399_v12 = vpop.f32.mrb[102].mxu0  ;;  %v2713_v26 = vpop.f32.mrb[103].mxu1 }
 0x382   : > { %v4047_v35 = vmul.f32 %v6426_v61, %v3399_v12  ;;  %v4046_v40 = vmul.f32 %v6426_v61, %v2713_v26  ;;  %v3401_v31 = vpop.f32.mrb[103].mxu0 }
 0x383   : > { %4205 = vst [vmem:[%s6435_s25 + $0x308] sm:$0xff] %v4045_v11 }
 0x384   : > { %4207 = vst [vmem:[%s6435_s25 + $0x318] sm:$0xff] %v4047_v35  ;;  %4206 = vst [vmem:[%s6435_s25 + $0x310] sm:$0xff] %v4046_v40  ;;  %v2717_v18 = vpop.f32.mrb[104].mxu1 }
 0x385   : > { %v4050_v6 = vmul.f32 %v6426_v61, %v2717_v18  ;;  %v3404_v14 = vpop.f32.mrb[104].mxu0  ;;  %v2719_v63 = vpop.f32.mrb[105].mxu1 }
 0x386   : > { %v4052_v25 = vmul.f32 %v6426_v61, %v3404_v14  ;;  %v4051_v46 = vmul.f32 %v6426_v61, %v2719_v63  ;;  %v3406_v39 = vpop.f32.mrb[105].mxu0 }
 0x387   : > { %4210 = vst [vmem:[%s6435_s25 + $0x330] sm:$0xff] %v4050_v6 }
 0x388   : > { %4212 = vst [vmem:[%s6435_s25 + $0x340] sm:$0xff] %v4052_v25  ;;  %4211 = vst [vmem:[%s6435_s25 + $0x338] sm:$0xff] %v4051_v46  ;;  %v2723_v34 = vpop.f32.mrb[106].mxu1 }
 0x389   : > { %v4055_v48 = vmul.f32 %v6426_v61, %v2723_v34  ;;  %v3409_v4 = vpop.f32.mrb[106].mxu0  ;;  %v2725_v62 = vpop.f32.mrb[107].mxu1 }
 0x38a   : > { %v4057_v23 = vmul.f32 %v6426_v61, %v3409_v4  ;;  %v4056_v45 = vmul.f32 %v6426_v61, %v2725_v62  ;;  %v3411_v52 = vpop.f32.mrb[107].mxu0 }
 0x38b   : > { %4215 = vst [vmem:[%s6435_s25 + $0x358] sm:$0xff] %v4055_v48 }
 0x38c   : > { %4217 = vst [vmem:[%s6435_s25 + $0x368] sm:$0xff] %v4057_v23  ;;  %4216 = vst [vmem:[%s6435_s25 + $0x360] sm:$0xff] %v4056_v45  ;;  %v2729_v24 = vpop.f32.mrb[108].mxu1 }
 0x38d   : > { %v4060_v54 = vmul.f32 %v6426_v61, %v2729_v24  ;;  %v3414_v57 = vpop.f32.mrb[108].mxu0  ;;  %v2731_v20 = vpop.f32.mrb[109].mxu1 }
 0x38e   : > { %v4062_v32 = vmul.f32 %v6426_v61, %v3414_v57  ;;  %v4061_v13 = vmul.f32 %v6426_v61, %v2731_v20  ;;  %v3416_v1 = vpop.f32.mrb[109].mxu0 }
 0x38f   : > { %4220 = vst [vmem:[%s6435_s25 + $0x380] sm:$0xff] %v4060_v54 }
 0x390   : > { %4222 = vst [vmem:[%s6435_s25 + $0x390] sm:$0xff] %v4062_v32  ;;  %4221 = vst [vmem:[%s6435_s25 + $0x388] sm:$0xff] %v4061_v13  ;;  %v2735_v44 = vpop.f32.mrb[110].mxu1 }
 0x391   : > { %v4065_v49 = vmul.f32 %v6426_v61, %v2735_v44  ;;  %v3419_v19 = vpop.f32.mrb[110].mxu0  ;;  %v2737_v59 = vpop.f32.mrb[111].mxu1 }
 0x392   : > { %v4067_v2 = vmul.f32 %v6426_v61, %v3419_v19  ;;  %v4066_v58 = vmul.f32 %v6426_v61, %v2737_v59  ;;  %v3421_v33 = vpop.f32.mrb[111].mxu0 }
 0x393   : > { %4225 = vst [vmem:[%s6435_s25 + $0x3a8] sm:$0xff] %v4065_v49 }
 0x394   : > { %4227 = vst [vmem:[%s6435_s25 + $0x3b8] sm:$0xff] %v4067_v2  ;;  %4226 = vst [vmem:[%s6435_s25 + $0x3b0] sm:$0xff] %v4066_v58  ;;  %v2741_v50 = vpop.f32.mrb[112].mxu1 }
 0x395   : > { %v4070_v36 = vmul.f32 %v6426_v61, %v2741_v50  ;;  %v3424_v0 = vpop.f32.mrb[112].mxu0  ;;  %v2743_v15 = vpop.f32.mrb[113].mxu1 }
 0x396   : > { %v4072_v5 = vmul.f32 %v6426_v61, %v3424_v0  ;;  %v4071_v28 = vmul.f32 %v6426_v61, %v2743_v15  ;;  %v3426_v8 = vpop.f32.mrb[113].mxu0 }
 0x397   : > { %4230 = vst [vmem:[%s6435_s25 + $0x3d0] sm:$0xff] %v4070_v36 }
 0x398   : > { %4232 = vst [vmem:[%s6435_s25 + $0x3e0] sm:$0xff] %v4072_v5  ;;  %4231 = vst [vmem:[%s6435_s25 + $0x3d8] sm:$0xff] %v4071_v28  ;;  %v2747_v30 = vpop.f32.mrb[114].mxu1 }
 0x399   : > { %v4075_v3 = vmul.f32 %v6426_v61, %v2747_v30  ;;  %v3429_v7 = vpop.f32.mrb[114].mxu0  ;;  %v2749_v10 = vpop.f32.mrb[115].mxu1 }
 0x39a   : > { %v4077_v60 = vmul.f32 %v6426_v61, %v3429_v7  ;;  %v4076_v22 = vmul.f32 %v6426_v61, %v2749_v10  ;;  %v3431_v27 = vpop.f32.mrb[115].mxu0 }
 0x39b   : > { %4235 = vst [vmem:[%s6435_s25 + $0x3f8] sm:$0xff] %v4075_v3 }
 0x39c   : > { %4237 = vst [vmem:[%s6435_s25 + $0x408] sm:$0xff] %v4077_v60  ;;  %4236 = vst [vmem:[%s6435_s25 + $0x400] sm:$0xff] %v4076_v22  ;;  %v2753_v51 = vpop.f32.mrb[116].mxu1 }
 0x39d   : > { %v4080_v43 = vmul.f32 %v6426_v61, %v2753_v51  ;;  %v3434_v41 = vpop.f32.mrb[116].mxu0  ;;  %v2755_v47 = vpop.f32.mrb[117].mxu1 }
 0x39e   : > { %v4082_v9 = vmul.f32 %v6426_v61, %v3434_v41  ;;  %v4081_v21 = vmul.f32 %v6426_v61, %v2755_v47  ;;  %v3436_v38 = vpop.f32.mrb[117].mxu0 }
 0x39f   : > { %4240 = vst [vmem:[%s6435_s25 + $0x420] sm:$0xff] %v4080_v43 }
 0x3a0   : > { %4242 = vst [vmem:[%s6435_s25 + $0x430] sm:$0xff] %v4082_v9  ;;  %4241 = vst [vmem:[%s6435_s25 + $0x428] sm:$0xff] %v4081_v21  ;;  %v2759_v42 = vpop.f32.mrb[118].mxu1 }
 0x3a1   : > { %v4085_v37 = vmul.f32 %v6426_v61, %v2759_v42  ;;  %v3439_v29 = vpop.f32.mrb[118].mxu0  ;;  %v2761_v16 = vpop.f32.mrb[119].mxu1 }
 0x3a2   : > { %v4087_v55 = vmul.f32 %v6426_v61, %v3439_v29  ;;  %v4086_v56 = vmul.f32 %v6426_v61, %v2761_v16  ;;  %v3441_v17 = vpop.f32.mrb[119].mxu0 }
 0x3a3   : > { %4245 = vst [vmem:[%s6435_s25 + $0x448] sm:$0xff] %v4085_v37 }
 0x3a4   : > { %4247 = vst [vmem:[%s6435_s25 + $0x458] sm:$0xff] %v4087_v55  ;;  %4246 = vst [vmem:[%s6435_s25 + $0x450] sm:$0xff] %v4086_v56  ;;  %v2765_v53 = vpop.f32.mrb[120].mxu1 }
 0x3a5   : > { %v4090_v11 = vmul.f32 %v6426_v61, %v2765_v53  ;;  %v3444_v12 = vpop.f32.mrb[120].mxu0  ;;  %v2767_v26 = vpop.f32.mrb[121].mxu1 }
 0x3a6   : > { %v4092_v35 = vmul.f32 %v6426_v61, %v3444_v12  ;;  %v4091_v40 = vmul.f32 %v6426_v61, %v2767_v26  ;;  %v3446_v31 = vpop.f32.mrb[121].mxu0 }
 0x3a7   : > { %4250 = vst [vmem:[%s6435_s25 + $0x470] sm:$0xff] %v4090_v11 }
 0x3a8   : > { %4252 = vst [vmem:[%s6435_s25 + $0x480] sm:$0xff] %v4092_v35  ;;  %4251 = vst [vmem:[%s6435_s25 + $0x478] sm:$0xff] %v4091_v40  ;;  %v2771_v18 = vpop.f32.mrb[122].mxu1 }
 0x3a9   : > { %v4095_v6 = vmul.f32 %v6426_v61, %v2771_v18  ;;  %v3449_v14 = vpop.f32.mrb[122].mxu0  ;;  %v2773_v63 = vpop.f32.mrb[123].mxu1 }
 0x3aa   : > { %v4097_v25 = vmul.f32 %v6426_v61, %v3449_v14  ;;  %v4096_v46 = vmul.f32 %v6426_v61, %v2773_v63  ;;  %v3451_v39 = vpop.f32.mrb[123].mxu0 }
 0x3ab   : > { %4255 = vst [vmem:[%s6435_s25 + $0x498] sm:$0xff] %v4095_v6 }
 0x3ac   : > { %4257 = vst [vmem:[%s6435_s25 + $0x4a8] sm:$0xff] %v4097_v25  ;;  %4256 = vst [vmem:[%s6435_s25 + $0x4a0] sm:$0xff] %v4096_v46  ;;  %v2777_v34 = vpop.f32.mrb[124].mxu1 }
 0x3ad   : > { %v4100_v48 = vmul.f32 %v6426_v61, %v2777_v34  ;;  %v3454_v4 = vpop.f32.mrb[124].mxu0  ;;  %v2779_v62 = vpop.f32.mrb[125].mxu1 }
 0x3ae   : > { %v4102_v23 = vmul.f32 %v6426_v61, %v3454_v4  ;;  %v4101_v45 = vmul.f32 %v6426_v61, %v2779_v62  ;;  %v3456_v52 = vpop.f32.mrb[125].mxu0 }
 0x3af   : > { %4260 = vst [vmem:[%s6435_s25 + $0x4c0] sm:$0xff] %v4100_v48 }
 0x3b0   : > { %4262 = vst [vmem:[%s6435_s25 + $0x4d0] sm:$0xff] %v4102_v23  ;;  %4261 = vst [vmem:[%s6435_s25 + $0x4c8] sm:$0xff] %v4101_v45  ;;  %v2783_v24 = vpop.f32.mrb[126].mxu1 }
 0x3b1   : > { %v4105_v54 = vmul.f32 %v6426_v61, %v2783_v24  ;;  %v3459_v57 = vpop.f32.mrb[126].mxu0  ;;  %v2785_v20 = vpop.f32.mrb[127].mxu1 }
 0x3b2   : > { %v4107_v32 = vmul.f32 %v6426_v61, %v3459_v57  ;;  %v4106_v13 = vmul.f32 %v6426_v61, %v2785_v20  ;;  %v3461_v1 = vpop.f32.mrb[127].mxu0 }
 0x3b3   : > { %4265 = vst [vmem:[%s6435_s25 + $0x4e8] sm:$0xff] %v4105_v54 }
 0x3b4   : > { %4267 = vst [vmem:[%s6435_s25 + $0x4f8] sm:$0xff] %v4107_v32  ;;  %4266 = vst [vmem:[%s6435_s25 + $0x4f0] sm:$0xff] %v4106_v13 }
 0x3b5   : > { %5697 = shalt.err (!%p5694_p5)
}
 0x3b6   : > { %s5698_s22 = scalar_lea.hbm %s6946_s11, 20480  ;;  %s5702_s20 = scalar_lea.hbm %s7005_s3, 40960 }
 0x3b7   : > { %p5699_p9 = scmp.ne.s32.totalorder %s6946_s11, %s5698_s22  ;;  %p5703_p3 = scmp.lt.u32.totalorder %s6946_s11, %s7005_s3 }
 0x3b8   : > { %p5704_p7 = scmp.lt.u32.totalorder %s5702_s20, %s5698_s22  ;;  %p5706_p4 = scmp.lt.u32.totalorder %s5698_s22, %s6946_s11 }
 0x3b9   : > { %p5700_p1 = pnand %p5699_p9, %p5897_p10 }
 0x3ba   : > { %p5705_p11 = por %p5704_p7, %p5703_p3 }
 0x3bb   : > { %p5701_p2 = pneg %p5700_p1 }
 0x3bc   : > { %p5707_p6 = por %p5706_p4, %p5705_p11 }
 0x3be   : > { %p5708_p8 = pnand %p5707_p6, %p5701_p2 }
 0x3c0   : > { %5711 = shalt.err (!%p5708_p8)
}
 0x3c1   : > { %s5780_s23 = smov 640   ;;  %s5781_s25 = smov 40  }
 0x3c2   : > { %5360 = dma.vmem_to_hbm [thread:$0]  (%p5897_p10), %s6948_s8, 20480, %s6946_s11, %s4269_s4, %s5780_s23, %s5780_s23, %s5781_s25  }
 0x3c3 PF: > { %s4300_s7 = sand.u32 1, %s5750_s14   ;;  %p7022_p12 = scmp.ne.s32.totalorder %s7013_s24, 0 }
 0x3c4   : > { %p7023_p13 = scmp.ge.s32.totalorder %s5770_s19, 2  ;;  %s4301_s17 = scalar_lea.sflag [#allocation6], %s4300_s7 }
 0x3c6   : > { %p5371_p0 = pnand %p7023_p13, %p7022_p12 }
 0x3c8   : > { %5745 = dma.done.wait (!%p5371_p0), %s4301_s17, 20480  }
 0x3c9   : > { %5747 = vsyncadd (!%p5371_p0), %s4301_s17, 4294946816  ;;  %s21_s19 = sadd.s32 1, %s5770_s19   ;;  %s7024_s14 = smov %s5754_s15 }
 0x3ca   : > { %p18_p5 = scmp.ge.s32.totalorder %s21_s19, 4   ;;  %s7025_s15 = smov %s5758_s16 }
 0x3cb   : > { %s7026_s16 = smov %s5906_s5  ;;  %s7027_s17 = smov %s5766_s18 }
 0x3cc   : > { %s7028_s18 = smov %s7030_s29  ;;  %20 = sbr.rel (!%p18_p5) target bundleno = 9 (0x9), region = 90 }
 0x3d3   :  { %4306 = vsyncpa [#allocation5], 1 }
 0x3d4   :  { %4308 = vsyncpa [#allocation5 + $0x1], 1 }
 0x3d5   :  { %4309 = vsyncpa [#allocation8], 1 }
 0x3d6   :  { %4310 = vsyncpa [#allocation6], 1 }
 0x3d7   :  { %4312 = vsyncpa [#allocation6 + $0x1], 1 }

</bundles_post_ra>
